<compile_context>
chip_gen: v5e
topology: v5e:2x2
jax: 0.10.0
libtpu: 0.0.40
codegen_flags: <defaults>
</compile_context>

<pallas_src>
import functools

import jax
import jax.numpy as jnp
from jax.experimental import pallas as pl
from jax.experimental.pallas import tpu as pltpu


LANE = 128


def _round_up(v, m):
    return (v + m - 1) // m * m


def _pick_row_tile(ho, wo, max_m=512, min_tiles=2):
    """Largest divisor of Ho with TH*Wo (matmul M) bounded and, when possible,
    at least `min_tiles` row tiles so the grid has work for both v7x
    TensorCores and something to pipeline even at batch=1."""
    cands = [t for t in range(1, ho + 1) if ho % t == 0 and t * wo <= max_m]
    if not cands:
        return 1
    pref = [t for t in cands if ho // t >= min_tiles]
    return max(pref) if pref else max(cands)


# ----------------------------------------------------------------------------
# Pallas kernel: KxK conv (KW taps packed into the contraction dim) + folded
# BatchNorm affine (+ fused identity / 1x1-conv shortcut) (+ ReLU).
# ----------------------------------------------------------------------------
def _conv_bn_kernel(*refs, kh, kw, stride, th, wo, relu, res_mode):
    """Ref layout:
      x_hbm   : (N, Hp_ph, S, S, Wp_ph, Cin_p)   phase-decomposed input (HBM)
      w_ref   : (KH, KW*Cin_p, TC)               KW-packed conv weights (VMEM)
      s_ref   : (1, TC)                          folded-BN scale
      b_ref   : (1, TC)                          folded-BN bias
      [r_ref] : identity: (1, TH, Wo, TC)        residual tile
                conv:     (1, TH, Wo, Cres_p)    shortcut-conv input tile
      [rw_ref]: (Cres_p, TC)                     1x1 shortcut weights (conv)
      [rs_ref]: (1, TC)                          shortcut BN scale    (conv)
      [rb_ref]: (1, TC)                          shortcut BN bias     (conv)
      o_ref   : (1, TH, Wo, TC)
      win_ref : (TH + (KH-1)//S, S, S, Wp_ph, Cin_p)  VMEM window scratch
      sem     : scalar DMA semaphore
    """
    if res_mode == "none":
        x_hbm, w_ref, s_ref, b_ref, o_ref, win_ref, sem = refs
        r_ref = rw_ref = rs_ref = rb_ref = None
    elif res_mode == "identity":
        x_hbm, w_ref, s_ref, b_ref, r_ref, o_ref, win_ref, sem = refs
        rw_ref = rs_ref = rb_ref = None
    else:  # "conv"
        (x_hbm, w_ref, s_ref, b_ref, r_ref, rw_ref, rs_ref, rb_ref,
         o_ref, win_ref, sem) = refs

    b = pl.program_id(0)
    r = pl.program_id(1)
    c = pl.program_id(2)

    rows = win_ref.shape[0]            # TH + (KH-1)//S
    cinp = win_ref.shape[-1]
    tc = o_ref.shape[-1]
    m = th * wo

    # Fetch only the halo'd row window this (batch, row-tile) group needs.
    # The Cout axis is the innermost ("arbitrary") grid dim, so c>0 steps
    # reuse the window fetched at c == 0 (scratch persists across steps).
    @pl.when(c == 0)
    def _fetch_window():
        cp = pltpu.make_async_copy(
            x_hbm.at[b, pl.ds(r * th, rows)], win_ref, sem)
        cp.start()
        cp.wait()

    # KH dots with K = KW*Cin_p; accumulator initialized by the first dot and
    # kept in f32.  All tap slices are static, unit-stride reads of the ref.
    # TODO(synk): when Wo is not a multiple of 8 (ResNet 28/14/7 stages) the
    #             (TH, Wo, C) -> (M, C) flatten pays a sublane relayout.
    acc = None
    for ih in range(kh):
        taps = []
        for iw in range(kw):
            sl = win_ref[ih // stride:ih // stride + th,
                         ih % stride, iw % stride,
                         iw // stride:iw // stride + wo, :]   # (TH, Wo, Cin_p)
            taps.append(sl.reshape(m, cinp))
        lhs = jnp.concatenate(taps, axis=-1)                   # (M, KW*Cin_p)
        d = jnp.dot(lhs, w_ref[ih], preferred_element_type=jnp.float32)
        acc = d if acc is None else acc + d

    # Folded BatchNorm affine on the f32 accumulator.
    out = acc * s_ref[...] + b_ref[...]

    # Fused shortcut branch (residual never round-trips HBM separately).
    if res_mode == "identity":
        out = out + r_ref[0].reshape(m, tc).astype(jnp.float32)
    elif res_mode == "conv":
        res = r_ref[0].reshape(m, r_ref.shape[-1])
        sc = jnp.dot(res, rw_ref[...], preferred_element_type=jnp.float32)
        out = out + (sc * rs_ref[...] + rb_ref[...])

    if relu:
        out = jnp.maximum(out, 0.0)

    # Lane-dense store: TC is a multiple of 128 (channels padded in wrapper).
    o_ref[0] = out.reshape(th, wo, tc).astype(o_ref.dtype)


# ----------------------------------------------------------------------------
# Wrapper: channel-pads to lane width, polyphase-decomposes the padded input,
# tiles (batch, output-row tiles, Cout tiles), calls the kernel.
# ----------------------------------------------------------------------------
def conv_bn_pallas(x, w, scale, bias, *, stride=1, padding=1, relu=False,
                   residual=None, residual_w=None, residual_scale=None,
                   residual_bias=None, out_channels_padded=False,
                   compute_dtype=jnp.float32):
    """Fused KxK conv + folded BN (+ fused shortcut branch) (+ ReLU), NHWC.

    x        : (N, H, W, Cx) with Cx >= w.shape[2]; channels beyond the true
               Cin must be zero padding (lane-dense handoff between convs).
    w        : (KH, KW, Cin, Cout)
    residual : (N, Ho, Wo, Cres*) added before the final ReLU.  If residual_w
               is given it is the (already stride-subsampled) input of a fused
               1x1 shortcut conv + folded BN; otherwise an identity residual.
    Returns (N, Ho, Wo, Cout) f32, or (N, Ho, Wo, Cout_pad) if
    out_channels_padded (keeps the conv1 -> conv2 handoff lane-dense).
    """
    n, h, w_in, cx = x.shape
    kh, kw, cin, cout = w.shape
    assert cx >= cin, (cx, cin)
    cinp = _round_up(cx, LANE)
    coutp = _round_up(cout, LANE)

    ho = (h + 2 * padding - kh) // stride + 1
    wo = (w_in + 2 * padding - kw) // stride + 1

    th = _pick_row_tile(ho, wo)
    tc = 256 if coutp % 256 == 0 else 128
    n_rt, n_ct = ho // th, coutp // tc

    # Polyphase (space-to-depth) layout of the spatially + channel padded
    # input: absolute row = j*S + a, absolute col = k*S + b  ->
    # x_ph[n, j, a, b, k, c].  Every in-kernel tap slice (including stride>1)
    # becomes a unit-stride static slice.
    qh, qw = (kh - 1) // stride, (kw - 1) // stride
    hp_ph, wp_ph = ho + qh, wo + qw
    pad_b = stride * hp_ph - h - padding
    pad_r = stride * wp_ph - w_in - padding
    assert pad_b >= 0 and pad_r >= 0, (pad_b, pad_r)
    xp = jnp.pad(x, ((0, 0), (padding, pad_b), (padding, pad_r),
                     (0, cinp - cx))).astype(compute_dtype)
    x_ph = xp.reshape(n, hp_ph, stride, wp_ph, stride, cinp)
    x_ph = x_ph.transpose(0, 1, 2, 4, 3, 5)       # (N, Hp_ph, S, S, Wp_ph, Cp)

    # KW taps packed into the contraction dim (lane-aligned: Cin_p % 128 == 0).
    wf = jnp.pad(w, ((0, 0), (0, 0), (0, cinp - cin), (0, coutp - cout)))
    wf = wf.reshape(kh, kw * cinp, coutp).astype(compute_dtype)
    s2 = jnp.pad(scale.reshape(1, cout),
                 ((0, 0), (0, coutp - cout))).astype(jnp.float32)
    b2 = jnp.pad(bias.reshape(1, cout),
                 ((0, 0), (0, coutp - cout))).astype(jnp.float32)

    in_specs = [
        pl.BlockSpec(memory_space=pl.ANY),                      # x_ph in HBM
        pl.BlockSpec((kh, kw * cinp, tc), lambda b, r, c: (0, 0, c)),
        pl.BlockSpec((1, tc), lambda b, r, c: (0, c)),
        pl.BlockSpec((1, tc), lambda b, r, c: (0, c)),
    ]
    args = [x_ph, wf, s2, b2]

    if residual is None:
        res_mode = "none"
    elif residual_w is None:
        res_mode = "identity"
    else:
        res_mode = "conv"

    cd_bytes = jnp.dtype(compute_dtype).itemsize
    flops = 2 * n * ho * wo * kh * kw * cinp * coutp
    bytes_accessed = (n * n_rt * (th + qh) * stride * stride * wp_ph * cinp
                      * cd_bytes
                      + wf.size * cd_bytes
                      + n * ho * wo * coutp * 4
                      + 2 * 4 * coutp)

    if res_mode == "identity":
        crx = residual.shape[-1]
        assert crx <= coutp, (crx, coutp)
        res = jnp.pad(residual, ((0, 0), (0, 0), (0, 0), (0, coutp - crx)))
        res = res.astype(jnp.float32)          # keep identity add in f32
        in_specs.append(
            pl.BlockSpec((1, th, wo, tc), lambda b, r, c: (b, r, 0, c)))
        args.append(res)
        bytes_accessed += res.size * 4
    elif res_mode == "conv":
        cres = residual_w.shape[2]
        crx = residual.shape[-1]
        cresp = _round_up(crx, LANE)
        res = jnp.pad(residual, ((0, 0), (0, 0), (0, 0), (0, cresp - crx)))
        res = res.astype(compute_dtype)
        rw = jnp.pad(residual_w.reshape(cres, cout),
                     ((0, cresp - cres), (0, coutp - cout))).astype(compute_dtype)
        rs = jnp.pad(residual_scale.reshape(1, cout),
                     ((0, 0), (0, coutp - cout))).astype(jnp.float32)
        rb = jnp.pad(residual_bias.reshape(1, cout),
                     ((0, 0), (0, coutp - cout))).astype(jnp.float32)
        in_specs.extend([
            pl.BlockSpec((1, th, wo, cresp), lambda b, r, c: (b, r, 0, 0)),
            pl.BlockSpec((cresp, tc), lambda b, r, c: (0, c)),
            pl.BlockSpec((1, tc), lambda b, r, c: (0, c)),
            pl.BlockSpec((1, tc), lambda b, r, c: (0, c)),
        ])
        args.extend([res, rw, rs, rb])
        flops += 2 * n * ho * wo * cresp * coutp
        bytes_accessed += (res.size * cd_bytes + rw.size * cd_bytes
                           + 2 * 4 * coutp)

    kernel = functools.partial(_conv_bn_kernel, kh=kh, kw=kw, stride=stride,
                               th=th, wo=wo, relu=relu, res_mode=res_mode)

    out = pl.pallas_call(
        kernel,
        out_shape=jax.ShapeDtypeStruct((n, ho, wo, coutp), jnp.float32),
        grid=(n, n_rt, n_ct),
        in_specs=in_specs,
        out_specs=pl.BlockSpec((1, th, wo, tc), lambda b, r, c: (b, r, 0, c)),
        scratch_shapes=[
            pltpu.VMEM((th + qh, stride, stride, wp_ph, cinp), compute_dtype),
            pltpu.SemaphoreType.DMA(()),
        ],
        compiler_params=pltpu.CompilerParams(
            dimension_semantics=("parallel", "parallel", "arbitrary")),
        cost_estimate=pl.CostEstimate(flops=flops, transcendentals=0,
                                      bytes_accessed=int(bytes_accessed)),
    )(*args)

    if out_channels_padded:
        return out
    return out[..., :cout]


# ----------------------------------------------------------------------------
# BasicBlock forward (NCHW in / NCHW out, matching the PyTorch module).
# Two pallas_calls total: conv1+bn1+relu, then conv2+bn2+(fused shortcut)+relu.
# ----------------------------------------------------------------------------
def basic_block_forward(x_nchw, params, stride=1, compute_dtype=jnp.float32):
    x = jnp.transpose(x_nchw, (0, 2, 3, 1))   # NCHW -> NHWC

    # out = relu(bn1(conv1(x))); output stays channel-padded (lane-dense) so
    # conv2 consumes it directly without an unpad/repad HBM round trip.
    out = conv_bn_pallas(x, params["w1"], params["s1"], params["b1"],
                         stride=stride, padding=1, relu=True,
                         out_channels_padded=True, compute_dtype=compute_dtype)

    # Shortcut input at output resolution (1x1 stride-s conv == subsample + 1x1).
    x_s = x if stride == 1 else x[:, ::stride, ::stride, :]

    # out = relu(bn2(conv2(out)) + shortcut(x)) — shortcut fused in-kernel.
    if "ws" in params:
        out = conv_bn_pallas(out, params["w2"], params["s2"], params["b2"],
                             stride=1, padding=1, relu=True,
                             residual=x_s, residual_w=params["ws"],
                             residual_scale=params["ss"],
                             residual_bias=params["bs"],
                             compute_dtype=compute_dtype)
    else:
        out = conv_bn_pallas(out, params["w2"], params["s2"], params["b2"],
                             stride=1, padding=1, relu=True, residual=x_s,
                             compute_dtype=compute_dtype)

    return jnp.transpose(out, (0, 3, 1, 2))   # NHWC -> NCHW


# ----------------------------------------------------------------------------
# Deterministic parameter construction (PyTorch shapes, BN folded).
# ----------------------------------------------------------------------------
def make_params(key, in_planes, planes, stride, eps=1e-5):
    ks = jax.random.split(key, 9)

    def bn_fold(kg, kb, c):
        gamma = 1.0 + 0.1 * jax.random.normal(kg, (c,), jnp.float32)
        beta = 0.1 * jax.random.normal(kb, (c,), jnp.float32)
        running_mean = jnp.zeros((c,), jnp.float32)
        running_var = jnp.ones((c,), jnp.float32)
        scale = gamma / jnp.sqrt(running_var + eps)
        bias = beta - running_mean * scale
        return scale, bias

    params = {}
    params["w1"] = 0.1 * jax.random.normal(ks[0], (3, 3, in_planes, planes),
                                           jnp.float32)
    params["s1"], params["b1"] = bn_fold(ks[1], ks[2], planes)
    params["w2"] = 0.1 * jax.random.normal(ks[3], (3, 3, planes, planes),
                                           jnp.float32)
    params["s2"], params["b2"] = bn_fold(ks[4], ks[5], planes)
    if stride != 1 or in_planes != planes:
        params["ws"] = 0.1 * jax.random.normal(
            ks[6], (1, 1, in_planes, planes), jnp.float32)
        params["ss"], params["bs"] = bn_fold(ks[7], ks[8], planes)
    return params


# ----------------------------------------------------------------------------
# Pure-JAX reference (lax.conv) for correctness checking.
# ----------------------------------------------------------------------------
def ref_forward(x_nchw, params, stride=1):
    x = jnp.transpose(x_nchw, (0, 2, 3, 1))

    def conv(a, wgt, s, p):
        return jax.lax.conv_general_dilated(
            a, wgt, (s, s), [(p, p), (p, p)],
            dimension_numbers=("NHWC", "HWIO", "NHWC"))

    out = conv(x, params["w1"], stride, 1) * params["s1"] + params["b1"]
    out = jnp.maximum(out, 0.0)
    out = conv(out, params["w2"], 1, 1) * params["s2"] + params["b2"]
    if "ws" in params:
        sc = conv(x, params["ws"], stride, 0) * params["ss"] + params["bs"]
    else:
        sc = x if stride == 1 else x[:, ::stride, ::stride, :]
    out = jnp.maximum(out + sc, 0.0)
    return jnp.transpose(out, (0, 3, 1, 2))


if __name__ == "__main__":
    key = jax.random.PRNGKey(0)

    # (name, N, in_planes, planes, H, W, stride)
    #  - conv-shortcut path (in_planes != planes)          stride 1
    #  - downsampling path (stride 2, 1x1 stride-2 shortcut)
    #  - identity-shortcut path (in_planes == planes)      stride 1
    configs = [
        ("convshort_s1", 2, 4, 8, 16, 16, 1),
        ("downsample_s2", 2, 4, 8, 16, 16, 2),
        ("identity_s1", 2, 8, 8, 16, 16, 1),
    ]

    for name, n, in_planes, planes, h, w_, stride in configs:
        kx, kp, key = jax.random.split(key, 3)
        x = jax.random.normal(kx, (n, in_planes, h, w_), jnp.float32)
        params = make_params(kp, in_planes, planes, stride)

        fwd = jax.jit(functools.partial(basic_block_forward, stride=stride))
        out = jax.block_until_ready(fwd(x, params))
        ref = ref_forward(x, params, stride=stride)

        ho = (h + 2 - 3) // stride + 1
        assert out.shape == (n, planes, ho, ho), (name, out.shape)
        err = float(jnp.max(jnp.abs(out - ref)))
        # Tolerance accounts for default-precision f32 MXU matmuls (bf16
        # passes) on both the Pallas kernel and the XLA conv reference.
        assert jnp.allclose(out, ref, atol=3e-2, rtol=3e-2), (name, err)

    print("KERNEL_OK")
</pallas_src>

<mosaic_0001>
module attributes {stable_mosaic.version = 11 : i64} {
  func.func @_conv_bn_kernel(%arg0: i32, %arg1: i32, %arg2: i32, %arg3: memref<2x18x1x1x18x128xf32, #tpu.memory_space<any>>, %arg4: memref<3x384x128xf32, #tpu.memory_space<vmem>>, %arg5: memref<1x128xf32, #tpu.memory_space<vmem>>, %arg6: memref<1x128xf32, #tpu.memory_space<vmem>>, %arg7: memref<1x8x16x128xf32, #tpu.memory_space<vmem>>, %arg8: memref<10x1x1x18x128xf32, #tpu.memory_space<vmem>>, %arg9: memref<!tpu.dma_semaphore, #tpu.memory_space<semaphore_mem>>) attributes {dimension_semantics = [#tpu.dimension_semantics<parallel>, #tpu.dimension_semantics<parallel>, #tpu.dimension_semantics<arbitrary>], iteration_bounds = array<i64: 2, 2, 1>, scalar_prefetch = 0 : i64, scratch_operands = 2 : i64, tpu.core_type = #tpu.core_type<tc>, window_params = [{}, {transform_indices = @transform_1, window_bounds = array<i64: 3, 384, 128>}, {transform_indices = @transform_2, window_bounds = array<i64: 1, 128>}, {transform_indices = @transform_3, window_bounds = array<i64: 1, 128>}, {transform_indices = @transform_4, window_bounds = array<i64: 1, 8, 16, 128>}]} {
    %c0_i32 = arith.constant 0 : i32
    %0 = arith.cmpi eq, %arg2, %c0_i32 : i32
    %1 = arith.extui %0 : i1 to i32
    %c0_i32_0 = arith.constant 0 : i32
    %2 = arith.cmpi ne, %1, %c0_i32_0 : i32
    scf.if %2 {
      %c8_i32 = arith.constant 8 : i32
      %56 = arith.muli %arg1, %c8_i32 : i32
      %c0_i32_63 = arith.constant 0 : i32
      %c0_i32_64 = arith.constant 0 : i32
      %c0_i32_65 = arith.constant 0 : i32
      %c0_i32_66 = arith.constant 0 : i32
      %57 = tpu.memref_slice %arg3[%arg0, %56, %c0_i32_63, %c0_i32_64, %c0_i32_65, %c0_i32_66] : memref<2x18x1x1x18x128xf32, #tpu.memory_space<any>> -> memref<1x10x1x1x18x128xf32, #tpu.memory_space<any>>
      %58 = tpu.memref_squeeze %57 : memref<1x10x1x1x18x128xf32, #tpu.memory_space<any>> -> memref<10x1x1x18x128xf32, #tpu.memory_space<any>>
      tpu.enqueue_dma source(%58 : memref<10x1x1x18x128xf32, #tpu.memory_space<any>>) target(%arg8 : memref<10x1x1x18x128xf32, #tpu.memory_space<vmem>>) target_semaphore(%arg9 : memref<!tpu.dma_semaphore, #tpu.memory_space<semaphore_mem>>)
      %c0_i32_67 = arith.constant 0 : i32
      %c0_i32_68 = arith.constant 0 : i32
      %c0_i32_69 = arith.constant 0 : i32
      %c0_i32_70 = arith.constant 0 : i32
      %59 = tpu.memref_slice %arg3[%arg0, %56, %c0_i32_67, %c0_i32_68, %c0_i32_69, %c0_i32_70] : memref<2x18x1x1x18x128xf32, #tpu.memory_space<any>> -> memref<1x10x1x1x18x128xf32, #tpu.memory_space<any>>
      %60 = tpu.memref_squeeze %59 : memref<1x10x1x1x18x128xf32, #tpu.memory_space<any>> -> memref<10x1x1x18x128xf32, #tpu.memory_space<any>>
      tpu.wait_dma2 semaphore(%arg9 : memref<!tpu.dma_semaphore, #tpu.memory_space<semaphore_mem>>) src(%60 : memref<10x1x1x18x128xf32, #tpu.memory_space<any>>) dst(%arg8 : memref<10x1x1x18x128xf32, #tpu.memory_space<vmem>>)
    } else {
    }
    %c0 = arith.constant 0 : index
    %c0_1 = arith.constant 0 : index
    %c0_2 = arith.constant 0 : index
    %c0_3 = arith.constant 0 : index
    %c0_4 = arith.constant 0 : index
    %3 = vector.load %arg8[%c0, %c0_1, %c0_2, %c0_3, %c0_4] : memref<10x1x1x18x128xf32, #tpu.memory_space<vmem>>, vector<8x1x1x16x128xf32>
    %4 = vector.shape_cast %3 : vector<8x1x1x16x128xf32> to vector<8x16x128xf32>
    %5 = vector.shape_cast %4 : vector<8x16x128xf32> to vector<128x128xf32>
    %c0_5 = arith.constant 0 : index
    %c0_6 = arith.constant 0 : index
    %c0_7 = arith.constant 0 : index
    %c1 = arith.constant 1 : index
    %c0_8 = arith.constant 0 : index
    %6 = vector.load %arg8[%c0_5, %c0_6, %c0_7, %c1, %c0_8] : memref<10x1x1x18x128xf32, #tpu.memory_space<vmem>>, vector<8x1x1x16x128xf32>
    %7 = vector.shape_cast %6 : vector<8x1x1x16x128xf32> to vector<8x16x128xf32>
    %8 = vector.shape_cast %7 : vector<8x16x128xf32> to vector<128x128xf32>
    %c0_9 = arith.constant 0 : index
    %c0_10 = arith.constant 0 : index
    %c0_11 = arith.constant 0 : index
    %c2 = arith.constant 2 : index
    %c0_12 = arith.constant 0 : index
    %9 = vector.load %arg8[%c0_9, %c0_10, %c0_11, %c2, %c0_12] : memref<10x1x1x18x128xf32, #tpu.memory_space<vmem>>, vector<8x1x1x16x128xf32>
    %10 = vector.shape_cast %9 : vector<8x1x1x16x128xf32> to vector<8x16x128xf32>
    %11 = vector.shape_cast %10 : vector<8x16x128xf32> to vector<128x128xf32>
    %12 = tpu.concatenate %5, %8, %11 in 1 : vector<128x128xf32>, vector<128x128xf32>, vector<128x128xf32> -> vector<128x384xf32>
    %c0_13 = arith.constant 0 : index
    %c0_14 = arith.constant 0 : index
    %c0_15 = arith.constant 0 : index
    %13 = vector.load %arg4[%c0_13, %c0_14, %c0_15] : memref<3x384x128xf32, #tpu.memory_space<vmem>>, vector<1x384x128xf32>
    %14 = vector.shape_cast %13 : vector<1x384x128xf32> to vector<384x128xf32>
    %cst = arith.constant dense<0.000000e+00> : vector<128x128xf32>
    %15 = tpu.matmul %12, %14, %cst {dimension_numbers = #tpu.dot_dimension_numbers<[1], [0], [0], [1], [0, 0, 1, 1], [], []>} : vector<128x384xf32>, vector<384x128xf32>, vector<128x128xf32> -> vector<128x128xf32>
    %c1_16 = arith.constant 1 : index
    %c0_17 = arith.constant 0 : index
    %c0_18 = arith.constant 0 : index
    %c0_19 = arith.constant 0 : index
    %c0_20 = arith.constant 0 : index
    %16 = vector.load %arg8[%c1_16, %c0_17, %c0_18, %c0_19, %c0_20] : memref<10x1x1x18x128xf32, #tpu.memory_space<vmem>>, vector<8x1x1x16x128xf32>
    %17 = vector.shape_cast %16 : vector<8x1x1x16x128xf32> to vector<8x16x128xf32>
    %18 = vector.shape_cast %17 : vector<8x16x128xf32> to vector<128x128xf32>
    %c1_21 = arith.constant 1 : index
    %c0_22 = arith.constant 0 : index
    %c0_23 = arith.constant 0 : index
    %c1_24 = arith.constant 1 : index
    %c0_25 = arith.constant 0 : index
    %19 = vector.load %arg8[%c1_21, %c0_22, %c0_23, %c1_24, %c0_25] : memref<10x1x1x18x128xf32, #tpu.memory_space<vmem>>, vector<8x1x1x16x128xf32>
    %20 = vector.shape_cast %19 : vector<8x1x1x16x128xf32> to vector<8x16x128xf32>
    %21 = vector.shape_cast %20 : vector<8x16x128xf32> to vector<128x128xf32>
    %c1_26 = arith.constant 1 : index
    %c0_27 = arith.constant 0 : index
    %c0_28 = arith.constant 0 : index
    %c2_29 = arith.constant 2 : index
    %c0_30 = arith.constant 0 : index
    %22 = vector.load %arg8[%c1_26, %c0_27, %c0_28, %c2_29, %c0_30] : memref<10x1x1x18x128xf32, #tpu.memory_space<vmem>>, vector<8x1x1x16x128xf32>
    %23 = vector.shape_cast %22 : vector<8x1x1x16x128xf32> to vector<8x16x128xf32>
    %24 = vector.shape_cast %23 : vector<8x16x128xf32> to vector<128x128xf32>
    %25 = tpu.concatenate %18, %21, %24 in 1 : vector<128x128xf32>, vector<128x128xf32>, vector<128x128xf32> -> vector<128x384xf32>
    %c1_31 = arith.constant 1 : index
    %c0_32 = arith.constant 0 : index
    %c0_33 = arith.constant 0 : index
    %26 = vector.load %arg4[%c1_31, %c0_32, %c0_33] : memref<3x384x128xf32, #tpu.memory_space<vmem>>, vector<1x384x128xf32>
    %27 = vector.shape_cast %26 : vector<1x384x128xf32> to vector<384x128xf32>
    %cst_34 = arith.constant dense<0.000000e+00> : vector<128x128xf32>
    %28 = tpu.matmul %25, %27, %cst_34 {dimension_numbers = #tpu.dot_dimension_numbers<[1], [0], [0], [1], [0, 0, 1, 1], [], []>} : vector<128x384xf32>, vector<384x128xf32>, vector<128x128xf32> -> vector<128x128xf32>
    %29 = arith.addf %15, %28 : vector<128x128xf32>
    %c2_35 = arith.constant 2 : index
    %c0_36 = arith.constant 0 : index
    %c0_37 = arith.constant 0 : index
    %c0_38 = arith.constant 0 : index
    %c0_39 = arith.constant 0 : index
    %30 = vector.load %arg8[%c2_35, %c0_36, %c0_37, %c0_38, %c0_39] : memref<10x1x1x18x128xf32, #tpu.memory_space<vmem>>, vector<8x1x1x16x128xf32>
    %31 = vector.shape_cast %30 : vector<8x1x1x16x128xf32> to vector<8x16x128xf32>
    %32 = vector.shape_cast %31 : vector<8x16x128xf32> to vector<128x128xf32>
    %c2_40 = arith.constant 2 : index
    %c0_41 = arith.constant 0 : index
    %c0_42 = arith.constant 0 : index
    %c1_43 = arith.constant 1 : index
    %c0_44 = arith.constant 0 : index
    %33 = vector.load %arg8[%c2_40, %c0_41, %c0_42, %c1_43, %c0_44] : memref<10x1x1x18x128xf32, #tpu.memory_space<vmem>>, vector<8x1x1x16x128xf32>
    %34 = vector.shape_cast %33 : vector<8x1x1x16x128xf32> to vector<8x16x128xf32>
    %35 = vector.shape_cast %34 : vector<8x16x128xf32> to vector<128x128xf32>
    %c2_45 = arith.constant 2 : index
    %c0_46 = arith.constant 0 : index
    %c0_47 = arith.constant 0 : index
    %c2_48 = arith.constant 2 : index
    %c0_49 = arith.constant 0 : index
    %36 = vector.load %arg8[%c2_45, %c0_46, %c0_47, %c2_48, %c0_49] : memref<10x1x1x18x128xf32, #tpu.memory_space<vmem>>, vector<8x1x1x16x128xf32>
    %37 = vector.shape_cast %36 : vector<8x1x1x16x128xf32> to vector<8x16x128xf32>
    %38 = vector.shape_cast %37 : vector<8x16x128xf32> to vector<128x128xf32>
    %39 = tpu.concatenate %32, %35, %38 in 1 : vector<128x128xf32>, vector<128x128xf32>, vector<128x128xf32> -> vector<128x384xf32>
    %c2_50 = arith.constant 2 : index
    %c0_51 = arith.constant 0 : index
    %c0_52 = arith.constant 0 : index
    %40 = vector.load %arg4[%c2_50, %c0_51, %c0_52] : memref<3x384x128xf32, #tpu.memory_space<vmem>>, vector<1x384x128xf32>
    %41 = vector.shape_cast %40 : vector<1x384x128xf32> to vector<384x128xf32>
    %cst_53 = arith.constant dense<0.000000e+00> : vector<128x128xf32>
    %42 = tpu.matmul %39, %41, %cst_53 {dimension_numbers = #tpu.dot_dimension_numbers<[1], [0], [0], [1], [0, 0, 1, 1], [], []>} : vector<128x384xf32>, vector<384x128xf32>, vector<128x128xf32> -> vector<128x128xf32>
    %43 = arith.addf %29, %42 : vector<128x128xf32>
    %c0_54 = arith.constant 0 : index
    %c0_55 = arith.constant 0 : index
    %44 = vector.load %arg5[%c0_54, %c0_55] : memref<1x128xf32, #tpu.memory_space<vmem>>, vector<1x128xf32>
    %45 = vector.broadcast %44 : vector<1x128xf32> to vector<128x128xf32>
    %46 = arith.mulf %43, %45 : vector<128x128xf32>
    %c0_56 = arith.constant 0 : index
    %c0_57 = arith.constant 0 : index
    %47 = vector.load %arg6[%c0_56, %c0_57] : memref<1x128xf32, #tpu.memory_space<vmem>>, vector<1x128xf32>
    %48 = vector.broadcast %47 : vector<1x128xf32> to vector<128x128xf32>
    %49 = arith.addf %46, %48 : vector<128x128xf32>
    %cst_58 = arith.constant 0.000000e+00 : f32
    %50 = vector.broadcast %cst_58 : f32 to vector<128x128xf32>
    %51 = arith.maximumf %49, %50 : vector<128x128xf32>
    %52 = vector.shape_cast %51 : vector<128x128xf32> to vector<8x16x128xf32>
    %c0_59 = arith.constant 0 : index
    %c0_60 = arith.constant 0 : index
    %c0_61 = arith.constant 0 : index
    %c0_62 = arith.constant 0 : index
    %53 = vector.load %arg7[%c0_59, %c0_60, %c0_61, %c0_62] : memref<1x8x16x128xf32, #tpu.memory_space<vmem>>, vector<1x8x16x128xf32>
    %54 = vector.shape_cast %53 : vector<1x8x16x128xf32> to vector<8x16x128xf32>
    %55 = vector.shape_cast %52 : vector<8x16x128xf32> to vector<1x8x16x128xf32>
    tpu.vector_store %arg7[%c0_59, %c0_60, %c0_61, %c0_62], %55 {strides = array<i32>} : memref<1x8x16x128xf32, #tpu.memory_space<vmem>>, vector<1x8x16x128xf32>,
    return
  }
  func.func @transform_1(%arg0: i32, %arg1: i32, %arg2: i32) -> (i32, i32, i32) {
    %c0_i32 = arith.constant 0 : i32
    %c0_i32_0 = arith.constant 0 : i32
    %c0_i32_1 = arith.constant 0 : i32
    return %c0_i32, %c0_i32_0, %arg2 : i32, i32, i32
  }
  func.func @transform_2(%arg0: i32, %arg1: i32, %arg2: i32) -> (i32, i32) {
    %c0_i32 = arith.constant 0 : i32
    %c0_i32_0 = arith.constant 0 : i32
    return %c0_i32, %arg2 : i32, i32
  }
  func.func @transform_3(%arg0: i32, %arg1: i32, %arg2: i32) -> (i32, i32) {
    %c0_i32 = arith.constant 0 : i32
    %c0_i32_0 = arith.constant 0 : i32
    return %c0_i32, %arg2 : i32, i32
  }
  func.func @transform_4(%arg0: i32, %arg1: i32, %arg2: i32) -> (i32, i32, i32, i32) {
    %c0_i32 = arith.constant 0 : i32
    %c0_i32_0 = arith.constant 0 : i32
    return %arg0, %arg1, %c0_i32, %arg2 : i32, i32, i32, i32
  }
}

module attributes {stable_mosaic.version = 11 : i64} {
  func.func @_conv_bn_kernel(%arg0: i32, %arg1: i32, %arg2: i32, %arg3: memref<2x18x1x1x18x128xf32, #tpu.memory_space<any>>, %arg4: memref<3x384x128xf32, #tpu.memory_space<vmem>>, %arg5: memref<1x128xf32, #tpu.memory_space<vmem>>, %arg6: memref<1x128xf32, #tpu.memory_space<vmem>>, %arg7: memref<1x8x16x128xf32, #tpu.memory_space<vmem>>, %arg8: memref<128x128xf32, #tpu.memory_space<vmem>>, %arg9: memref<1x128xf32, #tpu.memory_space<vmem>>, %arg10: memref<1x128xf32, #tpu.memory_space<vmem>>, %arg11: memref<1x8x16x128xf32, #tpu.memory_space<vmem>>, %arg12: memref<10x1x1x18x128xf32, #tpu.memory_space<vmem>>, %arg13: memref<!tpu.dma_semaphore, #tpu.memory_space<semaphore_mem>>) attributes {dimension_semantics = [#tpu.dimension_semantics<parallel>, #tpu.dimension_semantics<parallel>, #tpu.dimension_semantics<arbitrary>], iteration_bounds = array<i64: 2, 2, 1>, scalar_prefetch = 0 : i64, scratch_operands = 2 : i64, tpu.core_type = #tpu.core_type<tc>, window_params = [{}, {transform_indices = @transform_1, window_bounds = array<i64: 3, 384, 128>}, {transform_indices = @transform_2, window_bounds = array<i64: 1, 128>}, {transform_indices = @transform_3, window_bounds = array<i64: 1, 128>}, {transform_indices = @transform_4, window_bounds = array<i64: 1, 8, 16, 128>}, {transform_indices = @transform_5, window_bounds = array<i64: 128, 128>}, {transform_indices = @transform_6, window_bounds = array<i64: 1, 128>}, {transform_indices = @transform_7, window_bounds = array<i64: 1, 128>}, {transform_indices = @transform_8, window_bounds = array<i64: 1, 8, 16, 128>}]} {
    %c0_i32 = arith.constant 0 : i32
    %0 = arith.cmpi eq, %arg2, %c0_i32 : i32
    %1 = arith.extui %0 : i1 to i32
    %c0_i32_0 = arith.constant 0 : i32
    %2 = arith.cmpi ne, %1, %c0_i32_0 : i32
    scf.if %2 {
      %c8_i32 = arith.constant 8 : i32
      %68 = arith.muli %arg1, %c8_i32 : i32
      %c0_i32_74 = arith.constant 0 : i32
      %c0_i32_75 = arith.constant 0 : i32
      %c0_i32_76 = arith.constant 0 : i32
      %c0_i32_77 = arith.constant 0 : i32
      %69 = tpu.memref_slice %arg3[%arg0, %68, %c0_i32_74, %c0_i32_75, %c0_i32_76, %c0_i32_77] : memref<2x18x1x1x18x128xf32, #tpu.memory_space<any>> -> memref<1x10x1x1x18x128xf32, #tpu.memory_space<any>>
      %70 = tpu.memref_squeeze %69 : memref<1x10x1x1x18x128xf32, #tpu.memory_space<any>> -> memref<10x1x1x18x128xf32, #tpu.memory_space<any>>
      tpu.enqueue_dma source(%70 : memref<10x1x1x18x128xf32, #tpu.memory_space<any>>) target(%arg12 : memref<10x1x1x18x128xf32, #tpu.memory_space<vmem>>) target_semaphore(%arg13 : memref<!tpu.dma_semaphore, #tpu.memory_space<semaphore_mem>>)
      %c0_i32_78 = arith.constant 0 : i32
      %c0_i32_79 = arith.constant 0 : i32
      %c0_i32_80 = arith.constant 0 : i32
      %c0_i32_81 = arith.constant 0 : i32
      %71 = tpu.memref_slice %arg3[%arg0, %68, %c0_i32_78, %c0_i32_79, %c0_i32_80, %c0_i32_81] : memref<2x18x1x1x18x128xf32, #tpu.memory_space<any>> -> memref<1x10x1x1x18x128xf32, #tpu.memory_space<any>>
      %72 = tpu.memref_squeeze %71 : memref<1x10x1x1x18x128xf32, #tpu.memory_space<any>> -> memref<10x1x1x18x128xf32, #tpu.memory_space<any>>
      tpu.wait_dma2 semaphore(%arg13 : memref<!tpu.dma_semaphore, #tpu.memory_space<semaphore_mem>>) src(%72 : memref<10x1x1x18x128xf32, #tpu.memory_space<any>>) dst(%arg12 : memref<10x1x1x18x128xf32, #tpu.memory_space<vmem>>)
    } else {
    }
    %c0 = arith.constant 0 : index
    %c0_1 = arith.constant 0 : index
    %c0_2 = arith.constant 0 : index
    %c0_3 = arith.constant 0 : index
    %c0_4 = arith.constant 0 : index
    %3 = vector.load %arg12[%c0, %c0_1, %c0_2, %c0_3, %c0_4] : memref<10x1x1x18x128xf32, #tpu.memory_space<vmem>>, vector<8x1x1x16x128xf32>
    %4 = vector.shape_cast %3 : vector<8x1x1x16x128xf32> to vector<8x16x128xf32>
    %5 = vector.shape_cast %4 : vector<8x16x128xf32> to vector<128x128xf32>
    %c0_5 = arith.constant 0 : index
    %c0_6 = arith.constant 0 : index
    %c0_7 = arith.constant 0 : index
    %c1 = arith.constant 1 : index
    %c0_8 = arith.constant 0 : index
    %6 = vector.load %arg12[%c0_5, %c0_6, %c0_7, %c1, %c0_8] : memref<10x1x1x18x128xf32, #tpu.memory_space<vmem>>, vector<8x1x1x16x128xf32>
    %7 = vector.shape_cast %6 : vector<8x1x1x16x128xf32> to vector<8x16x128xf32>
    %8 = vector.shape_cast %7 : vector<8x16x128xf32> to vector<128x128xf32>
    %c0_9 = arith.constant 0 : index
    %c0_10 = arith.constant 0 : index
    %c0_11 = arith.constant 0 : index
    %c2 = arith.constant 2 : index
    %c0_12 = arith.constant 0 : index
    %9 = vector.load %arg12[%c0_9, %c0_10, %c0_11, %c2, %c0_12] : memref<10x1x1x18x128xf32, #tpu.memory_space<vmem>>, vector<8x1x1x16x128xf32>
    %10 = vector.shape_cast %9 : vector<8x1x1x16x128xf32> to vector<8x16x128xf32>
    %11 = vector.shape_cast %10 : vector<8x16x128xf32> to vector<128x128xf32>
    %12 = tpu.concatenate %5, %8, %11 in 1 : vector<128x128xf32>, vector<128x128xf32>, vector<128x128xf32> -> vector<128x384xf32>
    %c0_13 = arith.constant 0 : index
    %c0_14 = arith.constant 0 : index
    %c0_15 = arith.constant 0 : index
    %13 = vector.load %arg4[%c0_13, %c0_14, %c0_15] : memref<3x384x128xf32, #tpu.memory_space<vmem>>, vector<1x384x128xf32>
    %14 = vector.shape_cast %13 : vector<1x384x128xf32> to vector<384x128xf32>
    %cst = arith.constant dense<0.000000e+00> : vector<128x128xf32>
    %15 = tpu.matmul %12, %14, %cst {dimension_numbers = #tpu.dot_dimension_numbers<[1], [0], [0], [1], [0, 0, 1, 1], [], []>} : vector<128x384xf32>, vector<384x128xf32>, vector<128x128xf32> -> vector<128x128xf32>
    %c1_16 = arith.constant 1 : index
    %c0_17 = arith.constant 0 : index
    %c0_18 = arith.constant 0 : index
    %c0_19 = arith.constant 0 : index
    %c0_20 = arith.constant 0 : index
    %16 = vector.load %arg12[%c1_16, %c0_17, %c0_18, %c0_19, %c0_20] : memref<10x1x1x18x128xf32, #tpu.memory_space<vmem>>, vector<8x1x1x16x128xf32>
    %17 = vector.shape_cast %16 : vector<8x1x1x16x128xf32> to vector<8x16x128xf32>
    %18 = vector.shape_cast %17 : vector<8x16x128xf32> to vector<128x128xf32>
    %c1_21 = arith.constant 1 : index
    %c0_22 = arith.constant 0 : index
    %c0_23 = arith.constant 0 : index
    %c1_24 = arith.constant 1 : index
    %c0_25 = arith.constant 0 : index
    %19 = vector.load %arg12[%c1_21, %c0_22, %c0_23, %c1_24, %c0_25] : memref<10x1x1x18x128xf32, #tpu.memory_space<vmem>>, vector<8x1x1x16x128xf32>
    %20 = vector.shape_cast %19 : vector<8x1x1x16x128xf32> to vector<8x16x128xf32>
    %21 = vector.shape_cast %20 : vector<8x16x128xf32> to vector<128x128xf32>
    %c1_26 = arith.constant 1 : index
    %c0_27 = arith.constant 0 : index
    %c0_28 = arith.constant 0 : index
    %c2_29 = arith.constant 2 : index
    %c0_30 = arith.constant 0 : index
    %22 = vector.load %arg12[%c1_26, %c0_27, %c0_28, %c2_29, %c0_30] : memref<10x1x1x18x128xf32, #tpu.memory_space<vmem>>, vector<8x1x1x16x128xf32>
    %23 = vector.shape_cast %22 : vector<8x1x1x16x128xf32> to vector<8x16x128xf32>
    %24 = vector.shape_cast %23 : vector<8x16x128xf32> to vector<128x128xf32>
    %25 = tpu.concatenate %18, %21, %24 in 1 : vector<128x128xf32>, vector<128x128xf32>, vector<128x128xf32> -> vector<128x384xf32>
    %c1_31 = arith.constant 1 : index
    %c0_32 = arith.constant 0 : index
    %c0_33 = arith.constant 0 : index
    %26 = vector.load %arg4[%c1_31, %c0_32, %c0_33] : memref<3x384x128xf32, #tpu.memory_space<vmem>>, vector<1x384x128xf32>
    %27 = vector.shape_cast %26 : vector<1x384x128xf32> to vector<384x128xf32>
    %cst_34 = arith.constant dense<0.000000e+00> : vector<128x128xf32>
    %28 = tpu.matmul %25, %27, %cst_34 {dimension_numbers = #tpu.dot_dimension_numbers<[1], [0], [0], [1], [0, 0, 1, 1], [], []>} : vector<128x384xf32>, vector<384x128xf32>, vector<128x128xf32> -> vector<128x128xf32>
    %29 = arith.addf %15, %28 : vector<128x128xf32>
    %c2_35 = arith.constant 2 : index
    %c0_36 = arith.constant 0 : index
    %c0_37 = arith.constant 0 : index
    %c0_38 = arith.constant 0 : index
    %c0_39 = arith.constant 0 : index
    %30 = vector.load %arg12[%c2_35, %c0_36, %c0_37, %c0_38, %c0_39] : memref<10x1x1x18x128xf32, #tpu.memory_space<vmem>>, vector<8x1x1x16x128xf32>
    %31 = vector.shape_cast %30 : vector<8x1x1x16x128xf32> to vector<8x16x128xf32>
    %32 = vector.shape_cast %31 : vector<8x16x128xf32> to vector<128x128xf32>
    %c2_40 = arith.constant 2 : index
    %c0_41 = arith.constant 0 : index
    %c0_42 = arith.constant 0 : index
    %c1_43 = arith.constant 1 : index
    %c0_44 = arith.constant 0 : index
    %33 = vector.load %arg12[%c2_40, %c0_41, %c0_42, %c1_43, %c0_44] : memref<10x1x1x18x128xf32, #tpu.memory_space<vmem>>, vector<8x1x1x16x128xf32>
    %34 = vector.shape_cast %33 : vector<8x1x1x16x128xf32> to vector<8x16x128xf32>
    %35 = vector.shape_cast %34 : vector<8x16x128xf32> to vector<128x128xf32>
    %c2_45 = arith.constant 2 : index
    %c0_46 = arith.constant 0 : index
    %c0_47 = arith.constant 0 : index
    %c2_48 = arith.constant 2 : index
    %c0_49 = arith.constant 0 : index
    %36 = vector.load %arg12[%c2_45, %c0_46, %c0_47, %c2_48, %c0_49] : memref<10x1x1x18x128xf32, #tpu.memory_space<vmem>>, vector<8x1x1x16x128xf32>
    %37 = vector.shape_cast %36 : vector<8x1x1x16x128xf32> to vector<8x16x128xf32>
    %38 = vector.shape_cast %37 : vector<8x16x128xf32> to vector<128x128xf32>
    %39 = tpu.concatenate %32, %35, %38 in 1 : vector<128x128xf32>, vector<128x128xf32>, vector<128x128xf32> -> vector<128x384xf32>
    %c2_50 = arith.constant 2 : index
    %c0_51 = arith.constant 0 : index
    %c0_52 = arith.constant 0 : index
    %40 = vector.load %arg4[%c2_50, %c0_51, %c0_52] : memref<3x384x128xf32, #tpu.memory_space<vmem>>, vector<1x384x128xf32>
    %41 = vector.shape_cast %40 : vector<1x384x128xf32> to vector<384x128xf32>
    %cst_53 = arith.constant dense<0.000000e+00> : vector<128x128xf32>
    %42 = tpu.matmul %39, %41, %cst_53 {dimension_numbers = #tpu.dot_dimension_numbers<[1], [0], [0], [1], [0, 0, 1, 1], [], []>} : vector<128x384xf32>, vector<384x128xf32>, vector<128x128xf32> -> vector<128x128xf32>
    %43 = arith.addf %29, %42 : vector<128x128xf32>
    %c0_54 = arith.constant 0 : index
    %c0_55 = arith.constant 0 : index
    %44 = vector.load %arg5[%c0_54, %c0_55] : memref<1x128xf32, #tpu.memory_space<vmem>>, vector<1x128xf32>
    %45 = vector.broadcast %44 : vector<1x128xf32> to vector<128x128xf32>
    %46 = arith.mulf %43, %45 : vector<128x128xf32>
    %c0_56 = arith.constant 0 : index
    %c0_57 = arith.constant 0 : index
    %47 = vector.load %arg6[%c0_56, %c0_57] : memref<1x128xf32, #tpu.memory_space<vmem>>, vector<1x128xf32>
    %48 = vector.broadcast %47 : vector<1x128xf32> to vector<128x128xf32>
    %49 = arith.addf %46, %48 : vector<128x128xf32>
    %c0_58 = arith.constant 0 : index
    %c0_59 = arith.constant 0 : index
    %c0_60 = arith.constant 0 : index
    %c0_61 = arith.constant 0 : index
    %50 = vector.load %arg7[%c0_58, %c0_59, %c0_60, %c0_61] : memref<1x8x16x128xf32, #tpu.memory_space<vmem>>, vector<1x8x16x128xf32>
    %51 = vector.shape_cast %50 : vector<1x8x16x128xf32> to vector<8x16x128xf32>
    %52 = vector.shape_cast %51 : vector<8x16x128xf32> to vector<128x128xf32>
    %c0_62 = arith.constant 0 : index
    %c0_63 = arith.constant 0 : index
    %53 = vector.load %arg8[%c0_62, %c0_63] : memref<128x128xf32, #tpu.memory_space<vmem>>, vector<128x128xf32>
    %cst_64 = arith.constant dense<0.000000e+00> : vector<128x128xf32>
    %54 = tpu.matmul %52, %53, %cst_64 {dimension_numbers = #tpu.dot_dimension_numbers<[1], [0], [0], [1], [0, 0, 1, 1], [], []>} : vector<128x128xf32>, vector<128x128xf32>, vector<128x128xf32> -> vector<128x128xf32>
    %c0_65 = arith.constant 0 : index
    %c0_66 = arith.constant 0 : index
    %55 = vector.load %arg9[%c0_65, %c0_66] : memref<1x128xf32, #tpu.memory_space<vmem>>, vector<1x128xf32>
    %56 = vector.broadcast %55 : vector<1x128xf32> to vector<128x128xf32>
    %57 = arith.mulf %54, %56 : vector<128x128xf32>
    %c0_67 = arith.constant 0 : index
    %c0_68 = arith.constant 0 : index
    %58 = vector.load %arg10[%c0_67, %c0_68] : memref<1x128xf32, #tpu.memory_space<vmem>>, vector<1x128xf32>
    %59 = vector.broadcast %58 : vector<1x128xf32> to vector<128x128xf32>
    %60 = arith.addf %57, %59 : vector<128x128xf32>
    %61 = arith.addf %49, %60 : vector<128x128xf32>
    %cst_69 = arith.constant 0.000000e+00 : f32
    %62 = vector.broadcast %cst_69 : f32 to vector<128x128xf32>
    %63 = arith.maximumf %61, %62 : vector<128x128xf32>
    %64 = vector.shape_cast %63 : vector<128x128xf32> to vector<8x16x128xf32>
    %c0_70 = arith.constant 0 : index
    %c0_71 = arith.constant 0 : index
    %c0_72 = arith.constant 0 : index
    %c0_73 = arith.constant 0 : index
    %65 = vector.load %arg11[%c0_70, %c0_71, %c0_72, %c0_73] : memref<1x8x16x128xf32, #tpu.memory_space<vmem>>, vector<1x8x16x128xf32>
    %66 = vector.shape_cast %65 : vector<1x8x16x128xf32> to vector<8x16x128xf32>
    %67 = vector.shape_cast %64 : vector<8x16x128xf32> to vector<1x8x16x128xf32>
    tpu.vector_store %arg11[%c0_70, %c0_71, %c0_72, %c0_73], %67 {strides = array<i32>} : memref<1x8x16x128xf32, #tpu.memory_space<vmem>>, vector<1x8x16x128xf32>,
    return
  }
  func.func @transform_1(%arg0: i32, %arg1: i32, %arg2: i32) -> (i32, i32, i32) {
    %c0_i32 = arith.constant 0 : i32
    %c0_i32_0 = arith.constant 0 : i32
    %c0_i32_1 = arith.constant 0 : i32
    return %c0_i32, %c0_i32_0, %arg2 : i32, i32, i32
  }
  func.func @transform_2(%arg0: i32, %arg1: i32, %arg2: i32) -> (i32, i32) {
    %c0_i32 = arith.constant 0 : i32
    %c0_i32_0 = arith.constant 0 : i32
    return %c0_i32, %arg2 : i32, i32
  }
  func.func @transform_3(%arg0: i32, %arg1: i32, %arg2: i32) -> (i32, i32) {
    %c0_i32 = arith.constant 0 : i32
    %c0_i32_0 = arith.constant 0 : i32
    return %c0_i32, %arg2 : i32, i32
  }
  func.func @transform_4(%arg0: i32, %arg1: i32, %arg2: i32) -> (i32, i32, i32, i32) {
    %c0_i32 = arith.constant 0 : i32
    %c0_i32_0 = arith.constant 0 : i32
    %c0_i32_1 = arith.constant 0 : i32
    return %arg0, %arg1, %c0_i32, %c0_i32_0 : i32, i32, i32, i32
  }
  func.func @transform_5(%arg0: i32, %arg1: i32, %arg2: i32) -> (i32, i32) {
    %c0_i32 = arith.constant 0 : i32
    %c0_i32_0 = arith.constant 0 : i32
    return %c0_i32, %arg2 : i32, i32
  }
  func.func @transform_6(%arg0: i32, %arg1: i32, %arg2: i32) -> (i32, i32) {
    %c0_i32 = arith.constant 0 : i32
    %c0_i32_0 = arith.constant 0 : i32
    return %c0_i32, %arg2 : i32, i32
  }
  func.func @transform_7(%arg0: i32, %arg1: i32, %arg2: i32) -> (i32, i32) {
    %c0_i32 = arith.constant 0 : i32
    %c0_i32_0 = arith.constant 0 : i32
    return %c0_i32, %arg2 : i32, i32
  }
  func.func @transform_8(%arg0: i32, %arg1: i32, %arg2: i32) -> (i32, i32, i32, i32) {
    %c0_i32 = arith.constant 0 : i32
    %c0_i32_0 = arith.constant 0 : i32
    return %arg0, %arg1, %c0_i32, %arg2 : i32, i32, i32, i32
  }
}

</mosaic_0001>

<bundles_post_ra>
// kernel: basic_block_forward.2
= control target key start
LH: loop header
LB: loop body
LE: loop exit
PB: predicated region body
PF: predicated region fallthrough
CT: control target
= control target key end

     0   :  { %s1730_s15 = smov 0   ;;  %s1732_s16 = smov 0   ;;  %s2630_s0 = inlined_call_operand.vmem [shape: f32[2,18,1,1,18,128], index: 0, kind: input, shape index: {}]   ;;  %s2631_s1 = inlined_call_operand.vmem [shape: f32[3,384,128], index: 1, kind: input, shape index: {}]   ;;  %s2632_s2 = inlined_call_operand.vmem [shape: f32[1,128], index: 2, kind: input, shape index: {}]   ;;  %s2633_s3 = inlined_call_operand.vmem [shape: f32[1,128], index: 3, kind: input, shape index: {}]   ;;  %s2634_s4 = inlined_call_operand.vmem [shape: f32[2,16,16,128], index: 4, kind: output, shape index: {}]  }
   0x1   :  { %s1734_s17 = smov 0   ;;  %s1736_s18 = smov 0  }
   0x2   :  { %s1738_s19 = smov 0  }
   0x3 LB: > { %s29_s20 = sadd.s32 1, %s1695_s17  ;;  %s33_s21 = sadd.s32 1, %s1699_s18  ;;  %s1703_s19 = sphi %s1738_s19, %s14_s19   ;;  %s1699_s18 = sphi %s1736_s18, %s2640_s18   ;;  %s1695_s17 = sphi %s1734_s17, %s2639_s17   ;;  %s1691_s16 = sphi %s1732_s16, %s2638_s16   ;;  %s1687_s15 = sphi %s1730_s15, %s2637_s15  }
   0x4   : > { %p31_p0 = scmp.ge.s32.totalorder %s29_s20, 2  ;;  %p1457_p1 = scmp.ge.s32.totalorder %s1703_s19, 1 }
   0x5   : > { %p176_p2 = scmp.lt.s32.totalorder %s1703_s19, 5 }
   0x6   : > { %s2642_s20 = smov (%p31_p0, %s29_s20), 0  ;;  %s2644_s21 = smov (!%p31_p0, %s33_s21), %s1699_s18 }
   0x7   : > { %p177_p3 = pnand %p1457_p1, %p176_p2  ;;  %p35_p4 = scmp.ge.s32.totalorder %s2644_s21, 2 }
   0x9   : > { %s2646_s21 = smov (%p35_p4, %s2644_s21), 0  ;;  %180 = sbr.rel (%p177_p3) target bundleno = 519 (0x207), region = 32 }
   0xe   : > { %s1458_s22 = sshll.u32 %s1687_s15, 3  ;;  %p224_p5 = scmp.lt.s32.totalorder %s1691_s16, 1 }
   0xf   : > { %p226_p6 = scmp.lt.s32.totalorder %s1458_s22, 15  ;;  %s1463_s23 = smul.u32 192, %s1687_s15 }
  0x10   : > { %s225_s24 = scalar_select %p224_p5, %s1691_s16, 1 }
  0x11   : > { %s2648_s22 = smov (!%p226_p6, %s1458_s22), 15  ;;  %s243_s26 = smul.u32 432, %s1691_s16 }
  0x12   : > { %s1460_s25 = sshll.u32 %s225_s24, 5  ;;  %s1459_s27 = sshll.u32 %s2648_s22, 1 }
  0x13   : > { %s233_s28 = sadd.s32 %s1460_s25, %s1459_s27  ;;  %s244_s29 = sadd.s32 %s1463_s23, %s243_s26 }
  0x14   : > { %s1461_s30 = sshll.u32 %s233_s28, 3  ;;  %s1763_s7 = scalar_lea.vmem %s2630_s0, %s244_s29 }
  0x15   : > { %s1768_s10 = scalar_lea.vmem %s2634_s4, %s1461_s30  ;;  %v258_v0 = vld [vmem:[%s1763_s7] sm:$0xff]  ;;  %v260_v1 = vld [vmem:[%s1763_s7 + $0x8] sm:$0xff]  ;;  %v262_v2 = vld [vmem:[%s1763_s7 + $0x18] sm:$0xff] }
  0x16   : > { %259 = vst [vmem:[#allocation2] sm:$0xff] %v258_v0  ;;  %v264_v3 = vld [vmem:[%s1763_s7 + $0x20] sm:$0xff]  ;;  %v266_v4 = vld [vmem:[%s1763_s7 + $0x30] sm:$0xff]  ;;  %v268_v5 = vld [vmem:[%s1763_s7 + $0x38] sm:$0xff] }
  0x17   : > { %261 = vst [vmem:[#allocation2 + $0x8] sm:$0xff] %v260_v1  ;;  %v270_v6 = vld [vmem:[%s1763_s7 + $0x48] sm:$0xff]  ;;  %v272_v7 = vld [vmem:[%s1763_s7 + $0x50] sm:$0xff]  ;;  %v274_v8 = vld [vmem:[%s1763_s7 + $0x60] sm:$0xff] }
  0x18   : > { %263 = vst [vmem:[#allocation2 + $0x18] sm:$0xff] %v262_v2  ;;  %v276_v9 = vld [vmem:[%s1763_s7 + $0x68] sm:$0xff]  ;;  %v278_v10 = vld [vmem:[%s1763_s7 + $0x78] sm:$0xff]  ;;  %v280_v11 = vld [vmem:[%s1763_s7 + $0x80] sm:$0xff] }
  0x19   : > { %265 = vst [vmem:[#allocation2 + $0x20] sm:$0xff] %v264_v3  ;;  %v282_v12 = vld [vmem:[%s1763_s7 + $0x90] sm:$0xff]  ;;  %v284_v13 = vld [vmem:[%s1763_s7 + $0x98] sm:$0xff]  ;;  %v286_v14 = vld [vmem:[%s1763_s7 + $0xa8] sm:$0xff] }
  0x1a   : > { %267 = vst [vmem:[#allocation2 + $0x30] sm:$0xff] %v266_v4  ;;  %v288_v15 = vld [vmem:[%s1763_s7 + $0xb0] sm:$0xff]  ;;  %v290_v16 = vld [vmem:[%s1763_s7 + $0xc0] sm:$0xff]  ;;  %v292_v17 = vld [vmem:[%s1763_s7 + $0xc8] sm:$0xff] }
  0x1b   : > { %269 = vst [vmem:[#allocation2 + $0x38] sm:$0xff] %v268_v5  ;;  %v294_v18 = vld [vmem:[%s1763_s7 + $0xd8] sm:$0xff]  ;;  %v296_v19 = vld [vmem:[%s1763_s7 + $0xe0] sm:$0xff]  ;;  %v1464_v20 = vld [vmem:[%s1763_s7 + $0x10] sm:$0x3] }
  0x1c   : > { %271 = vst [vmem:[#allocation2 + $0x48] sm:$0xff] %v270_v6  ;;  %v1465_v21 = vld [vmem:[%s1763_s7 + $0x28] sm:$0x3]  ;;  %v1466_v22 = vld [vmem:[%s1763_s7 + $0x40] sm:$0x3] }
  0x1d   : > { %273 = vst [vmem:[#allocation2 + $0x50] sm:$0xff] %v272_v7  ;;  %v1467_v23 = vld [vmem:[%s1763_s7 + $0x58] sm:$0x3]  ;;  %v1468_v24 = vld [vmem:[%s1763_s7 + $0x70] sm:$0x3] }
  0x1e   : > { %275 = vst [vmem:[#allocation2 + $0x60] sm:$0xff] %v274_v8  ;;  %v1469_v25 = vld [vmem:[%s1763_s7 + $0x88] sm:$0x3]  ;;  %v1470_v26 = vld [vmem:[%s1763_s7 + $0xa0] sm:$0x3] }
  0x1f   : > { %277 = vst [vmem:[#allocation2 + $0x68] sm:$0xff] %v276_v9  ;;  %v1471_v27 = vld [vmem:[%s1763_s7 + $0xb8] sm:$0x3]  ;;  %v1472_v28 = vld [vmem:[%s1763_s7 + $0xd0] sm:$0x3] }
  0x20   : > { %279 = vst [vmem:[#allocation2 + $0x78] sm:$0xff] %v278_v10  ;;  %v1473_v29 = vld [vmem:[%s1763_s7 + $0xe8] sm:$0x3] }
  0x21   : > { %281 = vst [vmem:[#allocation2 + $0x80] sm:$0xff] %v280_v11 }
  0x22   : > { %283 = vst [vmem:[#allocation2 + $0x90] sm:$0xff] %v282_v12 }
  0x23   : > { %285 = vst [vmem:[#allocation2 + $0x98] sm:$0xff] %v284_v13 }
  0x24   : > { %287 = vst [vmem:[#allocation2 + $0xa8] sm:$0xff] %v286_v14 }
  0x25   : > { %289 = vst [vmem:[#allocation2 + $0xb0] sm:$0xff] %v288_v15 }
  0x26   : > { %291 = vst [vmem:[#allocation2 + $0xc0] sm:$0xff] %v290_v16 }
  0x27   : > { %293 = vst [vmem:[#allocation2 + $0xc8] sm:$0xff] %v292_v17 }
  0x28   : > { %295 = vst [vmem:[#allocation2 + $0xd8] sm:$0xff] %v294_v18 }
  0x29   : > { %297 = vst [vmem:[#allocation2 + $0xe0] sm:$0xff] %v296_v19 }
  0x2a   : > { %309 = vst [vmem:[#allocation2 + $0x10] sm:$0x3] %v1464_v20 }
  0x2b   : > { %311 = vst [vmem:[#allocation2 + $0x28] sm:$0x3] %v1465_v21 }
  0x2c   : > { %313 = vst [vmem:[#allocation2 + $0x40] sm:$0x3] %v1466_v22 }
  0x2d   : > { %315 = vst [vmem:[#allocation2 + $0x58] sm:$0x3] %v1467_v23 }
  0x2e   : > { %317 = vst [vmem:[#allocation2 + $0x70] sm:$0x3] %v1468_v24 }
  0x2f   : > { %319 = vst [vmem:[#allocation2 + $0x88] sm:$0x3] %v1469_v25 }
  0x30   : > { %321 = vst [vmem:[#allocation2 + $0xa0] sm:$0x3] %v1470_v26 }
  0x31   : > { %323 = vst [vmem:[#allocation2 + $0xb8] sm:$0x3] %v1471_v27 }
  0x32   : > { %325 = vst [vmem:[#allocation2 + $0xd0] sm:$0x3] %v1472_v28 }
  0x33   : > { %327 = vst [vmem:[#allocation2 + $0xe8] sm:$0x3] %v1473_v29 }
  0x34   : > { %331 = vsyncadd [#allocation3], 2880 }
  0x35   : > { %1683 = dma.done.wait [#allocation3], 2880 }
  0x36   : > { %1684 = vsyncadd [#allocation3], 4294964416  ;;  %v1489_v30 = vld [vmem:[%s2631_s1 + $0x1f8] sm:$0xff]  ;;  %v1488_v31 = vld [vmem:[%s2631_s1 + $0x1f0] sm:$0xff] }
  0x37   : > { %1573 = vmatpush.msra.mxu1 %v1489_v30  ;;  %1574 = vmatpush.msra.mxu2 %v1489_v30  ;;  %v1487_v32 = vld [vmem:[%s2631_s1 + $0x1e8] sm:$0xff]  ;;  %v1486_v33 = vld [vmem:[%s2631_s1 + $0x1e0] sm:$0xff]  ;;  %v1485_v34 = vld [vmem:[%s2631_s1 + $0x1d8] sm:$0xff] }
  0x38   : > { %1575 = vmatpush.msra.mxu3 %v1489_v30  ;;  %532 = vmatpush.msra.mxu0 %v1489_v30  ;;  %v1484_v35 = vld [vmem:[%s2631_s1 + $0x1d0] sm:$0xff]  ;;  %v1483_v36 = vld [vmem:[%s2631_s1 + $0x1c8] sm:$0xff]  ;;  %v1482_v37 = vld [vmem:[%s2631_s1 + $0x1c0] sm:$0xff] }
  0x39   : > { %1576 = vmatpush.msra.mxu1 %v1488_v31  ;;  %1577 = vmatpush.msra.mxu2 %v1488_v31  ;;  %v1481_v38 = vld [vmem:[%s2631_s1 + $0x1b8] sm:$0xff]  ;;  %v1480_v39 = vld [vmem:[%s2631_s1 + $0x1b0] sm:$0xff]  ;;  %v1479_v40 = vld [vmem:[%s2631_s1 + $0x1a8] sm:$0xff] }
  0x3a   : > { %1578 = vmatpush.msra.mxu3 %v1488_v31  ;;  %533 = vmatpush.msra.mxu0 %v1488_v31  ;;  %v1478_v41 = vld [vmem:[%s2631_s1 + $0x1a0] sm:$0xff]  ;;  %v1477_v42 = vld [vmem:[%s2631_s1 + $0x198] sm:$0xff]  ;;  %v1476_v43 = vld [vmem:[%s2631_s1 + $0x190] sm:$0xff] }
  0x3b   : > { %1579 = vmatpush.msra.mxu1 %v1487_v32  ;;  %1580 = vmatpush.msra.mxu2 %v1487_v32  ;;  %v1475_v44 = vld [vmem:[%s2631_s1 + $0x188] sm:$0xff]  ;;  %v1474_v45 = vld [vmem:[%s2631_s1 + $0x180] sm:$0xff]  ;;  %v1850_v47 = vld [vmem:[#allocation2 + $0x78] sm:$0xff] }
  0x3c   : > { %1581 = vmatpush.msra.mxu3 %v1487_v32  ;;  %534 = vmatpush.msra.mxu0 %v1487_v32  ;;  %v1848_v46 = vld [vmem:[#allocation2 + $0x48] sm:$0xff]  ;;  %v1521_v49 = vld [vmem:[%s2631_s1 + $0x2f8] sm:$0xff]  ;;  %v1520_v52 = vld [vmem:[%s2631_s1 + $0x2f0] sm:$0xff] }
  0x3d   : > { %1582 = vmatpush.msra.mxu1 %v1486_v33  ;;  %1583 = vmatpush.msra.mxu2 %v1486_v33  ;;  %v1852_v48 = vld [vmem:[#allocation2 + $0xa8] sm:$0xff]  ;;  %v401_v50 = vld [vmem:[%s2631_s1 + $0x78] sm:$0xff]  ;;  %v400_v53 = vld [vmem:[%s2631_s1 + $0x70] sm:$0xff] }
  0x3e   : > { %1584 = vmatpush.msra.mxu3 %v1486_v33  ;;  %535 = vmatpush.msra.mxu0 %v1486_v33  ;;  %v1505_v51 = vld [vmem:[%s2631_s1 + $0x278] sm:$0xff]  ;;  %v1504_v54 = vld [vmem:[%s2631_s1 + $0x270] sm:$0xff]  ;;  %v1519_v56 = vld [vmem:[%s2631_s1 + $0x2e8] sm:$0xff] }
  0x3f   : > { %1585 = vmatpush.msra.mxu1 %v1485_v34  ;;  %1586 = vmatpush.msra.mxu2 %v1485_v34  ;;  %v1875_v55 = vld [vmem:[#allocation2 + $0x18] sm:$0xff]  ;;  %v399_v57 = vld [vmem:[%s2631_s1 + $0x68] sm:$0xff]  ;;  %v1518_v60 = vld [vmem:[%s2631_s1 + $0x2e0] sm:$0xff] }
  0x40   : > { %1587 = vmatpush.msra.mxu3 %v1485_v34  ;;  %536 = vmatpush.msra.mxu0 %v1485_v34  ;;  %v1503_v58 = vld [vmem:[%s2631_s1 + $0x268] sm:$0xff]  ;;  %v417_v59 = vld [vmem:[%s2631_s1 + $0xf8] sm:$0xff]  ;;  %v398_v61 = vld [vmem:[%s2631_s1 + $0x60] sm:$0xff] }
  0x41   : > { %1588 = vmatpush.msra.mxu1 %v1484_v35  ;;  %1589 = vmatpush.msra.mxu2 %v1484_v35  ;;  %v1502_v62 = vld [vmem:[%s2631_s1 + $0x260] sm:$0xff]  ;;  %v1901_v0 = vld [vmem:[#allocation2 + $0x50] sm:$0xff]  ;;  %v1517_v2 = vld [vmem:[%s2631_s1 + $0x2d8] sm:$0xff] }
  0x42   : > { %1590 = vmatpush.msra.mxu3 %v1484_v35  ;;  %537 = vmatpush.msra.mxu0 %v1484_v35  ;;  %v1899_v63 = vld [vmem:[#allocation2 + $0x80] sm:$0xff]  ;;  %v1903_v1 = vld [vmem:[#allocation2 + $0xb0] sm:$0xff]  ;;  %v397_v3 = vld [vmem:[%s2631_s1 + $0x58] sm:$0xff] }
  0x43   : > { %1591 = vmatpush.msra.mxu1 %v1483_v36  ;;  %1592 = vmatpush.msra.mxu2 %v1483_v36  ;;  %v1501_v4 = vld [vmem:[%s2631_s1 + $0x258] sm:$0xff]  ;;  %v416_v5 = vld [vmem:[%s2631_s1 + $0xf0] sm:$0xff]  ;;  %v415_v9 = vld [vmem:[%s2631_s1 + $0xe8] sm:$0xff] }
  0x44   : > { %1593 = vmatpush.msra.mxu3 %v1483_v36  ;;  %538 = vmatpush.msra.mxu0 %v1483_v36  ;;  %v1516_v6 = vld [vmem:[%s2631_s1 + $0x2d0] sm:$0xff]  ;;  %v1515_v10 = vld [vmem:[%s2631_s1 + $0x2c8] sm:$0xff]  ;;  %v414_v13 = vld [vmem:[%s2631_s1 + $0xe0] sm:$0xff] }
  0x45   : > { %1594 = vmatpush.msra.mxu1 %v1482_v37  ;;  %1595 = vmatpush.msra.mxu2 %v1482_v37  ;;  %v396_v7 = vld [vmem:[%s2631_s1 + $0x50] sm:$0xff]  ;;  %v395_v11 = vld [vmem:[%s2631_s1 + $0x48] sm:$0xff]  ;;  %v1514_v14 = vld [vmem:[%s2631_s1 + $0x2c0] sm:$0xff] }
  0x46   : > { %1596 = vmatpush.msra.mxu3 %v1482_v37  ;;  %539 = vmatpush.msra.mxu0 %v1482_v37  ;;  %v1500_v8 = vld [vmem:[%s2631_s1 + $0x250] sm:$0xff]  ;;  %v1499_v12 = vld [vmem:[%s2631_s1 + $0x248] sm:$0xff]  ;;  %v394_v15 = vld [vmem:[%s2631_s1 + $0x40] sm:$0xff] }
  0x47   : > { %1597 = vmatpush.msra.mxu1 %v1481_v38  ;;  %1598 = vmatpush.msra.mxu2 %v1481_v38  ;;  %v1498_v16 = vld [vmem:[%s2631_s1 + $0x240] sm:$0xff]  ;;  %v1957_v19 = vld [vmem:[#allocation2 + $0x90] sm:$0xff]  ;;  %v1513_v21 = vld [vmem:[%s2631_s1 + $0x2b8] sm:$0xff] }
  0x48   : > { %1599 = vmatpush.msra.mxu3 %v1481_v38  ;;  %540 = vmatpush.msra.mxu0 %v1481_v38  ;;  %v1953_v17 = vld [vmem:[#allocation2 + $0x20] sm:$0xff]  ;;  %v393_v22 = vld [vmem:[%s2631_s1 + $0x38] sm:$0xff]  ;;  %v1512_v25 = vld [vmem:[%s2631_s1 + $0x2b0] sm:$0xff] }
  0x49   : > { %1600 = vmatpush.msra.mxu1 %v1480_v39  ;;  %1601 = vmatpush.msra.mxu2 %v1480_v39  ;;  %v1955_v18 = vld [vmem:[#allocation2 + $0x60] sm:$0xff]  ;;  %v413_v23 = vld [vmem:[%s2631_s1 + $0xd8] sm:$0xff]  ;;  %v392_v26 = vld [vmem:[%s2631_s1 + $0x30] sm:$0xff] }
  0x4a   : > { %1602 = vmatpush.msra.mxu3 %v1480_v39  ;;  %541 = vmatpush.msra.mxu0 %v1480_v39  ;;  %v449_v20 = vld [vmem:[#allocation2 + $0xc0] sm:$0xff]  ;;  %v1497_v24 = vld [vmem:[%s2631_s1 + $0x238] sm:$0xff]  ;;  %v412_v27 = vld [vmem:[%s2631_s1 + $0xd0] sm:$0xff] }
  0x4b   : > { %1603 = vmatpush.msra.mxu1 %v1479_v40  ;;  %1604 = vmatpush.msra.mxu2 %v1479_v40  ;;  %v1496_v28 = vld [vmem:[%s2631_s1 + $0x230] sm:$0xff]  ;;  %v1511_v29 = vld [vmem:[%s2631_s1 + $0x2a8] sm:$0xff]  ;;  %v1510_v33 = vld [vmem:[%s2631_s1 + $0x2a0] sm:$0xff] }
  0x4c   : > { %1605 = vmatpush.msra.mxu3 %v1479_v40  ;;  %542 = vmatpush.msra.mxu0 %v1479_v40  ;;  %v391_v30 = vld [vmem:[%s2631_s1 + $0x28] sm:$0xff]  ;;  %v390_v34 = vld [vmem:[%s2631_s1 + $0x20] sm:$0xff]  ;;  %v2010_v37 = vld [vmem:[#allocation2 + $0x30] sm:$0xff] }
  0x4d   : > { %1606 = vmatpush.msra.mxu1 %v1478_v41  ;;  %1607 = vmatpush.msra.mxu2 %v1478_v41  ;;  %v411_v31 = vld [vmem:[%s2631_s1 + $0xc8] sm:$0xff]  ;;  %v410_v35 = vld [vmem:[%s2631_s1 + $0xc0] sm:$0xff]  ;;  %v2014_v39 = vld [vmem:[#allocation2 + $0x98] sm:$0xff] }
  0x4e   : > { %1608 = vmatpush.msra.mxu3 %v1478_v41  ;;  %543 = vmatpush.msra.mxu0 %v1478_v41  ;;  %v1495_v32 = vld [vmem:[%s2631_s1 + $0x228] sm:$0xff]  ;;  %v1494_v36 = vld [vmem:[%s2631_s1 + $0x220] sm:$0xff]  ;;  %v1509_v41 = vld [vmem:[%s2631_s1 + $0x298] sm:$0xff] }
  0x4f   : > { %1609 = vmatpush.msra.mxu1 %v1477_v42  ;;  %1610 = vmatpush.msra.mxu2 %v1477_v42  ;;  %v2012_v38 = vld [vmem:[#allocation2 + $0x68] sm:$0xff] }
  0x50   : > { %1611 = vmatpush.msra.mxu3 %v1477_v42  ;;  %544 = vmatpush.msra.mxu0 %v1477_v42  ;;  %v450_v40 = vld [vmem:[#allocation2 + $0xc8] sm:$0xff]  ;;  %v389_v42 = vld [vmem:[%s2631_s1 + $0x18] sm:$0xff] }
  0x51   : > { %1612 = vmatpush.msra.mxu1 %v1476_v43  ;;  %1613 = vmatpush.msra.mxu2 %v1476_v43 }
  0x52   : > { %1614 = vmatpush.msra.mxu3 %v1476_v43  ;;  %545 = vmatpush.msra.mxu0 %v1476_v43  ;;  %v409_v43 = vld [vmem:[%s2631_s1 + $0xb8] sm:$0xff] }
  0x53   : > { %1615 = vmatpush.msra.mxu1 %v1475_v44  ;;  %1616 = vmatpush.msra.mxu2 %v1475_v44 }
  0x54   : > { %1617 = vmatpush.msra.mxu3 %v1475_v44  ;;  %546 = vmatpush.msra.mxu0 %v1475_v44  ;;  %v1493_v44 = vld [vmem:[%s2631_s1 + $0x218] sm:$0xff] }
  0x55   : > { %1618 = vmatpush.msra.mxu1 %v1474_v45  ;;  %1619 = vmatpush.msra.mxu2 %v1474_v45 }
  0x56   : > { %1620 = vmatpush.msra.mxu3 %v1474_v45  ;;  %560 = vmatmul.f32.vlgmr.msra.gmra.mxu1 %v1848_v46 }
  0x57   : > { %572 = vmatmul.f32.vlgmr.msra.gmra.mxu2 %v1850_v47  ;;  %584 = vmatmul.f32.vlgmr.msra.gmra.mxu3 %v1852_v48 }
  0x58   : > { %662 = vmatpush.msrb.mxu2 %v1521_v49  ;;  %727 = vmatpush.msrb.mxu3 %v401_v50  ;;  %v388_v49 = vld [vmem:[%s2631_s1 + $0x10] sm:$0xff] }
  0x59   : > { %597 = vmatpush.msrb.mxu1 %v1505_v51  ;;  %547 = vmatpush.msra.mxu0 %v1474_v45  ;;  %v1508_v45 = vld [vmem:[%s2631_s1 + $0x290] sm:$0xff] }
  0x5a   : > { %663 = vmatpush.msrb.mxu2 %v1520_v52  ;;  %728 = vmatpush.msrb.mxu3 %v400_v53  ;;  %v408_v50 = vld [vmem:[%s2631_s1 + $0xb0] sm:$0xff]  ;;  %v1507_v52 = vld [vmem:[%s2631_s1 + $0x288] sm:$0xff] }
  0x5b   : > { %598 = vmatpush.msrb.mxu1 %v1504_v54  ;;  %548 = vmatmul.f32.vlgmr.msra.gmra.mxu0 %v1875_v55  ;;  %v1492_v51 = vld [vmem:[%s2631_s1 + $0x210] sm:$0xff]  ;;  %v387_v53 = vld [vmem:[%s2631_s1 + $0x8] sm:$0xff] }
  0x5c   : > { %664 = vmatpush.msrb.mxu2 %v1519_v56  ;;  %729 = vmatpush.msrb.mxu3 %v399_v57  ;;  %v407_v54 = vld [vmem:[%s2631_s1 + $0xa8] sm:$0xff]  ;;  %v1506_v57 = vld [vmem:[%s2631_s1 + $0x280] sm:$0xff] }
  0x5d   : > { %599 = vmatpush.msrb.mxu1 %v1503_v58  ;;  %792 = vmatpush.msrb.mxu0 %v417_v59  ;;  %v1491_v56 = vld [vmem:[%s2631_s1 + $0x208] sm:$0xff]  ;;  %v386_v58 = vld [vmem:[%s2631_s1] sm:$0xff] }
  0x5e   : > { %665 = vmatpush.msrb.mxu2 %v1518_v60  ;;  %730 = vmatpush.msrb.mxu3 %v398_v61  ;;  %v406_v59 = vld [vmem:[%s2631_s1 + $0xa0] sm:$0xff]  ;;  %v2067_v61 = vld [vmem:[#allocation2 + $0x38] sm:$0xff] }
  0x5f   : > { %600 = vmatpush.msrb.mxu1 %v1502_v62  ;;  %575 = vmatmul.f32.gmra.mxu2 %v1899_v63  ;;  %v1490_v60 = vld [vmem:[%s2631_s1 + $0x200] sm:$0xff] }
  0x60   : > { %563 = vmatmul.f32.gmra.mxu1 %v1901_v0  ;;  %587 = vmatmul.f32.gmra.mxu3 %v1903_v1  ;;  %v2069_v62 = vld [vmem:[#allocation2 + $0x19] sm:$0xff] }
  0x61   : > { %666 = vmatpush.msrb.mxu2 %v1517_v2  ;;  %731 = vmatpush.msrb.mxu3 %v397_v3  ;;  %v2071_v2 = vld [vmem:[#allocation2 + $0x1a] sm:$0xff] }
  0x62   : > { %601 = vmatpush.msrb.mxu1 %v1501_v4  ;;  %793 = vmatpush.msrb.mxu0 %v416_v5  ;;  %v338_v3 = vld [vmem:[#allocation2] sm:$0xff]  ;;  %v405_v4 = vld [vmem:[%s2631_s1 + $0x98] sm:$0xff] }
  0x63   : > { %667 = vmatpush.msrb.mxu2 %v1516_v6  ;;  %732 = vmatpush.msrb.mxu3 %v396_v7  ;;  %v1537_v5 = vld [vmem:[%s2631_s1 + $0x378] sm:$0xff]  ;;  %v404_v7 = vld [vmem:[%s2631_s1 + $0x90] sm:$0xff] }
  0x64   : > { %602 = vmatpush.msrb.mxu1 %v1500_v8  ;;  %794 = vmatpush.msrb.mxu0 %v415_v9  ;;  %v1553_v6 = vld [vmem:[%s2631_s1 + $0x3f8] sm:$0xff]  ;;  %v1536_v9 = vld [vmem:[%s2631_s1 + $0x370] sm:$0xff] }
  0x65   : > { %668 = vmatpush.msrb.mxu2 %v1515_v10  ;;  %733 = vmatpush.msrb.mxu3 %v395_v11  ;;  %v433_v8 = vld [vmem:[%s2631_s1 + $0x178] sm:$0xff]  ;;  %v1552_v10 = vld [vmem:[%s2631_s1 + $0x3f0] sm:$0xff]  ;;  %v403_v11 = vld [vmem:[%s2631_s1 + $0x88] sm:$0xff] }
  0x66   : > { %603 = vmatpush.msrb.mxu1 %v1499_v12  ;;  %795 = vmatpush.msrb.mxu0 %v414_v13  ;;  %v432_v12 = vld [vmem:[%s2631_s1 + $0x170] sm:$0xff]  ;;  %v1535_v13 = vld [vmem:[%s2631_s1 + $0x368] sm:$0xff] }
  0x67   : > { %669 = vmatpush.msrb.mxu2 %v1514_v14  ;;  %734 = vmatpush.msrb.mxu3 %v394_v15  ;;  %v1551_v14 = vld [vmem:[%s2631_s1 + $0x3e8] sm:$0xff]  ;;  %v402_v15 = vld [vmem:[%s2631_s1 + $0x80] sm:$0xff] }
  0x68   : > { %604 = vmatpush.msrb.mxu1 %v1498_v16  ;;  %551 = vmatmul.f32.gmra.mxu0 %v1953_v17  ;;  %v431_v16 = vld [vmem:[%s2631_s1 + $0x168] sm:$0xff] }
  0x69   : > { %566 = vmatmul.f32.gmra.mxu1 %v1955_v18  ;;  %578 = vmatmul.f32.gmra.mxu2 %v1957_v19 }
  0x6a   : > { %590 = vmatmul.f32.gmra.mxu3 %v449_v20  ;;  %670 = vmatpush.msrb.mxu2 %v1513_v21  ;;  %v2115_v20 = vld [vmem:[#allocation2 + $0x21] sm:$0xff] }
  0x6b   : > { %735 = vmatpush.msrb.mxu3 %v393_v22  ;;  %796 = vmatpush.msrb.mxu0 %v413_v23  ;;  %v2117_v21 = vld [vmem:[#allocation2 + $0x22] sm:$0xff] }
  0x6c   : > { %605 = vmatpush.msrb.mxu1 %v1497_v24  ;;  %671 = vmatpush.msrb.mxu2 %v1512_v25  ;;  %v339_v22 = vld [vmem:[#allocation2 + $0x8] sm:$0xff]  ;;  %v1569_v24 = vld [vmem:[%s2631_s1 + $0x478] sm:$0xff]  ;;  %v1534_v25 = vld [vmem:[%s2631_s1 + $0x360] sm:$0xff] }
  0x6d   : > { %736 = vmatpush.msrb.mxu3 %v392_v26  ;;  %797 = vmatpush.msrb.mxu0 %v412_v27  ;;  %v354_v23 = vld [vmem:[#allocation2 + $0x1] sm:$0xff] }
  0x6e   : > { %606 = vmatpush.msrb.mxu1 %v1496_v28  ;;  %672 = vmatpush.msrb.mxu2 %v1511_v29  ;;  %v1550_v26 = vld [vmem:[%s2631_s1 + $0x3e0] sm:$0xff]  ;;  %v1568_v28 = vld [vmem:[%s2631_s1 + $0x470] sm:$0xff]  ;;  %v1533_v29 = vld [vmem:[%s2631_s1 + $0x358] sm:$0xff] }
  0x6f   : > { %737 = vmatpush.msrb.mxu3 %v391_v30  ;;  %798 = vmatpush.msrb.mxu0 %v411_v31  ;;  %v430_v27 = vld [vmem:[%s2631_s1 + $0x160] sm:$0xff]  ;;  %v1549_v30 = vld [vmem:[%s2631_s1 + $0x3d8] sm:$0xff] }
  0x70   : > { %607 = vmatpush.msrb.mxu1 %v1495_v32  ;;  %673 = vmatpush.msrb.mxu2 %v1510_v33  ;;  %v429_v31 = vld [vmem:[%s2631_s1 + $0x158] sm:$0xff]  ;;  %v1567_v32 = vld [vmem:[%s2631_s1 + $0x468] sm:$0xff]  ;;  %v1532_v33 = vld [vmem:[%s2631_s1 + $0x350] sm:$0xff] }
  0x71   : > { %738 = vmatpush.msrb.mxu3 %v390_v34  ;;  %799 = vmatpush.msrb.mxu0 %v410_v35  ;;  %v1548_v34 = vld [vmem:[%s2631_s1 + $0x3d0] sm:$0xff] }
  0x72   : > { %608 = vmatpush.msrb.mxu1 %v1494_v36  ;;  %554 = vmatmul.f32.gmra.mxu0 %v2010_v37  ;;  %v2154_v35 = vld [vmem:[#allocation2 + $0x31] sm:$0xff] }
  0x73   : > { %569 = vmatmul.f32.gmra.mxu1 %v2012_v38  ;;  %581 = vmatmul.f32.gmra.mxu2 %v2014_v39  ;;  %v2156_v36 = vld [vmem:[#allocation2 + $0x32] sm:$0xff] }
  0x74   : > { %593 = vmatmul.f32.gmra.mxu3 %v450_v40  ;;  %674 = vmatpush.msrb.mxu2 %v1509_v41  ;;  %v355_v40 = vld [vmem:[#allocation2 + $0x9] sm:$0xff]  ;;  %v1566_v41 = vld [vmem:[%s2631_s1 + $0x460] sm:$0xff] }
  0x75   : > { %739 = vmatpush.msrb.mxu3 %v389_v42  ;;  %800 = vmatpush.msrb.mxu0 %v409_v43  ;;  %v1565_v42 = vld [vmem:[%s2631_s1 + $0x458] sm:$0xff]  ;;  %v428_v43 = vld [vmem:[%s2631_s1 + $0x150] sm:$0xff] }
  0x76   : > { %609 = vmatpush.msrb.mxu1 %v1493_v44  ;;  %675 = vmatpush.msrb.mxu2 %v1508_v45  ;;  %v1531_v44 = vld [vmem:[%s2631_s1 + $0x348] sm:$0xff] }
  0x77   : > { %740 = vmatpush.msrb.mxu3 %v388_v49  ;;  %801 = vmatpush.msrb.mxu0 %v408_v50  ;;  %v1547_v45 = vld [vmem:[%s2631_s1 + $0x3c8] sm:$0xff]  ;;  %v2179_v49 = vld [vmem:[#allocation2 + $0x39] sm:$0xff] }
  0x78   : > { %610 = vmatpush.msrb.mxu1 %v1492_v51  ;;  %676 = vmatpush.msrb.mxu2 %v1507_v52  ;;  %v2181_v50 = vld [vmem:[#allocation2 + $0x3a] sm:$0xff]  ;;  %v427_v51 = vld [vmem:[%s2631_s1 + $0x148] sm:$0xff] }
  0x79   : > { %741 = vmatpush.msrb.mxu3 %v387_v53  ;;  %802 = vmatpush.msrb.mxu0 %v407_v54  ;;  %v1530_v52 = vld [vmem:[%s2631_s1 + $0x340] sm:$0xff]  ;;  %v2199_v54 = vld [vmem:[#allocation2 + $0x49] sm:$0xff] }
  0x7a   : > { %611 = vmatpush.msrb.mxu1 %v1491_v56  ;;  %677 = vmatpush.msrb.mxu2 %v1506_v57  ;;  %v1546_v53 = vld [vmem:[%s2631_s1 + $0x3c0] sm:$0xff]  ;;  %v2201_v56 = vld [vmem:[#allocation2 + $0x4a] sm:$0xff] }
  0x7b   : > { %742 = vmatpush.msrb.mxu3 %v386_v58  ;;  %803 = vmatpush.msrb.mxu0 %v406_v59  ;;  %v426_v57 = vld [vmem:[%s2631_s1 + $0x140] sm:$0xff]  ;;  %v1529_v58 = vld [vmem:[%s2631_s1 + $0x338] sm:$0xff] }
  0x7c   : > { %612 = vmatpush.msrb.mxu1 %v1490_v60  ;;  %557 = vmatmul.f32.gmra.mxu0 %v2067_v61  ;;  %v1545_v59 = vld [vmem:[%s2631_s1 + $0x3b8] sm:$0xff]  ;;  %v1562_v60 = vld [vmem:[%s2631_s1 + $0x440] sm:$0xff] }
  0x7d   : > { %613 = vmatmul.f32.vlgmr.msrb.gmra.mxu1 %v2069_v62  ;;  %678 = vmatmul.f32.vlgmr.msrb.gmra.mxu2 %v2071_v2 }
  0x7e   : > { %743 = vmatmul.f32.vlgmr.msrb.gmra.mxu3 %v338_v3  ;;  %804 = vmatpush.msrb.mxu0 %v405_v4  ;;  %v2221_v3 = vld [vmem:[#allocation2 + $0x52] sm:$0xff] }
  0x7f   : > { %1020 = vmatpush.msra.mxu2 %v1537_v5  ;;  %1085 = vmatpush.msra.mxu3 %v1553_v6  ;;  %v425_v4 = vld [vmem:[%s2631_s1 + $0x138] sm:$0xff]  ;;  %v1528_v5 = vld [vmem:[%s2631_s1 + $0x330] sm:$0xff] }
  0x80   : > { %805 = vmatpush.msrb.mxu0 %v404_v7  ;;  %857 = vmatpush.msra.mxu1 %v433_v8  ;;  %v1544_v6 = vld [vmem:[%s2631_s1 + $0x3b0] sm:$0xff]  ;;  %v1561_v7 = vld [vmem:[%s2631_s1 + $0x438] sm:$0xff]  ;;  %v2239_v8 = vld [vmem:[#allocation2 + $0x61] sm:$0xff] }
  0x81   : > { %1021 = vmatpush.msra.mxu2 %v1536_v9  ;;  %1086 = vmatpush.msra.mxu3 %v1552_v10  ;;  %v2241_v9 = vld [vmem:[#allocation2 + $0x62] sm:$0xff]  ;;  %v424_v10 = vld [vmem:[%s2631_s1 + $0x130] sm:$0xff] }
  0x82   : > { %806 = vmatpush.msrb.mxu0 %v403_v11  ;;  %858 = vmatpush.msra.mxu1 %v432_v12  ;;  %v1527_v11 = vld [vmem:[%s2631_s1 + $0x328] sm:$0xff] }
  0x83   : > { %1022 = vmatpush.msra.mxu2 %v1535_v13  ;;  %1087 = vmatpush.msra.mxu3 %v1551_v14  ;;  %v1543_v12 = vld [vmem:[%s2631_s1 + $0x3a8] sm:$0xff]  ;;  %v1560_v13 = vld [vmem:[%s2631_s1 + $0x430] sm:$0xff] }
  0x84   : > { %807 = vmatpush.msrb.mxu0 %v402_v15  ;;  %859 = vmatpush.msra.mxu1 %v431_v16  ;;  %v2259_v14 = vld [vmem:[#allocation2 + $0x69] sm:$0xff] }
  0x85   : > { %616 = vmatmul.f32.gmra.mxu1 %v2115_v20  ;;  %681 = vmatmul.f32.gmra.mxu2 %v2117_v21  ;;  %v2261_v15 = vld [vmem:[#allocation2 + $0x6a] sm:$0xff] }
  0x86   : > { %746 = vmatmul.f32.gmra.mxu3 %v339_v22  ;;  %808 = vmatmul.f32.vlgmr.msrb.gmra.mxu0 %v354_v23  ;;  %v423_v16 = vld [vmem:[%s2631_s1 + $0x128] sm:$0xff]  ;;  %v1542_v22 = vld [vmem:[%s2631_s1 + $0x3a0] sm:$0xff] }
  0x87   : > { %1150 = vmatpush.msra.mxu0 %v1569_v24  ;;  %1023 = vmatpush.msra.mxu2 %v1534_v25  ;;  %v1559_v23 = vld [vmem:[%s2631_s1 + $0x428] sm:$0xff]  ;;  %v2279_v24 = vld [vmem:[#allocation2 + $0x79] sm:$0xff] }
  0x88   : > { %1088 = vmatpush.msra.mxu3 %v1550_v26  ;;  %860 = vmatpush.msra.mxu1 %v430_v27  ;;  %v2281_v25 = vld [vmem:[#allocation2 + $0x7a] sm:$0xff] }
  0x89   : > { %1151 = vmatpush.msra.mxu0 %v1568_v28  ;;  %1024 = vmatpush.msra.mxu2 %v1533_v29  ;;  %v422_v26 = vld [vmem:[%s2631_s1 + $0x120] sm:$0xff]  ;;  %v1525_v27 = vld [vmem:[%s2631_s1 + $0x318] sm:$0xff] }
  0x8a   : > { %1089 = vmatpush.msra.mxu3 %v1549_v30  ;;  %861 = vmatpush.msra.mxu1 %v429_v31  ;;  %v1541_v28 = vld [vmem:[%s2631_s1 + $0x398] sm:$0xff]  ;;  %v1558_v29 = vld [vmem:[%s2631_s1 + $0x420] sm:$0xff] }
  0x8b   : > { %1152 = vmatpush.msra.mxu0 %v1567_v32  ;;  %1025 = vmatpush.msra.mxu2 %v1532_v33  ;;  %v2299_v30 = vld [vmem:[#allocation2 + $0x81] sm:$0xff]  ;;  %v421_v32 = vld [vmem:[%s2631_s1 + $0x118] sm:$0xff]  ;;  %v1524_v33 = vld [vmem:[%s2631_s1 + $0x310] sm:$0xff] }
  0x8c   : > { %1090 = vmatpush.msra.mxu3 %v1548_v34  ;;  %862 = vmatpush.msra.mxu1 %v428_v43  ;;  %v2301_v31 = vld [vmem:[#allocation2 + $0x82] sm:$0xff]  ;;  %v1540_v34 = vld [vmem:[%s2631_s1 + $0x390] sm:$0xff] }
  0x8d   : > { %619 = vmatmul.f32.gmra.mxu1 %v2154_v35  ;;  %684 = vmatmul.f32.gmra.mxu2 %v2156_v36  ;;  %v420_v43 = vld [vmem:[%s2631_s1 + $0x110] sm:$0xff] }
  0x8e   : > { %749 = vmatmul.f32.gmra.mxu3 %v1875_v55  ;;  %811 = vmatmul.f32.gmra.mxu0 %v355_v40  ;;  %v1564_v55 = vld [vmem:[%s2631_s1 + $0x450] sm:$0xff]  ;;  %v1557_v40 = vld [vmem:[%s2631_s1 + $0x418] sm:$0xff] }
  0x8f   : > { %1153 = vmatpush.msra.mxu0 %v1566_v41  ;;  %1026 = vmatpush.msra.mxu2 %v1531_v44  ;;  %v2319_v41 = vld [vmem:[#allocation2 + $0x91] sm:$0xff]  ;;  %v1523_v44 = vld [vmem:[%s2631_s1 + $0x308] sm:$0xff] }
  0x90   : > { %1091 = vmatpush.msra.mxu3 %v1547_v45  ;;  %863 = vmatpush.msra.mxu1 %v427_v51  ;;  %v1539_v45 = vld [vmem:[%s2631_s1 + $0x388] sm:$0xff]  ;;  %v2341_v51 = vld [vmem:[#allocation2 + $0x9a] sm:$0xff] }
  0x91   : > { %1154 = vmatpush.msra.mxu0 %v1565_v42  ;;  %1027 = vmatpush.msra.mxu2 %v1530_v52  ;;  %v2321_v42 = vld [vmem:[#allocation2 + $0x92] sm:$0xff] }
  0x92   : > { %1092 = vmatpush.msra.mxu3 %v1546_v53  ;;  %864 = vmatpush.msra.mxu1 %v426_v57  ;;  %v419_v53 = vld [vmem:[%s2631_s1 + $0x108] sm:$0xff]  ;;  %v1538_v57 = vld [vmem:[%s2631_s1 + $0x380] sm:$0xff] }
  0x93   : > { %1155 = vmatpush.msra.mxu0 %v1564_v55  ;;  %1028 = vmatpush.msra.mxu2 %v1529_v58  ;;  %v2339_v55 = vld [vmem:[#allocation2 + $0x99] sm:$0xff]  ;;  %v1555_v58 = vld [vmem:[%s2631_s1 + $0x408] sm:$0xff] }
  0x94   : > { %1093 = vmatpush.msra.mxu3 %v1545_v59  ;;  %865 = vmatpush.msra.mxu1 %v425_v4  ;;  %v2361_v59 = vld [vmem:[#allocation2 + $0xa9] sm:$0xff] }
  0x95   : > { %622 = vmatmul.f32.gmra.mxu1 %v2179_v49  ;;  %687 = vmatmul.f32.gmra.mxu2 %v2181_v50 }
  0x96   : > { %752 = vmatmul.f32.gmra.mxu3 %v1953_v17  ;;  %814 = vmatmul.f32.gmra.mxu0 %v2069_v62  ;;  %v1563_v17 = vld [vmem:[%s2631_s1 + $0x448] sm:$0xff]  ;;  %v2219_v62 = vld [vmem:[#allocation2 + $0x51] sm:$0xff] }
  0x97   : > { %1156 = vmatpush.msra.mxu0 %v1563_v17  ;;  %1029 = vmatpush.msra.mxu2 %v1528_v5  ;;  %v1522_v17 = vld [vmem:[%s2631_s1 + $0x300] sm:$0xff] }
  0x98   : > { %1094 = vmatpush.msra.mxu3 %v1544_v6  ;;  %866 = vmatpush.msra.mxu1 %v424_v10 }
  0x99   : > { %1157 = vmatpush.msra.mxu0 %v1562_v60  ;;  %1030 = vmatpush.msra.mxu2 %v1527_v11  ;;  %v2363_v60 = vld [vmem:[#allocation2 + $0xaa] sm:$0xff]  ;;  %v1554_v11 = vld [vmem:[%s2631_s1 + $0x400] sm:$0xff] }
  0x9a   : > { %1095 = vmatpush.msra.mxu3 %v1543_v12  ;;  %867 = vmatpush.msra.mxu1 %v423_v16  ;;  %v2381_v12 = vld [vmem:[#allocation2 + $0xb1] sm:$0xff] }
  0x9b   : > { %1158 = vmatpush.msra.mxu0 %v1561_v7  ;;  %v418_v7 = vld [vmem:[%s2631_s1 + $0x100] sm:$0xff] }
  0x9c   : > { %1096 = vmatpush.msra.mxu3 %v1542_v22  ;;  %868 = vmatpush.msra.mxu1 %v422_v26  ;;  %v2395_v26 = vld [vmem:[#allocation2 + $0xc1] sm:$0xff] }
  0x9d   : > { %625 = vmatmul.f32.gmra.mxu1 %v2199_v54  ;;  %690 = vmatmul.f32.gmra.mxu2 %v2201_v56 }
  0x9e   : > { %755 = vmatmul.f32.gmra.mxu3 %v2010_v37  ;;  %817 = vmatmul.f32.gmra.mxu0 %v2115_v20  ;;  %v1526_v20 = vld [vmem:[%s2631_s1 + $0x320] sm:$0xff] }
  0x9f   : > { %1159 = vmatpush.msra.mxu0 %v1560_v13  ;;  %1031 = vmatpush.msra.mxu2 %v1526_v20  ;;  %v2383_v13 = vld [vmem:[#allocation2 + $0xb2] sm:$0xff] }
  0xa0   : > { %1097 = vmatpush.msra.mxu3 %v1541_v28  ;;  %869 = vmatpush.msra.mxu1 %v421_v32 }
  0xa1   : > { %1160 = vmatpush.msra.mxu0 %v1559_v23  ;;  %1032 = vmatpush.msra.mxu2 %v1525_v27  ;;  %v2397_v27 = vld [vmem:[#allocation2 + $0xc2] sm:$0xff] }
  0xa2   : > { %1098 = vmatpush.msra.mxu3 %v1540_v34  ;;  %870 = vmatpush.msra.mxu1 %v420_v43  ;;  %v2409_v34 = vld [vmem:[#allocation2 + $0xc9] sm:$0xff] }
  0xa3   : > { %1161 = vmatpush.msra.mxu0 %v1558_v29  ;;  %1033 = vmatpush.msra.mxu2 %v1524_v33 }
  0xa4   : > { %1099 = vmatpush.msra.mxu3 %v1539_v45  ;;  %871 = vmatpush.msra.mxu1 %v419_v53 }
  0xa5   : > { %628 = vmatmul.f32.gmra.mxu1 %v2219_v62  ;;  %693 = vmatmul.f32.gmra.mxu2 %v2221_v3 }
  0xa6   : > { %758 = vmatmul.f32.gmra.mxu3 %v2067_v61  ;;  %820 = vmatmul.f32.gmra.mxu0 %v2154_v35 }
  0xa7   : > { %1162 = vmatpush.msra.mxu0 %v1557_v40  ;;  %1034 = vmatpush.msra.mxu2 %v1523_v44  ;;  %v2411_v40 = vld [vmem:[#allocation2 + $0xca] sm:$0xff] }
  0xa8   : > { %1100 = vmatpush.msra.mxu3 %v1538_v57  ;;  %872 = vmatpush.msra.mxu1 %v418_v7  ;;  %v371_v7 = vld [vmem:[#allocation2 + $0xa] sm:$0xff] }
  0xa9   : > { %1035 = vmatpush.msra.mxu2 %v1522_v17 }
  0xad   : > { %631 = vmatmul.f32.gmra.mxu1 %v2239_v8  ;;  %696 = vmatmul.f32.gmra.mxu2 %v2241_v9 }
  0xae   : > { %761 = vmatmul.f32.gmra.mxu3 %v1848_v46  ;;  %823 = vmatmul.f32.gmra.mxu0 %v2179_v49 }
  0xb5   : > { %634 = vmatmul.f32.gmra.mxu1 %v2259_v14  ;;  %699 = vmatmul.f32.gmra.mxu2 %v2261_v15 }
  0xb6   : > { %764 = vmatmul.f32.gmra.mxu3 %v1901_v0  ;;  %826 = vmatmul.f32.gmra.mxu0 %v2199_v54 }
  0xbd   : > { %637 = vmatmul.f32.gmra.mxu1 %v2279_v24  ;;  %702 = vmatmul.f32.gmra.mxu2 %v2281_v25 }
  0xbe   : > { %767 = vmatmul.f32.gmra.mxu3 %v1955_v18  ;;  %829 = vmatmul.f32.gmra.mxu0 %v2219_v62 }
  0xc5   : > { %640 = vmatmul.f32.gmra.mxu1 %v2299_v30  ;;  %705 = vmatmul.f32.gmra.mxu2 %v2301_v31 }
  0xc6   : > { %770 = vmatmul.f32.gmra.mxu3 %v2012_v38  ;;  %832 = vmatmul.f32.gmra.mxu0 %v2239_v8 }
  0xcd   : > { %643 = vmatmul.f32.gmra.mxu1 %v2319_v41  ;;  %708 = vmatmul.f32.gmra.mxu2 %v2321_v42 }
  0xce   : > { %773 = vmatmul.f32.gmra.mxu3 %v1850_v47  ;;  %835 = vmatmul.f32.gmra.mxu0 %v2259_v14  ;;  %v1556_v47 = vld [vmem:[%s2631_s1 + $0x410] sm:$0xff] }
  0xcf   : > { %1163 = vmatpush.msra.mxu0 %v1556_v47  ;;  %v370_v47 = vld [vmem:[#allocation2 + $0x2] sm:$0xff] }
  0xd1   : > { %1164 = vmatpush.msra.mxu0 %v1555_v58 }
  0xd3   : > { %v2343_v52 = vpop.f32.mrf.mxu1  ;;  %1165 = vmatpush.msra.mxu0 %v1554_v11 }
  0xd5   : > { %646 = vmatmul.f32.gmra.mxu1 %v2339_v55  ;;  %711 = vmatmul.f32.gmra.mxu2 %v2341_v51 }
  0xd6   : > { %776 = vmatmul.f32.gmra.mxu3 %v1899_v63  ;;  %838 = vmatmul.f32.gmra.mxu0 %v2279_v24 }
  0xd8   : > { %v549_v6 = vpop.f32.mrf.mxu0 }
  0xda   : > { %v2365_v4 = vpop.f32.mrf.mxu2  ;;  %v2367_v5 = vpop.f32.mrf.mxu3 }
  0xdd   : > { %649 = vmatmul.f32.gmra.mxu1 %v2361_v59  ;;  %714 = vmatmul.f32.gmra.mxu2 %v2363_v60  ;;  %v2374_v10 = vpop.f32.mrf.mxu1 }
  0xde   : > { %779 = vmatmul.f32.gmra.mxu3 %v1957_v19  ;;  %841 = vmatmul.f32.gmra.mxu0 %v2299_v30 }
  0xe2   : > { %v2385_v16 = vpop.f32.mrf.mxu2 }
  0xe3   : > { %v2387_v20 = vpop.f32.mrf.mxu3 }
  0xe5   : > { %652 = vmatmul.f32.gmra.mxu1 %v2381_v12  ;;  %717 = vmatmul.f32.gmra.mxu2 %v2383_v13  ;;  %v552_v22 = vpop.f32.mrf.mxu0 }
  0xe6   : > { %782 = vmatmul.f32.gmra.mxu3 %v2014_v39  ;;  %844 = vmatmul.f32.gmra.mxu0 %v2319_v41  ;;  %v2393_v23 = vpop.f32.mrf.mxu1 }
  0xec   : > { %v2399_v28 = vpop.f32.mrf.mxu2 }
  0xed   : > { %655 = vmatmul.f32.gmra.mxu1 %v2395_v26  ;;  %720 = vmatmul.f32.gmra.mxu2 %v2397_v27  ;;  %v2403_v29 = vpop.f32.mrf.mxu3 }
  0xee   : > { %2635 = vst [vmem:[#allocation6_spill] sm:$0xff] %v2403_v29  ;;  %785 = vmatmul.f32.gmra.mxu3 %v1852_v48  ;;  %847 = vmatmul.f32.gmra.mxu0 %v2339_v55 }
  0xef   : > { %v555_v32 = vpop.f32.mrf.mxu0 }
  0xf0   : > { %v2407_v33 = vpop.f32.mrf.mxu1 }
  0xf5   : > { %658 = vmatmul.f32.gmra.mxu1 %v2409_v34  ;;  %723 = vmatmul.f32.gmra.mxu2 %v2411_v40 }
  0xf6   : > { %788 = vmatmul.f32.gmra.mxu3 %v1903_v1  ;;  %850 = vmatmul.f32.gmra.mxu0 %v2361_v59  ;;  %v2417_v43 = vpop.f32.mrf.mxu2 }
  0xf7   : > { %v2419_v48 = vpop.f32.mrf.mxu3 }
  0xf9   : > { %v558_v44 = vpop.f32.mrf.mxu0 }
  0xfa   : > { %v614_v45 = vpop.f32.mrf.mxu1 }
  0xfb   : > { %v615_v53 = vadd.f32 %v614_v45, %v549_v6 }
  0xfd   : > { %873 = vmatmul.f32.vlgmr.msra.gmra.mxu1 %v370_v47  ;;  %1036 = vmatmul.f32.vlgmr.msra.gmra.mxu2 %v2010_v37 }
  0xfe   : > { %853 = vmatmul.f32.gmra.mxu0 %v2381_v12  ;;  %1101 = vmatmul.f32.vlgmr.msra.gmra.mxu3 %v2154_v35 }
 0x100   : > { %v679_v17 = vpop.f32.mrf.mxu2 }
 0x101   : > { %v680_v57 = vadd.f32 %v679_v17, %v615_v53  ;;  %v744_v1 = vpop.f32.mrf.mxu3 }
 0x102   : > { %v617_v58 = vpop.f32.mrf.mxu1 }
 0x103   : > { %v2424_v11 = vadd.f32 %v744_v1, %v680_v57  ;;  %v2426_v29 = vpop.f32.mrf.mxu0  ;;  %v618_v37 = vadd.f32 %v617_v58, %v552_v22 }
 0x105   : > { %876 = vmatmul.f32.gmra.mxu1 %v371_v7  ;;  %1039 = vmatmul.f32.gmra.mxu2 %v2067_v61 }
 0x106   : > { %1104 = vmatmul.f32.gmra.mxu3 %v2179_v49  ;;  %1166 = vmatmul.f32.vlgmr.msra.gmra.mxu0 %v2156_v36 }
 0x108   : > { %v682_v47 = vpop.f32.mrf.mxu2 }
 0x109   : > { %v683_v35 = vadd.f32 %v682_v47, %v618_v37  ;;  %v747_v6 = vpop.f32.mrf.mxu3 }
 0x10a   : > { %v620_v45 = vpop.f32.mrf.mxu1 }
 0x10b   : > { %v2431_v53 = vadd.f32 %v747_v6, %v683_v35  ;;  %v2433_v17 = vpop.f32.mrf.mxu0  ;;  %v621_v61 = vadd.f32 %v620_v45, %v555_v32 }
 0x10d   : > { %879 = vmatmul.f32.gmra.mxu1 %v2071_v2  ;;  %1042 = vmatmul.f32.gmra.mxu2 %v1848_v46 }
 0x10e   : > { %1107 = vmatmul.f32.gmra.mxu3 %v2199_v54  ;;  %1169 = vmatmul.f32.gmra.mxu0 %v2181_v50 }
 0x110   : > { %v685_v49 = vpop.f32.mrf.mxu2 }
 0x111   : > { %v686_v57 = vadd.f32 %v685_v49, %v621_v61  ;;  %v750_v22 = vpop.f32.mrf.mxu3 }
 0x112   : > { %v623_v1 = vpop.f32.mrf.mxu1 }
 0x113   : > { %v2439_v58 = vadd.f32 %v750_v22, %v686_v57  ;;  %v2441_v7 = vpop.f32.mrf.mxu0  ;;  %v624_v46 = vadd.f32 %v623_v1, %v558_v44  ;;  %v929_v57 = vld [vmem:[#allocation2 + $0x78] sm:$0xff] }
 0x115   : > { %882 = vmatmul.f32.gmra.mxu1 %v2117_v21  ;;  %1045 = vmatmul.f32.gmra.mxu2 %v1901_v0 }
 0x116   : > { %1110 = vmatmul.f32.gmra.mxu3 %v2219_v62  ;;  %1172 = vmatmul.f32.gmra.mxu0 %v2201_v56 }
 0x118   : > { %v688_v2 = vpop.f32.mrf.mxu2 }
 0x119   : > { %v689_v54 = vadd.f32 %v688_v2, %v624_v46  ;;  %v753_v32 = vpop.f32.mrf.mxu3 }
 0x11a   : > { %v626_v37 = vpop.f32.mrf.mxu1 }
 0x11b   : > { %v2447_v47 = vadd.f32 %v753_v32, %v689_v54  ;;  %v2449_v35 = vpop.f32.mrf.mxu0  ;;  %v627_v0 = vadd.f32 %v626_v37, %v2343_v52 }
 0x11d   : > { %885 = vmatmul.f32.gmra.mxu1 %v2156_v36  ;;  %1048 = vmatmul.f32.gmra.mxu2 %v1955_v18 }
 0x11e   : > { %1113 = vmatmul.f32.gmra.mxu3 %v2239_v8  ;;  %1175 = vmatmul.f32.gmra.mxu0 %v2221_v3 }
 0x120   : > { %v691_v21 = vpop.f32.mrf.mxu2 }
 0x121   : > { %v692_v62 = vadd.f32 %v691_v21, %v627_v0  ;;  %v756_v44 = vpop.f32.mrf.mxu3 }
 0x122   : > { %v629_v6 = vpop.f32.mrf.mxu1 }
 0x123   : > { %v2456_v45 = vadd.f32 %v756_v44, %v692_v62  ;;  %v2458_v61 = vpop.f32.mrf.mxu0  ;;  %v630_v18 = vadd.f32 %v629_v6, %v2374_v10 }
 0x125   : > { %888 = vmatmul.f32.gmra.mxu1 %v2181_v50  ;;  %1051 = vmatmul.f32.gmra.mxu2 %v2012_v38 }
 0x126   : > { %1116 = vmatmul.f32.gmra.mxu3 %v2259_v14  ;;  %1178 = vmatmul.f32.gmra.mxu0 %v2241_v9 }
 0x128   : > { %v694_v36 = vpop.f32.mrf.mxu2 }
 0x129   : > { %v695_v8 = vadd.f32 %v694_v36, %v630_v18  ;;  %v759_v52 = vpop.f32.mrf.mxu3 }
 0x12a   : > { %v632_v49 = vpop.f32.mrf.mxu1 }
 0x12b   : > { %v2465_v22 = vadd.f32 %v759_v52, %v695_v8  ;;  %v2467_v1 = vpop.f32.mrf.mxu0  ;;  %v633_v38 = vadd.f32 %v632_v49, %v2393_v23  ;;  %v933_v8 = vld [vmem:[#allocation2 + $0xa8] sm:$0xff] }
 0x12d   : > { %891 = vmatmul.f32.gmra.mxu1 %v2201_v56  ;;  %1054 = vmatmul.f32.gmra.mxu2 %v929_v57 }
 0x12e   : > { %1119 = vmatmul.f32.gmra.mxu3 %v2279_v24  ;;  %1181 = vmatmul.f32.gmra.mxu0 %v2261_v15 }
 0x130   : > { %v697_v50 = vpop.f32.mrf.mxu2 }
 0x131   : > { %v698_v14 = vadd.f32 %v697_v50, %v633_v38  ;;  %v762_v10 = vpop.f32.mrf.mxu3  ;;  %v934_v50 = vld [vmem:[#allocation2 + $0xb0] sm:$0xff] }
 0x132   : > { %v635_v46 = vpop.f32.mrf.mxu1 }
 0x133   : > { %v2473_v2 = vadd.f32 %v762_v10, %v698_v14  ;;  %v2475_v54 = vpop.f32.mrf.mxu0  ;;  %v636_v56 = vadd.f32 %v635_v46, %v2407_v33 }
 0x135   : > { %894 = vmatmul.f32.gmra.mxu1 %v2221_v3  ;;  %1057 = vmatmul.f32.gmra.mxu2 %v1899_v63 }
 0x136   : > { %1122 = vmatmul.f32.gmra.mxu3 %v2299_v30  ;;  %1184 = vmatmul.f32.gmra.mxu0 %v2281_v25 }
 0x138   : > { %v700_v24 = vpop.f32.mrf.mxu2 }
 0x139   : > { %v701_v23 = vadd.f32 %v700_v24, %v636_v56  ;;  %v765_v32 = vpop.f32.mrf.mxu3 }
 0x13a   : > { %v638_v37 = vpop.f32.mrf.mxu1 }
 0x13b   : > { %v2482_v0 = vadd.f32 %v765_v32, %v701_v23  ;;  %v2484_v21 = vpop.f32.mrf.mxu0  ;;  %v639_v63 = vadd.f32 %v638_v37, %v2365_v4  ;;  %v935_v23 = vld [vmem:[#allocation2 + $0xc0] sm:$0xff] }
 0x13d   : > { %897 = vmatmul.f32.gmra.mxu1 %v2241_v9  ;;  %1060 = vmatmul.f32.gmra.mxu2 %v1957_v19 }
 0x13e   : > { %1125 = vmatmul.f32.gmra.mxu3 %v2319_v41  ;;  %1187 = vmatmul.f32.gmra.mxu0 %v2301_v31 }
 0x140   : > { %v703_v3 = vpop.f32.mrf.mxu2 }
 0x141   : > { %v704_v30 = vadd.f32 %v703_v3, %v639_v63  ;;  %v768_v33 = vpop.f32.mrf.mxu3 }
 0x142   : > { %v641_v62 = vpop.f32.mrf.mxu1 }
 0x143   : > { %v769_v44 = vadd.f32 %v768_v33, %v704_v30  ;;  %v833_v6 = vpop.f32.mrf.mxu0  ;;  %v642_v19 = vadd.f32 %v641_v62, %v2385_v16  ;;  %v936_v33 = vld [vmem:[#allocation2 + $0xc8] sm:$0xff] }
 0x145   : > { %v2491_v18 = vadd.f32 %v833_v6, %v769_v44  ;;  %900 = vmatmul.f32.gmra.mxu1 %v2261_v15  ;;  %1063 = vmatmul.f32.gmra.mxu2 %v2014_v39 }
 0x146   : > { %1128 = vmatmul.f32.gmra.mxu3 %v2339_v55  ;;  %1190 = vmatmul.f32.gmra.mxu0 %v2321_v42 }
 0x148   : > { %v706_v9 = vpop.f32.mrf.mxu2 }
 0x149   : > { %v707_v41 = vadd.f32 %v706_v9, %v642_v19  ;;  %v771_v4 = vpop.f32.mrf.mxu3 }
 0x14a   : > { %v644_v36 = vpop.f32.mrf.mxu1 }
 0x14b   : > { %v772_v52 = vadd.f32 %v771_v4, %v707_v41  ;;  %v836_v49 = vpop.f32.mrf.mxu0  ;;  %v645_v39 = vadd.f32 %v644_v36, %v2399_v28  ;;  %v937_v41 = vld [vmem:[#allocation2 + $0xd8] sm:$0xff] }
 0x14d   : > { %v2498_v57 = vadd.f32 %v836_v49, %v772_v52  ;;  %903 = vmatmul.f32.gmra.mxu1 %v2281_v25  ;;  %1066 = vmatmul.f32.gmra.mxu2 %v933_v8  ;;  %v953_v8 = vld [vmem:[#allocation2 + $0xd9] sm:$0xff] }
 0x14e   : > { %1131 = vmatmul.f32.gmra.mxu3 %v2361_v59  ;;  %1193 = vmatmul.f32.gmra.mxu0 %v2341_v51 }
 0x150   : > { %v709_v15 = vpop.f32.mrf.mxu2 }
 0x151   : > { %v710_v55 = vadd.f32 %v709_v15, %v645_v39  ;;  %v774_v16 = vpop.f32.mrf.mxu3  ;;  %v938_v15 = vld [vmem:[#allocation2 + $0xe0] sm:$0xff] }
 0x152   : > { %v647_v38 = vpop.f32.mrf.mxu1 }
 0x153   : > { %v775_v14 = vadd.f32 %v774_v16, %v710_v55  ;;  %v839_v10 = vpop.f32.mrf.mxu0  ;;  %v648_v25 = vadd.f32 %v647_v38, %v2417_v43  ;;  %v954_v38 = vld [vmem:[#allocation2 + $0xe1] sm:$0xff] }
 0x155   : > { %v2504_v46 = vadd.f32 %v839_v10, %v775_v14  ;;  %906 = vmatmul.f32.gmra.mxu1 %v2301_v31  ;;  %1069 = vmatmul.f32.gmra.mxu2 %v934_v50  ;;  %v969_v50 = vld [vmem:[#allocation2 + $0xda] sm:$0xff] }
 0x156   : > { %1134 = vmatmul.f32.gmra.mxu3 %v2381_v12  ;;  %1196 = vmatmul.f32.gmra.mxu0 %v2363_v60 }
 0x158   : > { %v712_v59 = vpop.f32.mrf.mxu2 }
 0x159   : > { %v713_v28 = vadd.f32 %v712_v59, %v648_v25  ;;  %v777_v56 = vpop.f32.mrf.mxu3 }
 0x15a   : > { %v650_v24 = vpop.f32.mrf.mxu1 }
 0x15b   : > { %v778_v32 = vadd.f32 %v777_v56, %v713_v28  ;;  %v842_v37 = vpop.f32.mrf.mxu0  ;;  %v651_v31 = vadd.f32 %v650_v24, %v2367_v5  ;;  %v970_v24 = vld [vmem:[#allocation2 + $0xe2] sm:$0xff] }
 0x15d   : > { %v2510_v63 = vadd.f32 %v842_v37, %v778_v32  ;;  %909 = vmatmul.f32.gmra.mxu1 %v2321_v42  ;;  %1072 = vmatmul.f32.gmra.mxu2 %v935_v23 }
 0x15e   : > { %1137 = vmatmul.f32.gmra.mxu3 %v2395_v26  ;;  %1199 = vmatmul.f32.gmra.mxu0 %v2383_v13 }
 0x160   : > { %v715_v12 = vpop.f32.mrf.mxu2 }
 0x161   : > { %v716_v43 = vadd.f32 %v715_v12, %v651_v31  ;;  %v780_v3 = vpop.f32.mrf.mxu3 }
 0x162   : > { %v653_v30 = vpop.f32.mrf.mxu1 }
 0x163   : > { %v781_v62 = vadd.f32 %v780_v3, %v716_v43  ;;  %v845_v44 = vpop.f32.mrf.mxu0  ;;  %v654_v42 = vadd.f32 %v653_v30, %v2387_v20  ;;  %v2538_v30 = vld [vmem:[%s2632_s2] ss:$0 sm:$0xff] }
 0x165   : > { %v2516_v6 = vadd.f32 %v845_v44, %v781_v62  ;;  %912 = vmatmul.f32.gmra.mxu1 %v2341_v51  ;;  %1075 = vmatmul.f32.gmra.mxu2 %v936_v33  ;;  %v2636_v51 = vld [vmem:[#allocation6_spill] sm:$0xff]  ;;  %v2543_v62 = vld [vmem:[%s2633_s3] ss:$0 sm:$0xff] }
 0x166   : > { %1140 = vmatmul.f32.gmra.mxu3 %v2409_v34  ;;  %1202 = vmatmul.f32.gmra.mxu0 %v2397_v27 }
 0x168   : > { %v718_v26 = vpop.f32.mrf.mxu2 }
 0x169   : > { %v719_v5 = vadd.f32 %v718_v26, %v654_v42  ;;  %v783_v19 = vpop.f32.mrf.mxu3  ;;  %v813_v42 = vadd.f32 %v2433_v17, %v2431_v53 }
 0x16a   : > { %v656_v9 = vpop.f32.mrf.mxu1 }
 0x16b   : > { %v784_v4 = vadd.f32 %v783_v19, %v719_v5  ;;  %v848_v36 = vpop.f32.mrf.mxu0  ;;  %v657_v27 = vadd.f32 %v656_v9, %v2636_v51 }
 0x16d   : > { %v2522_v52 = vadd.f32 %v848_v36, %v784_v4  ;;  %915 = vmatmul.f32.gmra.mxu1 %v2363_v60  ;;  %1078 = vmatmul.f32.gmra.mxu2 %v937_v41 }
 0x16e   : > { %1143 = vmatmul.f32.gmra.mxu3 %v953_v8  ;;  %1205 = vmatmul.f32.gmra.mxu0 %v2411_v40 }
 0x170   : > { %v721_v34 = vpop.f32.mrf.mxu2 }
 0x171   : > { %v722_v20 = vadd.f32 %v721_v34, %v657_v27  ;;  %v786_v49 = vpop.f32.mrf.mxu3 }
 0x172   : > { %v659_v39 = vpop.f32.mrf.mxu1 }
 0x173   : > { %v787_v55 = vadd.f32 %v786_v49, %v722_v20  ;;  %v851_v16 = vpop.f32.mrf.mxu0  ;;  %v660_v60 = vadd.f32 %v659_v39, %v2419_v48  ;;  %v816_v20 = vadd.f32 %v2441_v7, %v2439_v58 }
 0x175   : > { %v2527_v14 = vadd.f32 %v851_v16, %v787_v55  ;;  %918 = vmatmul.f32.gmra.mxu1 %v2383_v13  ;;  %1081 = vmatmul.f32.gmra.mxu2 %v938_v15  ;;  %v810_v13 = vadd.f32 %v2426_v29, %v2424_v11 }
 0x176   : > { %1146 = vmatmul.f32.gmra.mxu3 %v954_v38  ;;  %1208 = vmatmul.f32.gmra.mxu0 %v969_v50 }
 0x178   : > { %v724_v40 = vpop.f32.mrf.mxu2 }
 0x179   : > { %v725_v10 = vadd.f32 %v724_v40, %v660_v60  ;;  %v789_v25 = vpop.f32.mrf.mxu3 }
 0x17a   : > { %v874_v59 = vpop.f32.mrf.mxu1 }
 0x17b   : > { %v790_v28 = vadd.f32 %v789_v25, %v725_v10  ;;  %v854_v56 = vpop.f32.mrf.mxu0  ;;  %v875_v3 = vadd.f32 %v874_v59, %v810_v13  ;;  %v819_v10 = vadd.f32 %v2449_v35, %v2447_v47 }
 0x17d   : > { %v2531_v23 = vadd.f32 %v854_v56, %v790_v28 }
 0x17e   : > { %1211 = vmatmul.f32.gmra.mxu0 %v970_v24 }
 0x180   : > { %v1037_v32 = vpop.f32.mrf.mxu2 }
 0x181   : > { %v1102_v37 = vpop.f32.mrf.mxu3 }
 0x182   : > { %v1103_v31 = vadd.f32 %v1102_v37, %v1037_v32  ;;  %v877_v12 = vpop.f32.mrf.mxu1 }
 0x183   : > { %v1167_v43 = vpop.f32.mrf.mxu0  ;;  %v878_v41 = vadd.f32 %v877_v12, %v813_v42  ;;  %v822_v12 = vadd.f32 %v2458_v61, %v2456_v45 }
 0x184   : > { %v1168_v48 = vadd.f32 %v1167_v43, %v1103_v31 }
 0x186   : > { %v1215_v33 = vadd.f32 %v1168_v48, %v875_v3 }
 0x188   : > { %v1235_v44 = vmul.f32 %v2538_v30, %v1215_v33  ;;  %v1040_v29 = vpop.f32.mrf.mxu2 }
 0x189   : > { %v1105_v11 = vpop.f32.mrf.mxu3 }
 0x18a   : > { %v1255_v26 = vadd.f32 %v2543_v62, %v1235_v44  ;;  %v1106_v5 = vadd.f32 %v1105_v11, %v1040_v29  ;;  %v880_v19 = vpop.f32.mrf.mxu1 }
 0x18b   : > { %v1170_v9 = vpop.f32.mrf.mxu0  ;;  %v881_v15 = vadd.f32 %v880_v19, %v816_v20  ;;  %v828_v20 = vadd.f32 %v2475_v54, %v2473_v2 }
 0x18c   : > { %v1271_v4 = vmax.f32 %v1255_v26, 0.0  ;;  %v1171_v36 = vadd.f32 %v1170_v9, %v1106_v5  ;;  %v825_v5 = vadd.f32 %v2467_v1, %v2465_v22 }
 0x18e   : > { %1287 = vst [vmem:[%s1768_s10] sm:$0xff] %v1271_v4  ;;  %v1216_v8 = vadd.f32 %v1171_v36, %v878_v41 }
 0x190   : > { %v1236_v51 = vmul.f32 %v2538_v30, %v1216_v8  ;;  %v1043_v27 = vpop.f32.mrf.mxu2 }
 0x191   : > { %v1108_v34 = vpop.f32.mrf.mxu3 }
 0x192   : > { %v1256_v53 = vadd.f32 %v2543_v62, %v1236_v51  ;;  %v1109_v17 = vadd.f32 %v1108_v34, %v1043_v27  ;;  %v883_v49 = vpop.f32.mrf.mxu1 }
 0x193   : > { %v1173_v39 = vpop.f32.mrf.mxu0  ;;  %v884_v28 = vadd.f32 %v883_v49, %v819_v10 }
 0x194   : > { %v1272_v55 = vmax.f32 %v1256_v53, 0.0  ;;  %v1174_v16 = vadd.f32 %v1173_v39, %v1109_v17 }
 0x196   : > { %1288 = vst [vmem:[%s1768_s10 + $0x8] sm:$0xff] %v1272_v55  ;;  %v1217_v38 = vadd.f32 %v1174_v16, %v881_v15 }
 0x198   : > { %v1237_v50 = vmul.f32 %v2538_v30, %v1217_v38  ;;  %v1046_v60 = vpop.f32.mrf.mxu2 }
 0x199   : > { %v1111_v40 = vpop.f32.mrf.mxu3 }
 0x19a   : > { %v1257_v58 = vadd.f32 %v2543_v62, %v1237_v50  ;;  %v1112_v7 = vadd.f32 %v1111_v40, %v1046_v60  ;;  %v886_v25 = vpop.f32.mrf.mxu1  ;;  %v831_v60 = vadd.f32 %v2484_v21, %v2482_v0 }
 0x19b   : > { %v1176_v59 = vpop.f32.mrf.mxu0  ;;  %v887_v48 = vadd.f32 %v886_v25, %v822_v12 }
 0x19c   : > { %v1273_v56 = vmax.f32 %v1257_v58, 0.0  ;;  %v1177_v24 = vadd.f32 %v1176_v59, %v1112_v7 }
 0x19e   : > { %1289 = vst [vmem:[%s1768_s10 + $0x10] sm:$0xff] %v1273_v56  ;;  %v1218_v32 = vadd.f32 %v1177_v24, %v884_v28 }
 0x1a0   : > { %v1238_v37 = vmul.f32 %v2538_v30, %v1218_v32  ;;  %v1049_v13 = vpop.f32.mrf.mxu2 }
 0x1a1   : > { %v1114_v31 = vpop.f32.mrf.mxu3 }
 0x1a2   : > { %v1258_v47 = vadd.f32 %v2543_v62, %v1238_v37  ;;  %v1115_v35 = vadd.f32 %v1114_v31, %v1049_v13  ;;  %v889_v43 = vpop.f32.mrf.mxu1 }
 0x1a3   : > { %v1179_v3 = vpop.f32.mrf.mxu0  ;;  %v890_v41 = vadd.f32 %v889_v43, %v825_v5 }
 0x1a4   : > { %v1274_v33 = vmax.f32 %v1258_v47, 0.0  ;;  %v1180_v44 = vadd.f32 %v1179_v3, %v1115_v35 }
 0x1a6   : > { %1290 = vst [vmem:[%s1768_s10 + $0x18] sm:$0xff] %v1274_v33  ;;  %v1219_v29 = vadd.f32 %v1180_v44, %v887_v48 }
 0x1a8   : > { %v1239_v11 = vmul.f32 %v2538_v30, %v1219_v29  ;;  %v1052_v42 = vpop.f32.mrf.mxu2 }
 0x1a9   : > { %v1117_v26 = vpop.f32.mrf.mxu3 }
 0x1aa   : > { %v1259_v45 = vadd.f32 %v2543_v62, %v1239_v11  ;;  %v1118_v61 = vadd.f32 %v1117_v26, %v1052_v42  ;;  %v892_v19 = vpop.f32.mrf.mxu1 }
 0x1ab   : > { %v1182_v9 = vpop.f32.mrf.mxu0  ;;  %v893_v49 = vadd.f32 %v892_v19, %v828_v20 }
 0x1ac   : > { %v1275_v4 = vmax.f32 %v1259_v45, 0.0  ;;  %v1183_v36 = vadd.f32 %v1182_v9, %v1118_v61 }
 0x1ae   : > { %1291 = vst [vmem:[%s1768_s10 + $0x20] sm:$0xff] %v1275_v4  ;;  %v1220_v8 = vadd.f32 %v1183_v36, %v890_v41 }
 0x1b0   : > { %v1240_v51 = vmul.f32 %v2538_v30, %v1220_v8  ;;  %v1055_v27 = vpop.f32.mrf.mxu2 }
 0x1b1   : > { %v1120_v34 = vpop.f32.mrf.mxu3 }
 0x1b2   : > { %v1260_v22 = vadd.f32 %v2543_v62, %v1240_v51  ;;  %v1121_v1 = vadd.f32 %v1120_v34, %v1055_v27  ;;  %v895_v53 = vpop.f32.mrf.mxu1 }
 0x1b3   : > { %v1185_v17 = vpop.f32.mrf.mxu0  ;;  %v896_v58 = vadd.f32 %v895_v53, %v831_v60 }
 0x1b4   : > { %v1276_v39 = vmax.f32 %v1260_v22, 0.0  ;;  %v1186_v15 = vadd.f32 %v1185_v17, %v1121_v1 }
 0x1b6   : > { %1292 = vst [vmem:[%s1768_s10 + $0x28] sm:$0xff] %v1276_v39  ;;  %v1221_v55 = vadd.f32 %v1186_v15, %v893_v49 }
 0x1b8   : > { %v1241_v16 = vmul.f32 %v2538_v30, %v1221_v55  ;;  %v1058_v38 = vpop.f32.mrf.mxu2 }
 0x1b9   : > { %v1123_v50 = vpop.f32.mrf.mxu3 }
 0x1ba   : > { %v1261_v2 = vadd.f32 %v2543_v62, %v1241_v16  ;;  %v1124_v54 = vadd.f32 %v1123_v50, %v1058_v38  ;;  %v898_v40 = vpop.f32.mrf.mxu1 }
 0x1bb   : > { %v1188_v10 = vpop.f32.mrf.mxu0  ;;  %v899_v21 = vadd.f32 %v898_v40, %v2491_v18 }
 0x1bc   : > { %v1277_v7 = vmax.f32 %v1261_v2, 0.0  ;;  %v1189_v25 = vadd.f32 %v1188_v10, %v1124_v54 }
 0x1be   : > { %1293 = vst [vmem:[%s1768_s10 + $0x30] sm:$0xff] %v1277_v7  ;;  %v1222_v59 = vadd.f32 %v1189_v25, %v896_v58 }
 0x1c0   : > { %v1242_v28 = vmul.f32 %v2538_v30, %v1222_v59  ;;  %v1061_v56 = vpop.f32.mrf.mxu2 }
 0x1c1   : > { %v1126_v24 = vpop.f32.mrf.mxu3 }
 0x1c2   : > { %v1262_v32 = vadd.f32 %v2543_v62, %v1242_v28  ;;  %v1127_v37 = vadd.f32 %v1126_v24, %v1061_v56  ;;  %v901_v13 = vpop.f32.mrf.mxu1 }
 0x1c3   : > { %v1191_v0 = vpop.f32.mrf.mxu0  ;;  %v902_v11 = vadd.f32 %v901_v13, %v2498_v57 }
 0x1c4   : > { %v1278_v31 = vmax.f32 %v1262_v32, 0.0  ;;  %v1192_v12 = vadd.f32 %v1191_v0, %v1127_v37 }
 0x1c6   : > { %1294 = vst [vmem:[%s1768_s10 + $0x38] sm:$0xff] %v1278_v31  ;;  %v1223_v47 = vadd.f32 %v1192_v12, %v899_v21 }
 0x1c8   : > { %v1243_v35 = vmul.f32 %v2538_v30, %v1223_v47  ;;  %v1064_v43 = vpop.f32.mrf.mxu2 }
 0x1c9   : > { %v1129_v3 = vpop.f32.mrf.mxu3 }
 0x1ca   : > { %v1263_v48 = vadd.f32 %v2543_v62, %v1243_v35  ;;  %v1130_v33 = vadd.f32 %v1129_v3, %v1064_v43  ;;  %v904_v44 = vpop.f32.mrf.mxu1 }
 0x1cb   : > { %v1194_v29 = vpop.f32.mrf.mxu0  ;;  %v905_v36 = vadd.f32 %v904_v44, %v2504_v46 }
 0x1cc   : > { %v1279_v42 = vmax.f32 %v1263_v48, 0.0  ;;  %v1195_v26 = vadd.f32 %v1194_v29, %v1130_v33 }
 0x1ce   : > { %1295 = vst [vmem:[%s1768_s10 + $0x40] sm:$0xff] %v1279_v42  ;;  %v1224_v18 = vadd.f32 %v1195_v26, %v902_v11 }
 0x1d0   : > { %v1244_v5 = vmul.f32 %v2538_v30, %v1224_v18  ;;  %v1067_v45 = vpop.f32.mrf.mxu2 }
 0x1d1   : > { %v1132_v61 = vpop.f32.mrf.mxu3 }
 0x1d2   : > { %v1264_v19 = vadd.f32 %v2543_v62, %v1244_v5  ;;  %v1133_v9 = vadd.f32 %v1132_v61, %v1067_v45  ;;  %v907_v41 = vpop.f32.mrf.mxu1 }
 0x1d3   : > { %v1197_v4 = vpop.f32.mrf.mxu0  ;;  %v908_v49 = vadd.f32 %v907_v41, %v2510_v63 }
 0x1d4   : > { %v1280_v8 = vmax.f32 %v1264_v19, 0.0  ;;  %v1198_v51 = vadd.f32 %v1197_v4, %v1133_v9 }
 0x1d6   : > { %1296 = vst [vmem:[%s1768_s10 + $0x48] sm:$0xff] %v1280_v8  ;;  %v1225_v57 = vadd.f32 %v1198_v51, %v905_v36 }
 0x1d8   : > { %v1245_v27 = vmul.f32 %v2538_v30, %v1225_v57  ;;  %v1070_v34 = vpop.f32.mrf.mxu2 }
 0x1d9   : > { %v1135_v20 = vpop.f32.mrf.mxu3 }
 0x1da   : > { %v1265_v22 = vadd.f32 %v2543_v62, %v1245_v27  ;;  %v1136_v1 = vadd.f32 %v1135_v20, %v1070_v34  ;;  %v910_v53 = vpop.f32.mrf.mxu1 }
 0x1db   : > { %v1200_v17 = vpop.f32.mrf.mxu0  ;;  %v911_v54 = vadd.f32 %v910_v53, %v2516_v6 }
 0x1dc   : > { %v1281_v39 = vmax.f32 %v1265_v22, 0.0  ;;  %v1201_v15 = vadd.f32 %v1200_v17, %v1136_v1 }
 0x1de   : > { %1297 = vst [vmem:[%s1768_s10 + $0x50] sm:$0xff] %v1281_v39  ;;  %v1226_v46 = vadd.f32 %v1201_v15, %v908_v49 }
 0x1e0   : > { %v1246_v55 = vmul.f32 %v2538_v30, %v1226_v46  ;;  %v1073_v16 = vpop.f32.mrf.mxu2 }
 0x1e1   : > { %v1138_v38 = vpop.f32.mrf.mxu3 }
 0x1e2   : > { %v1266_v50 = vadd.f32 %v2543_v62, %v1246_v55  ;;  %v1139_v60 = vadd.f32 %v1138_v38, %v1073_v16  ;;  %v913_v58 = vpop.f32.mrf.mxu1 }
 0x1e3   : > { %v1203_v2 = vpop.f32.mrf.mxu0  ;;  %v914_v32 = vadd.f32 %v913_v58, %v2522_v52 }
 0x1e4   : > { %v1282_v40 = vmax.f32 %v1266_v50, 0.0  ;;  %v1204_v10 = vadd.f32 %v1203_v2, %v1139_v60 }
 0x1e6   : > { %1298 = vst [vmem:[%s1768_s10 + $0x58] sm:$0xff] %v1282_v40  ;;  %v1227_v63 = vadd.f32 %v1204_v10, %v911_v54 }
 0x1e8   : > { %v1247_v7 = vmul.f32 %v2538_v30, %v1227_v63  ;;  %v1076_v25 = vpop.f32.mrf.mxu2 }
 0x1e9   : > { %v1141_v59 = vpop.f32.mrf.mxu3 }
 0x1ea   : > { %v1267_v28 = vadd.f32 %v2543_v62, %v1247_v7  ;;  %v1142_v56 = vadd.f32 %v1141_v59, %v1076_v25  ;;  %v916_v0 = vpop.f32.mrf.mxu1 }
 0x1eb   : > { %v1206_v24 = vpop.f32.mrf.mxu0  ;;  %v917_v3 = vadd.f32 %v916_v0, %v2527_v14 }
 0x1ec   : > { %v1283_v37 = vmax.f32 %v1267_v28, 0.0  ;;  %v1207_v13 = vadd.f32 %v1206_v24, %v1142_v56 }
 0x1ee   : > { %1299 = vst [vmem:[%s1768_s10 + $0x60] sm:$0xff] %v1283_v37  ;;  %v1228_v6 = vadd.f32 %v1207_v13, %v914_v32 }
 0x1f0   : > { %v1248_v21 = vmul.f32 %v2538_v30, %v1228_v6  ;;  %v1079_v31 = vpop.f32.mrf.mxu2 }
 0x1f1   : > { %v1144_v12 = vpop.f32.mrf.mxu3 }
 0x1f2   : > { %v1268_v47 = vadd.f32 %v2543_v62, %v1248_v21  ;;  %v1145_v35 = vadd.f32 %v1144_v12, %v1079_v31  ;;  %v919_v11 = vpop.f32.mrf.mxu1 }
 0x1f3   : > { %v1209_v43 = vpop.f32.mrf.mxu0  ;;  %v920_v45 = vadd.f32 %v919_v11, %v2531_v23 }
 0x1f4   : > { %v1284_v48 = vmax.f32 %v1268_v47, 0.0  ;;  %v1210_v33 = vadd.f32 %v1209_v43, %v1145_v35 }
 0x1f6   : > { %1300 = vst [vmem:[%s1768_s10 + $0x68] sm:$0xff] %v1284_v48  ;;  %v1229_v52 = vadd.f32 %v1210_v33, %v917_v3 }
 0x1f8   : > { %v1249_v44 = vmul.f32 %v2538_v30, %v1229_v52  ;;  %v1082_v29 = vpop.f32.mrf.mxu2 }
 0x1f9   : > { %v1147_v42 = vpop.f32.mrf.mxu3 }
 0x1fa   : > { %v1269_v26 = vadd.f32 %v2543_v62, %v1249_v44  ;;  %v1148_v18 = vadd.f32 %v1147_v42, %v1082_v29 }
 0x1fb   : > { %v1212_v5 = vpop.f32.mrf.mxu0 }
 0x1fc   : > { %v1285_v61 = vmax.f32 %v1269_v26, 0.0  ;;  %v1213_v19 = vadd.f32 %v1212_v5, %v1148_v18 }
 0x1fe   : > { %1301 = vst [vmem:[%s1768_s10 + $0x70] sm:$0xff] %v1285_v61  ;;  %v1230_v14 = vadd.f32 %v1213_v19, %v920_v45 }
 0x200   : > { %v1250_v9 = vmul.f32 %v2538_v30, %v1230_v14 }
 0x202   : > { %v1270_v41 = vadd.f32 %v2543_v62, %v1250_v9 }
 0x204   : > { %v1286_v4 = vmax.f32 %v1270_v41, 0.0 }
 0x206   : > { %1302 = vst [vmem:[%s1768_s10 + $0x78] sm:$0xff] %v1286_v4 }
 0x207 PF: > { %s14_s19 = sadd.s32 1, %s1703_s19   ;;  %s2637_s15 = smov %s1695_s17 }
 0x208   : > { %p11_p7 = scmp.ge.s32.totalorder %s14_s19, 6   ;;  %s2638_s16 = smov %s1699_s18 }
 0x209   : > { %s2639_s17 = smov %s2642_s20  ;;  %s2640_s18 = smov %s2646_s21 }
 0x20a   :  { %13 = sbr.rel (!%p11_p7) target bundleno = 3 (0x3), region = 109 }
 0x20f   :  { %1341 = vsyncmov [#allocation3] }
 0x212   :  { %s1342_s10 = vpop.sfrf %1341 }
 0x213   :  { %p1572_p8 = scmp.ne.s32.totalorder %s1342_s10, 0 }
 0x215   :  { %1346 = shalt.err (%p1572_p8)  }

// kernel: basic_block_forward.3
= control target key start
LH: loop header
LB: loop body
LE: loop exit
PB: predicated region body
PF: predicated region fallthrough
CT: control target
= control target key end

     0   :  { %s2149_s27 = smov 0   ;;  %s2151_s28 = smov 0   ;;  %s3147_s0 = inlined_call_operand.vmem [shape: f32[2,18,1,1,18,128], index: 0, kind: input, shape index: {}]   ;;  %s3148_s1 = inlined_call_operand.vmem [shape: f32[3,384,128], index: 1, kind: input, shape index: {}]   ;;  %s3149_s2 = inlined_call_operand.vmem [shape: f32[1,128], index: 2, kind: input, shape index: {}]   ;;  %s3150_s3 = inlined_call_operand.vmem [shape: f32[1,128], index: 3, kind: input, shape index: {}]   ;;  %s3151_s4 = inlined_call_operand.vmem [shape: f32[2,16,16,128], index: 4, kind: input, shape index: {}]   ;;  %s3152_s5 = inlined_call_operand.vmem [shape: f32[128,128], index: 5, kind: input, shape index: {}]   ;;  %s3153_s6 = inlined_call_operand.vmem [shape: f32[1,128], index: 6, kind: input, shape index: {}]   ;;  %s3154_s7 = inlined_call_operand.vmem [shape: f32[1,128], index: 7, kind: input, shape index: {}]   ;;  %s3155_s8 = inlined_call_operand.vmem [shape: f32[2,16,16,128], index: 8, kind: output, shape index: {}]  }
   0x1   :  { %s2153_s29 = smov 0   ;;  %s2155_s30 = smov 0  }
   0x2   :  { %s2157_s9 = smov 0  }
   0x3 LB: > { %s33_s10 = sadd.s32 1, %s2094_s29  ;;  %s37_s11 = sadd.s32 1, %s2098_s30  ;;  %s2102_s9 = sphi %s2157_s9, %s18_s9   ;;  %s2098_s30 = sphi %s2155_s30, %s3159_s30   ;;  %s2094_s29 = sphi %s2153_s29, %s3158_s29   ;;  %s2090_s28 = sphi %s2151_s28, %s3157_s28   ;;  %s2086_s27 = sphi %s2149_s27, %s3156_s27  }
   0x4   : > { %p35_p0 = scmp.ge.s32.totalorder %s33_s10, 2  ;;  %p1866_p1 = scmp.ge.s32.totalorder %s2102_s9, 1 }
   0x5   : > { %p319_p2 = scmp.lt.s32.totalorder %s2102_s9, 5 }
   0x6   : > { %s3161_s10 = smov (%p35_p0, %s33_s10), 0  ;;  %s3163_s11 = smov (!%p35_p0, %s37_s11), %s2098_s30 }
   0x7   : > { %p320_p3 = pnand %p1866_p1, %p319_p2  ;;  %p39_p4 = scmp.ge.s32.totalorder %s3163_s11, 2 }
   0x8   : > { %s1867_s12 = sshll.u32 (!%p320_p3), %s2086_s27, 3  ;;  %p395_p5 = scmp.lt.s32.totalorder (!%p320_p3), %s2090_s28, 1 }
   0x9   : > { %s3165_s11 = smov (%p39_p4, %s3163_s11), 0  ;;  %323 = sbr.rel (%p320_p3) target bundleno = 541 (0x21d), region = 48 }
   0xa   : > { %p397_p6 = scmp.lt.s32.totalorder (!%p320_p3), %s1867_s12, 15  ;;  %s1876_s13 = smul.u32 (!%p320_p3), 192, %s2086_s27 }
   0xb   : > { %s435_s16 = smul.u32 (!%p320_p3), 432, %s2090_s28 }
   0xd   : > { %s436_s19 = sadd.s32 (!%p320_p3), %s1876_s13, %s435_s16 }
   0xe   : > { %s396_s14 = scalar_select %p395_p5, %s2090_s28, 1 }
   0xf   : > { %s3167_s12 = smov (!%p397_p6, %s1867_s12), 15  ;;  %s2182_s23 = scalar_lea.vmem %s3147_s0, %s436_s19 }
  0x10   : > { %s1869_s15 = sshll.u32 %s396_s14, 5  ;;  %s1868_s17 = sshll.u32 %s3167_s12, 1  ;;  %v450_v0 = vld [vmem:[%s2182_s23] sm:$0xff]  ;;  %v452_v1 = vld [vmem:[%s2182_s23 + $0x8] sm:$0xff]  ;;  %v454_v2 = vld [vmem:[%s2182_s23 + $0x18] sm:$0xff] }
  0x11   : > { %s401_s18 = sadd.s32 %s1869_s15, %s1868_s17  ;;  %451 = vst [vmem:[#allocation2] sm:$0xff] %v450_v0  ;;  %v456_v3 = vld [vmem:[%s2182_s23 + $0x20] sm:$0xff]  ;;  %v458_v4 = vld [vmem:[%s2182_s23 + $0x30] sm:$0xff]  ;;  %v460_v5 = vld [vmem:[%s2182_s23 + $0x38] sm:$0xff] }
  0x12   : > { %s1870_s20 = sshll.u32 %s401_s18, 3  ;;  %453 = vst [vmem:[#allocation2 + $0x8] sm:$0xff] %v452_v1  ;;  %v462_v6 = vld [vmem:[%s2182_s23 + $0x48] sm:$0xff]  ;;  %v464_v7 = vld [vmem:[%s2182_s23 + $0x50] sm:$0xff]  ;;  %v466_v8 = vld [vmem:[%s2182_s23 + $0x60] sm:$0xff] }
  0x13   : > { %s2187_s26 = scalar_lea.vmem %s3151_s4, %s1870_s20  ;;  %s2192_s12 = scalar_lea.vmem %s3155_s8, %s1870_s20  ;;  %455 = vst [vmem:[#allocation2 + $0x18] sm:$0xff] %v454_v2  ;;  %v468_v9 = vld [vmem:[%s2182_s23 + $0x68] sm:$0xff]  ;;  %v470_v10 = vld [vmem:[%s2182_s23 + $0x78] sm:$0xff]  ;;  %v472_v11 = vld [vmem:[%s2182_s23 + $0x80] sm:$0xff] }
  0x14   : > { %457 = vst [vmem:[#allocation2 + $0x20] sm:$0xff] %v456_v3  ;;  %v474_v12 = vld [vmem:[%s2182_s23 + $0x90] sm:$0xff]  ;;  %v476_v13 = vld [vmem:[%s2182_s23 + $0x98] sm:$0xff]  ;;  %v478_v14 = vld [vmem:[%s2182_s23 + $0xa8] sm:$0xff] }
  0x15   : > { %459 = vst [vmem:[#allocation2 + $0x30] sm:$0xff] %v458_v4  ;;  %v480_v15 = vld [vmem:[%s2182_s23 + $0xb0] sm:$0xff]  ;;  %v482_v16 = vld [vmem:[%s2182_s23 + $0xc0] sm:$0xff]  ;;  %v484_v17 = vld [vmem:[%s2182_s23 + $0xc8] sm:$0xff] }
  0x16   : > { %461 = vst [vmem:[#allocation2 + $0x38] sm:$0xff] %v460_v5  ;;  %v486_v18 = vld [vmem:[%s2182_s23 + $0xd8] sm:$0xff]  ;;  %v488_v19 = vld [vmem:[%s2182_s23 + $0xe0] sm:$0xff]  ;;  %v1877_v20 = vld [vmem:[%s2182_s23 + $0x10] sm:$0x3] }
  0x17   : > { %463 = vst [vmem:[#allocation2 + $0x48] sm:$0xff] %v462_v6  ;;  %v1878_v21 = vld [vmem:[%s2182_s23 + $0x28] sm:$0x3]  ;;  %v1879_v22 = vld [vmem:[%s2182_s23 + $0x40] sm:$0x3] }
  0x18   : > { %465 = vst [vmem:[#allocation2 + $0x50] sm:$0xff] %v464_v7  ;;  %v1880_v23 = vld [vmem:[%s2182_s23 + $0x58] sm:$0x3]  ;;  %v1881_v24 = vld [vmem:[%s2182_s23 + $0x70] sm:$0x3] }
  0x19   : > { %467 = vst [vmem:[#allocation2 + $0x60] sm:$0xff] %v466_v8  ;;  %v1882_v25 = vld [vmem:[%s2182_s23 + $0x88] sm:$0x3]  ;;  %v1883_v26 = vld [vmem:[%s2182_s23 + $0xa0] sm:$0x3] }
  0x1a   : > { %469 = vst [vmem:[#allocation2 + $0x68] sm:$0xff] %v468_v9  ;;  %v1884_v27 = vld [vmem:[%s2182_s23 + $0xb8] sm:$0x3]  ;;  %v1885_v28 = vld [vmem:[%s2182_s23 + $0xd0] sm:$0x3] }
  0x1b   : > { %471 = vst [vmem:[#allocation2 + $0x78] sm:$0xff] %v470_v10  ;;  %v1886_v29 = vld [vmem:[%s2182_s23 + $0xe8] sm:$0x3] }
  0x1c   : > { %473 = vst [vmem:[#allocation2 + $0x80] sm:$0xff] %v472_v11 }
  0x1d   : > { %475 = vst [vmem:[#allocation2 + $0x90] sm:$0xff] %v474_v12 }
  0x1e   : > { %477 = vst [vmem:[#allocation2 + $0x98] sm:$0xff] %v476_v13 }
  0x1f   : > { %479 = vst [vmem:[#allocation2 + $0xa8] sm:$0xff] %v478_v14 }
  0x20   : > { %481 = vst [vmem:[#allocation2 + $0xb0] sm:$0xff] %v480_v15 }
  0x21   : > { %483 = vst [vmem:[#allocation2 + $0xc0] sm:$0xff] %v482_v16 }
  0x22   : > { %485 = vst [vmem:[#allocation2 + $0xc8] sm:$0xff] %v484_v17 }
  0x23   : > { %487 = vst [vmem:[#allocation2 + $0xd8] sm:$0xff] %v486_v18 }
  0x24   : > { %489 = vst [vmem:[#allocation2 + $0xe0] sm:$0xff] %v488_v19 }
  0x25   : > { %501 = vst [vmem:[#allocation2 + $0x10] sm:$0x3] %v1877_v20 }
  0x26   : > { %503 = vst [vmem:[#allocation2 + $0x28] sm:$0x3] %v1878_v21 }
  0x27   : > { %505 = vst [vmem:[#allocation2 + $0x40] sm:$0x3] %v1879_v22 }
  0x28   : > { %507 = vst [vmem:[#allocation2 + $0x58] sm:$0x3] %v1880_v23 }
  0x29   : > { %509 = vst [vmem:[#allocation2 + $0x70] sm:$0x3] %v1881_v24 }
  0x2a   : > { %511 = vst [vmem:[#allocation2 + $0x88] sm:$0x3] %v1882_v25 }
  0x2b   : > { %513 = vst [vmem:[#allocation2 + $0xa0] sm:$0x3] %v1883_v26 }
  0x2c   : > { %515 = vst [vmem:[#allocation2 + $0xb8] sm:$0x3] %v1884_v27 }
  0x2d   : > { %517 = vst [vmem:[#allocation2 + $0xd0] sm:$0x3] %v1885_v28 }
  0x2e   : > { %519 = vst [vmem:[#allocation2 + $0xe8] sm:$0x3] %v1886_v29 }
  0x2f   : > { %523 = vsyncadd [#allocation3], 2880 }
  0x30   : > { %2082 = dma.done.wait [#allocation3], 2880 }
  0x31   : > { %2083 = vsyncadd [#allocation3], 4294964416  ;;  %v1902_v30 = vld [vmem:[%s3148_s1 + $0x1f8] sm:$0xff]  ;;  %v1901_v32 = vld [vmem:[%s3148_s1 + $0x1f0] sm:$0xff] }
  0x32   : > { %v1918_v31 = vld [vmem:[%s3148_s1 + $0x278] sm:$0xff]  ;;  %1986 = vmatpush.msra.mxu2 %v1902_v30  ;;  %v1917_v33 = vld [vmem:[%s3148_s1 + $0x270] sm:$0xff]  ;;  %v1900_v34 = vld [vmem:[%s3148_s1 + $0x1e8] sm:$0xff]  ;;  %724 = vmatpush.msra.mxu0 %v1902_v30 }
  0x33   : > { %2002 = vmatpush.msra.mxu3 %v1918_v31  ;;  %v1916_v35 = vld [vmem:[%s3148_s1 + $0x268] sm:$0xff]  ;;  %789 = vmatpush.msra.mxu1 %v1918_v31  ;;  %v1899_v36 = vld [vmem:[%s3148_s1 + $0x1e0] sm:$0xff]  ;;  %v1898_v38 = vld [vmem:[%s3148_s1 + $0x1d8] sm:$0xff] }
  0x34   : > { %1987 = vmatpush.msra.mxu2 %v1901_v32  ;;  %v1915_v37 = vld [vmem:[%s3148_s1 + $0x260] sm:$0xff]  ;;  %725 = vmatpush.msra.mxu0 %v1901_v32  ;;  %v1914_v39 = vld [vmem:[%s3148_s1 + $0x258] sm:$0xff]  ;;  %v1897_v40 = vld [vmem:[%s3148_s1 + $0x1d0] sm:$0xff] }
  0x35   : > { %2003 = vmatpush.msra.mxu3 %v1917_v33  ;;  %790 = vmatpush.msra.mxu1 %v1917_v33  ;;  %v1913_v41 = vld [vmem:[%s3148_s1 + $0x250] sm:$0xff]  ;;  %v1896_v42 = vld [vmem:[%s3148_s1 + $0x1c8] sm:$0xff]  ;;  %v1895_v44 = vld [vmem:[%s3148_s1 + $0x1c0] sm:$0xff] }
  0x36   : > { %1988 = vmatpush.msra.mxu2 %v1900_v34  ;;  %726 = vmatpush.msra.mxu0 %v1900_v34  ;;  %v1912_v43 = vld [vmem:[%s3148_s1 + $0x248] sm:$0xff]  ;;  %v1911_v45 = vld [vmem:[%s3148_s1 + $0x240] sm:$0xff]  ;;  %v1894_v46 = vld [vmem:[%s3148_s1 + $0x1b8] sm:$0xff] }
  0x37   : > { %2004 = vmatpush.msra.mxu3 %v1916_v35  ;;  %791 = vmatpush.msra.mxu1 %v1916_v35  ;;  %v1910_v47 = vld [vmem:[%s3148_s1 + $0x238] sm:$0xff]  ;;  %v1893_v48 = vld [vmem:[%s3148_s1 + $0x1b0] sm:$0xff]  ;;  %v1892_v50 = vld [vmem:[%s3148_s1 + $0x1a8] sm:$0xff] }
  0x38   : > { %1989 = vmatpush.msra.mxu2 %v1899_v36  ;;  %727 = vmatpush.msra.mxu0 %v1899_v36  ;;  %v1909_v49 = vld [vmem:[%s3148_s1 + $0x230] sm:$0xff]  ;;  %v1908_v51 = vld [vmem:[%s3148_s1 + $0x228] sm:$0xff]  ;;  %v1891_v52 = vld [vmem:[%s3148_s1 + $0x1a0] sm:$0xff] }
  0x39   : > { %2005 = vmatpush.msra.mxu3 %v1915_v37  ;;  %792 = vmatpush.msra.mxu1 %v1915_v37  ;;  %v1907_v53 = vld [vmem:[%s3148_s1 + $0x220] sm:$0xff]  ;;  %v1890_v54 = vld [vmem:[%s3148_s1 + $0x198] sm:$0xff]  ;;  %v1889_v56 = vld [vmem:[%s3148_s1 + $0x190] sm:$0xff] }
  0x3a   : > { %1990 = vmatpush.msra.mxu2 %v1898_v38  ;;  %728 = vmatpush.msra.mxu0 %v1898_v38  ;;  %v1906_v55 = vld [vmem:[%s3148_s1 + $0x218] sm:$0xff]  ;;  %v1905_v57 = vld [vmem:[%s3148_s1 + $0x210] sm:$0xff]  ;;  %v1888_v58 = vld [vmem:[%s3148_s1 + $0x188] sm:$0xff] }
  0x3b   : > { %2006 = vmatpush.msra.mxu3 %v1914_v39  ;;  %793 = vmatpush.msra.mxu1 %v1914_v39  ;;  %v1904_v59 = vld [vmem:[%s3148_s1 + $0x208] sm:$0xff]  ;;  %v1887_v60 = vld [vmem:[%s3148_s1 + $0x180] sm:$0xff]  ;;  %v2320_v62 = vld [vmem:[#allocation2 + $0x78] sm:$0xff] }
  0x3c   : > { %1991 = vmatpush.msra.mxu2 %v1897_v40  ;;  %729 = vmatpush.msra.mxu0 %v1897_v40  ;;  %v1903_v61 = vld [vmem:[%s3148_s1 + $0x200] sm:$0xff]  ;;  %v1934_v0 = vld [vmem:[%s3148_s1 + $0x2f8] sm:$0xff]  ;;  %v1933_v2 = vld [vmem:[%s3148_s1 + $0x2f0] sm:$0xff] }
  0x3d   : > { %2007 = vmatpush.msra.mxu3 %v1913_v41  ;;  %794 = vmatpush.msra.mxu1 %v1913_v41  ;;  %v2322_v63 = vld [vmem:[#allocation2 + $0x79] sm:$0xff]  ;;  %v592_v3 = vld [vmem:[%s3148_s1 + $0x70] sm:$0xff]  ;;  %v1932_v6 = vld [vmem:[%s3148_s1 + $0x2e8] sm:$0xff] }
  0x3e   : > { %1992 = vmatpush.msra.mxu2 %v1896_v42  ;;  %730 = vmatpush.msra.mxu0 %v1896_v42  ;;  %v593_v1 = vld [vmem:[%s3148_s1 + $0x78] sm:$0xff]  ;;  %v591_v7 = vld [vmem:[%s3148_s1 + $0x68] sm:$0xff]  ;;  %v1931_v10 = vld [vmem:[%s3148_s1 + $0x2e0] sm:$0xff] }
  0x3f   : > { %2008 = vmatpush.msra.mxu3 %v1912_v43  ;;  %795 = vmatpush.msra.mxu1 %v1912_v43  ;;  %v2338_v4 = vld [vmem:[#allocation2 + $0x18] sm:$0xff]  ;;  %v590_v11 = vld [vmem:[%s3148_s1 + $0x60] sm:$0xff]  ;;  %v608_v14 = vld [vmem:[%s3148_s1 + $0xf0] sm:$0xff] }
  0x40   : > { %1993 = vmatpush.msra.mxu2 %v1895_v44  ;;  %731 = vmatpush.msra.mxu0 %v1895_v44  ;;  %v2340_v5 = vld [vmem:[#allocation2 + $0x19] sm:$0xff]  ;;  %v2364_v13 = vld [vmem:[#allocation2 + $0x81] sm:$0xff]  ;;  %v624_v17 = vld [vmem:[%s3148_s1 + $0x170] sm:$0xff] }
  0x41   : > { %2009 = vmatpush.msra.mxu3 %v1911_v45  ;;  %796 = vmatpush.msra.mxu1 %v1911_v45  ;;  %v609_v8 = vld [vmem:[%s3148_s1 + $0xf8] sm:$0xff]  ;;  %v2362_v12 = vld [vmem:[#allocation2 + $0x80] sm:$0xff]  ;;  %v607_v18 = vld [vmem:[%s3148_s1 + $0xe8] sm:$0xff] }
  0x42   : > { %1994 = vmatpush.msra.mxu2 %v1894_v46  ;;  %732 = vmatpush.msra.mxu0 %v1894_v46  ;;  %v625_v9 = vld [vmem:[%s3148_s1 + $0x178] sm:$0xff]  ;;  %v1929_v19 = vld [vmem:[%s3148_s1 + $0x2d0] sm:$0xff]  ;;  %v2386_v20 = vld [vmem:[#allocation2 + $0x20] sm:$0xff] }
  0x43   : > { %2010 = vmatpush.msra.mxu3 %v1910_v47  ;;  %797 = vmatpush.msra.mxu1 %v1910_v47  ;;  %v1930_v15 = vld [vmem:[%s3148_s1 + $0x2d8] sm:$0xff]  ;;  %v2388_v21 = vld [vmem:[#allocation2 + $0x21] sm:$0xff]  ;;  %v588_v22 = vld [vmem:[%s3148_s1 + $0x50] sm:$0xff] }
  0x44   : > { %1995 = vmatpush.msra.mxu2 %v1893_v48  ;;  %733 = vmatpush.msra.mxu0 %v1893_v48  ;;  %v589_v16 = vld [vmem:[%s3148_s1 + $0x58] sm:$0xff]  ;;  %v606_v23 = vld [vmem:[%s3148_s1 + $0xe0] sm:$0xff]  ;;  %v623_v24 = vld [vmem:[%s3148_s1 + $0x168] sm:$0xff] }
  0x45   : > { %2011 = vmatpush.msra.mxu3 %v1909_v49  ;;  %798 = vmatpush.msra.mxu1 %v1909_v49  ;;  %v1928_v25 = vld [vmem:[%s3148_s1 + $0x2c8] sm:$0xff]  ;;  %v605_v27 = vld [vmem:[%s3148_s1 + $0xd8] sm:$0xff]  ;;  %v2410_v28 = vld [vmem:[#allocation2 + $0x90] sm:$0xff] }
  0x46   : > { %1996 = vmatpush.msra.mxu2 %v1892_v50  ;;  %734 = vmatpush.msra.mxu0 %v1892_v50  ;;  %v587_v26 = vld [vmem:[%s3148_s1 + $0x48] sm:$0xff]  ;;  %v2412_v29 = vld [vmem:[#allocation2 + $0x91] sm:$0xff]  ;;  %v622_v30 = vld [vmem:[%s3148_s1 + $0x160] sm:$0xff] }
  0x47   : > { %2012 = vmatpush.msra.mxu3 %v1908_v51  ;;  %799 = vmatpush.msra.mxu1 %v1908_v51  ;;  %v1927_v31 = vld [vmem:[%s3148_s1 + $0x2c0] sm:$0xff]  ;;  %v604_v33 = vld [vmem:[%s3148_s1 + $0xd0] sm:$0xff]  ;;  %v621_v34 = vld [vmem:[%s3148_s1 + $0x158] sm:$0xff] }
  0x48   : > { %1997 = vmatpush.msra.mxu2 %v1891_v52  ;;  %735 = vmatpush.msra.mxu0 %v1891_v52  ;;  %v586_v32 = vld [vmem:[%s3148_s1 + $0x40] sm:$0xff]  ;;  %v1926_v35 = vld [vmem:[%s3148_s1 + $0x2b8] sm:$0xff]  ;;  %v2434_v36 = vld [vmem:[#allocation2 + $0x30] sm:$0xff] }
  0x49   : > { %2013 = vmatpush.msra.mxu3 %v1907_v53  ;;  %800 = vmatpush.msra.mxu1 %v1907_v53  ;;  %v2436_v37 = vld [vmem:[#allocation2 + $0x31] sm:$0xff]  ;;  %v603_v39 = vld [vmem:[%s3148_s1 + $0xc8] sm:$0xff]  ;;  %v602_v43 = vld [vmem:[%s3148_s1 + $0xc0] sm:$0xff] }
  0x4a   : > { %1998 = vmatpush.msra.mxu2 %v1890_v54  ;;  %736 = vmatpush.msra.mxu0 %v1890_v54  ;;  %v585_v38 = vld [vmem:[%s3148_s1 + $0x38] sm:$0xff]  ;;  %v620_v40 = vld [vmem:[%s3148_s1 + $0x150] sm:$0xff]  ;;  %v619_v46 = vld [vmem:[%s3148_s1 + $0x148] sm:$0xff] }
  0x4b   : > { %2014 = vmatpush.msra.mxu3 %v1906_v55  ;;  %801 = vmatpush.msra.mxu1 %v1906_v55  ;;  %v1925_v41 = vld [vmem:[%s3148_s1 + $0x2b0] sm:$0xff]  ;;  %v2458_v44 = vld [vmem:[#allocation2 + $0x98] sm:$0xff]  ;;  %v1924_v47 = vld [vmem:[%s3148_s1 + $0x2a8] sm:$0xff] }
  0x4c   : > { %1999 = vmatpush.msra.mxu2 %v1889_v56  ;;  %737 = vmatpush.msra.mxu0 %v1889_v56  ;;  %v584_v42 = vld [vmem:[%s3148_s1 + $0x30] sm:$0xff]  ;;  %v2460_v45 = vld [vmem:[#allocation2 + $0x99] sm:$0xff]  ;;  %v583_v48 = vld [vmem:[%s3148_s1 + $0x28] sm:$0xff] }
  0x4d   : > { %2015 = vmatpush.msra.mxu3 %v1905_v57  ;;  %802 = vmatpush.msra.mxu1 %v1905_v57  ;;  %v601_v49 = vld [vmem:[%s3148_s1 + $0xb8] sm:$0xff]  ;;  %v618_v50 = vld [vmem:[%s3148_s1 + $0x140] sm:$0xff]  ;;  %v600_v55 = vld [vmem:[%s3148_s1 + $0xb0] sm:$0xff] }
  0x4e   : > { %2000 = vmatpush.msra.mxu2 %v1888_v58  ;;  %738 = vmatpush.msra.mxu0 %v1888_v58  ;;  %v1923_v51 = vld [vmem:[%s3148_s1 + $0x2a0] sm:$0xff]  ;;  %v2482_v52 = vld [vmem:[#allocation2 + $0x38] sm:$0xff] }
  0x4f   : > { %2016 = vmatpush.msra.mxu3 %v1904_v59  ;;  %803 = vmatpush.msra.mxu1 %v1904_v59  ;;  %v2484_v53 = vld [vmem:[#allocation2 + $0x39] sm:$0xff]  ;;  %v599_v59 = vld [vmem:[%s3148_s1 + $0xa8] sm:$0xff] }
  0x50   : > { %2001 = vmatpush.msra.mxu2 %v1887_v60  ;;  %739 = vmatpush.msra.mxu0 %v1887_v60  ;;  %v582_v54 = vld [vmem:[%s3148_s1 + $0x20] sm:$0xff]  ;;  %v617_v56 = vld [vmem:[%s3148_s1 + $0x138] sm:$0xff]  ;;  %v2506_v60 = vld [vmem:[#allocation2 + $0xa8] sm:$0xff] }
  0x51   : > { %2017 = vmatpush.msra.mxu3 %v1903_v61  ;;  %764 = vmatmul.f32.vlgmr.msra.gmra.mxu2 %v2320_v62  ;;  %v1922_v57 = vld [vmem:[%s3148_s1 + $0x298] sm:$0xff] }
  0x52   : > { %829 = vmatmul.f32.vlgmr.msra.gmra.mxu3 %v2322_v63  ;;  %854 = vmatpush.msrb.mxu2 %v1934_v0  ;;  %v581_v58 = vld [vmem:[%s3148_s1 + $0x18] sm:$0xff]  ;;  %v616_v0 = vld [vmem:[%s3148_s1 + $0x130] sm:$0xff] }
  0x53   : > { %919 = vmatpush.msrb.mxu3 %v593_v1  ;;  %804 = vmatpush.msra.mxu1 %v1903_v61  ;;  %v2508_v61 = vld [vmem:[#allocation2 + $0xa9] sm:$0xff] }
  0x54   : > { %855 = vmatpush.msrb.mxu2 %v1933_v2  ;;  %740 = vmatmul.f32.vlgmr.msra.gmra.mxu0 %v2338_v4  ;;  %v1921_v1 = vld [vmem:[%s3148_s1 + $0x290] sm:$0xff] }
  0x55   : > { %920 = vmatpush.msrb.mxu3 %v592_v3  ;;  %805 = vmatmul.f32.vlgmr.msra.gmra.mxu1 %v2340_v5  ;;  %v580_v2 = vld [vmem:[%s3148_s1 + $0x10] sm:$0xff]  ;;  %v598_v3 = vld [vmem:[%s3148_s1 + $0xa0] sm:$0xff] }
  0x56   : > { %856 = vmatpush.msrb.mxu2 %v1932_v6  ;;  %984 = vmatpush.msrb.mxu0 %v609_v8  ;;  %v615_v6 = vld [vmem:[%s3148_s1 + $0x128] sm:$0xff] }
  0x57   : > { %921 = vmatpush.msrb.mxu3 %v591_v7  ;;  %1049 = vmatpush.msrb.mxu1 %v625_v9  ;;  %v1920_v7 = vld [vmem:[%s3148_s1 + $0x288] sm:$0xff] }
  0x58   : > { %857 = vmatpush.msrb.mxu2 %v1931_v10  ;;  %985 = vmatpush.msrb.mxu0 %v608_v14  ;;  %v2530_v8 = vld [vmem:[#allocation2 + $0x48] sm:$0xff]  ;;  %v614_v14 = vld [vmem:[%s3148_s1 + $0x120] sm:$0xff] }
  0x59   : > { %922 = vmatpush.msrb.mxu3 %v590_v11  ;;  %767 = vmatmul.f32.gmra.mxu2 %v2362_v12  ;;  %v2532_v9 = vld [vmem:[#allocation2 + $0x49] sm:$0xff]  ;;  %v597_v11 = vld [vmem:[%s3148_s1 + $0x98] sm:$0xff] }
  0x5a   : > { %832 = vmatmul.f32.gmra.mxu3 %v2364_v13  ;;  %858 = vmatpush.msrb.mxu2 %v1930_v15  ;;  %v579_v10 = vld [vmem:[%s3148_s1 + $0x8] sm:$0xff]  ;;  %v1919_v15 = vld [vmem:[%s3148_s1 + $0x280] sm:$0xff] }
  0x5b   : > { %923 = vmatpush.msrb.mxu3 %v589_v16  ;;  %1050 = vmatpush.msrb.mxu1 %v624_v17  ;;  %v578_v16 = vld [vmem:[%s3148_s1] sm:$0xff]  ;;  %v596_v17 = vld [vmem:[%s3148_s1 + $0x90] sm:$0xff] }
  0x5c   : > { %986 = vmatpush.msrb.mxu0 %v607_v18  ;;  %859 = vmatpush.msrb.mxu2 %v1929_v19  ;;  %v2554_v18 = vld [vmem:[#allocation2 + $0xb0] sm:$0xff] }
  0x5d   : > { %743 = vmatmul.f32.gmra.mxu0 %v2386_v20  ;;  %808 = vmatmul.f32.gmra.mxu1 %v2388_v21  ;;  %v2556_v19 = vld [vmem:[#allocation2 + $0xb1] sm:$0xff] }
  0x5e   : > { %924 = vmatpush.msrb.mxu3 %v588_v22  ;;  %987 = vmatpush.msrb.mxu0 %v606_v23  ;;  %v613_v22 = vld [vmem:[%s3148_s1 + $0x118] sm:$0xff]  ;;  %v595_v23 = vld [vmem:[%s3148_s1 + $0x88] sm:$0xff] }
  0x5f   : > { %1051 = vmatpush.msrb.mxu1 %v623_v24  ;;  %860 = vmatpush.msrb.mxu2 %v1928_v25  ;;  %v1950_v24 = vld [vmem:[%s3148_s1 + $0x378] sm:$0xff] }
  0x60   : > { %925 = vmatpush.msrb.mxu3 %v587_v26  ;;  %988 = vmatpush.msrb.mxu0 %v605_v27  ;;  %v1966_v25 = vld [vmem:[%s3148_s1 + $0x3f8] sm:$0xff]  ;;  %v612_v26 = vld [vmem:[%s3148_s1 + $0x110] sm:$0xff]  ;;  %v594_v27 = vld [vmem:[%s3148_s1 + $0x80] sm:$0xff] }
  0x61   : > { %770 = vmatmul.f32.gmra.mxu2 %v2410_v28  ;;  %1052 = vmatpush.msrb.mxu1 %v622_v30  ;;  %v2578_v30 = vld [vmem:[#allocation2 + $0x50] sm:$0xff] }
  0x62   : > { %835 = vmatmul.f32.gmra.mxu3 %v2412_v29  ;;  %861 = vmatpush.msrb.mxu2 %v1927_v31  ;;  %v2580_v31 = vld [vmem:[#allocation2 + $0x51] sm:$0xff] }
  0x63   : > { %926 = vmatpush.msrb.mxu3 %v586_v32  ;;  %989 = vmatpush.msrb.mxu0 %v604_v33  ;;  %v611_v32 = vld [vmem:[%s3148_s1 + $0x108] sm:$0xff]  ;;  %v1949_v33 = vld [vmem:[%s3148_s1 + $0x370] sm:$0xff] }
  0x64   : > { %1053 = vmatpush.msrb.mxu1 %v621_v34  ;;  %862 = vmatpush.msrb.mxu2 %v1926_v35  ;;  %v1965_v34 = vld [vmem:[%s3148_s1 + $0x3f0] sm:$0xff]  ;;  %v1982_v35 = vld [vmem:[%s3148_s1 + $0x478] sm:$0xff] }
  0x65   : > { %746 = vmatmul.f32.gmra.mxu0 %v2434_v36  ;;  %811 = vmatmul.f32.gmra.mxu1 %v2436_v37 }
  0x66   : > { %927 = vmatpush.msrb.mxu3 %v585_v38  ;;  %990 = vmatpush.msrb.mxu0 %v603_v39  ;;  %v610_v38 = vld [vmem:[%s3148_s1 + $0x100] sm:$0xff] }
  0x67   : > { %1054 = vmatpush.msrb.mxu1 %v620_v40  ;;  %863 = vmatpush.msrb.mxu2 %v1925_v41  ;;  %v641_v39 = vld [vmem:[#allocation2 + $0xc0] sm:$0xff]  ;;  %v1494_v41 = vld [vmem:[%s3152_s5 + $0x78] sm:$0xff] }
  0x68   : > { %928 = vmatpush.msrb.mxu3 %v584_v42  ;;  %991 = vmatpush.msrb.mxu0 %v602_v43  ;;  %v657_v40 = vld [vmem:[#allocation2 + $0xc1] sm:$0xff] }
  0x69   : > { %773 = vmatmul.f32.gmra.mxu2 %v2458_v44  ;;  %1055 = vmatpush.msrb.mxu1 %v619_v46  ;;  %v1948_v42 = vld [vmem:[%s3148_s1 + $0x368] sm:$0xff]  ;;  %v1981_v46 = vld [vmem:[%s3148_s1 + $0x470] sm:$0xff] }
  0x6a   : > { %838 = vmatmul.f32.gmra.mxu3 %v2460_v45  ;;  %864 = vmatpush.msrb.mxu2 %v1924_v47  ;;  %v1964_v43 = vld [vmem:[%s3148_s1 + $0x3e8] sm:$0xff]  ;;  %v2611_v47 = vld [vmem:[#allocation2 + $0x60] sm:$0xff] }
  0x6b   : > { %929 = vmatpush.msrb.mxu3 %v583_v48  ;;  %992 = vmatpush.msrb.mxu0 %v601_v49  ;;  %v2613_v48 = vld [vmem:[#allocation2 + $0x61] sm:$0xff]  ;;  %v1493_v49 = vld [vmem:[%s3152_s5 + $0x70] sm:$0xff] }
  0x6c   : > { %1056 = vmatpush.msrb.mxu1 %v618_v50  ;;  %865 = vmatpush.msrb.mxu2 %v1923_v51  ;;  %v642_v50 = vld [vmem:[#allocation2 + $0xc8] sm:$0xff] }
  0x6d   : > { %749 = vmatmul.f32.gmra.mxu0 %v2482_v52  ;;  %814 = vmatmul.f32.gmra.mxu1 %v2484_v53  ;;  %v658_v51 = vld [vmem:[#allocation2 + $0xc9] sm:$0xff] }
  0x6e   : > { %930 = vmatpush.msrb.mxu3 %v582_v54  ;;  %993 = vmatpush.msrb.mxu0 %v600_v55  ;;  %v1947_v54 = vld [vmem:[%s3148_s1 + $0x360] sm:$0xff] }
  0x6f   : > { %1057 = vmatpush.msrb.mxu1 %v617_v56  ;;  %866 = vmatpush.msrb.mxu2 %v1922_v57  ;;  %v1963_v55 = vld [vmem:[%s3148_s1 + $0x3e0] sm:$0xff]  ;;  %v1980_v56 = vld [vmem:[%s3148_s1 + $0x468] sm:$0xff] }
  0x70   : > { %931 = vmatpush.msrb.mxu3 %v581_v58  ;;  %994 = vmatpush.msrb.mxu0 %v599_v59  ;;  %v2629_v57 = vld [vmem:[#allocation2 + $0x68] sm:$0xff] }
  0x71   : > { %776 = vmatmul.f32.gmra.mxu2 %v2506_v60  ;;  %1058 = vmatpush.msrb.mxu1 %v616_v0  ;;  %v2631_v58 = vld [vmem:[#allocation2 + $0x69] sm:$0xff]  ;;  %v659_v0 = vld [vmem:[#allocation2 + $0x1a] sm:$0xff] }
  0x72   : > { %841 = vmatmul.f32.gmra.mxu3 %v2508_v61  ;;  %867 = vmatpush.msrb.mxu2 %v1921_v1  ;;  %v1492_v59 = vld [vmem:[%s3152_s5 + $0x68] sm:$0xff]  ;;  %v530_v1 = vld [vmem:[#allocation2] sm:$0xff] }
  0x73   : > { %932 = vmatpush.msrb.mxu3 %v580_v2  ;;  %995 = vmatpush.msrb.mxu0 %v598_v3  ;;  %v1946_v2 = vld [vmem:[%s3148_s1 + $0x358] sm:$0xff] }
  0x74   : > { %1059 = vmatpush.msrb.mxu1 %v615_v6  ;;  %868 = vmatpush.msrb.mxu2 %v1920_v7  ;;  %v1962_v3 = vld [vmem:[%s3148_s1 + $0x3d8] sm:$0xff]  ;;  %v1979_v6 = vld [vmem:[%s3148_s1 + $0x460] sm:$0xff] }
  0x75   : > { %752 = vmatmul.f32.gmra.mxu0 %v2530_v8  ;;  %817 = vmatmul.f32.gmra.mxu1 %v2532_v9  ;;  %v546_v7 = vld [vmem:[#allocation2 + $0x1] sm:$0xff] }
  0x76   : > { %933 = vmatpush.msrb.mxu3 %v579_v10  ;;  %996 = vmatpush.msrb.mxu0 %v597_v11  ;;  %v562_v10 = vld [vmem:[#allocation2 + $0x2] sm:$0xff] }
  0x77   : > { %1060 = vmatpush.msrb.mxu1 %v614_v14  ;;  %869 = vmatpush.msrb.mxu2 %v1919_v15  ;;  %v1491_v11 = vld [vmem:[%s3152_s5 + $0x60] sm:$0xff]  ;;  %v531_v15 = vld [vmem:[#allocation2 + $0x8] sm:$0xff] }
  0x78   : > { %934 = vmatpush.msrb.mxu3 %v578_v16  ;;  %997 = vmatpush.msrb.mxu0 %v596_v17  ;;  %v660_v14 = vld [vmem:[#allocation2 + $0x22] sm:$0xff]  ;;  %v1945_v16 = vld [vmem:[%s3148_s1 + $0x350] sm:$0xff] }
  0x79   : > { %779 = vmatmul.f32.gmra.mxu2 %v2554_v18  ;;  %1061 = vmatpush.msrb.mxu1 %v613_v22  ;;  %v1961_v17 = vld [vmem:[%s3148_s1 + $0x3d0] sm:$0xff]  ;;  %v1978_v22 = vld [vmem:[%s3148_s1 + $0x458] sm:$0xff] }
  0x7a   : > { %844 = vmatmul.f32.gmra.mxu3 %v2556_v19  ;;  %998 = vmatpush.msrb.mxu0 %v595_v23  ;;  %v547_v23 = vld [vmem:[#allocation2 + $0x9] sm:$0xff] }
  0x7b   : > { %1212 = vmatpush.msra.mxu2 %v1950_v24  ;;  %1277 = vmatpush.msra.mxu3 %v1966_v25  ;;  %v563_v24 = vld [vmem:[#allocation2 + $0xa] sm:$0xff]  ;;  %v1490_v25 = vld [vmem:[%s3152_s5 + $0x58] sm:$0xff] }
  0x7c   : > { %1062 = vmatpush.msrb.mxu1 %v612_v26  ;;  %999 = vmatpush.msrb.mxu0 %v594_v27  ;;  %v2662_v26 = vld [vmem:[#allocation2 + $0x32] sm:$0xff]  ;;  %v1944_v27 = vld [vmem:[%s3148_s1 + $0x348] sm:$0xff] }
  0x7d   : > { %755 = vmatmul.f32.gmra.mxu0 %v2578_v30  ;;  %820 = vmatmul.f32.gmra.mxu1 %v2580_v31 }
  0x7e   : > { %1063 = vmatpush.msrb.mxu1 %v611_v32  ;;  %1213 = vmatpush.msra.mxu2 %v1949_v33  ;;  %v1960_v32 = vld [vmem:[%s3148_s1 + $0x3c8] sm:$0xff]  ;;  %v1977_v33 = vld [vmem:[%s3148_s1 + $0x450] sm:$0xff] }
  0x7f   : > { %1278 = vmatpush.msra.mxu3 %v1965_v34  ;;  %1342 = vmatpush.msra.mxu0 %v1982_v35  ;;  %v1489_v34 = vld [vmem:[%s3152_s5 + $0x50] sm:$0xff]  ;;  %v1943_v35 = vld [vmem:[%s3148_s1 + $0x340] sm:$0xff] }
  0x80   : > { %1064 = vmatpush.msrb.mxu1 %v610_v38  ;;  %1214 = vmatpush.msra.mxu2 %v1948_v42  ;;  %v1959_v38 = vld [vmem:[%s3148_s1 + $0x3c0] sm:$0xff] }
  0x81   : > { %782 = vmatmul.f32.gmra.mxu2 %v641_v39  ;;  %1279 = vmatpush.msra.mxu3 %v1964_v43  ;;  %v1976_v39 = vld [vmem:[%s3148_s1 + $0x448] sm:$0xff]  ;;  %v1975_v42 = vld [vmem:[%s3148_s1 + $0x440] sm:$0xff]  ;;  %v2714_v43 = vld [vmem:[#allocation2 + $0x52] sm:$0xff] }
  0x82   : > { %847 = vmatmul.f32.gmra.mxu3 %v657_v40  ;;  %1495 = vmatpush.msra.mxu1 %v1494_v41  ;;  %v1942_v40 = vld [vmem:[%s3148_s1 + $0x338] sm:$0xff] }
  0x83   : > { %1343 = vmatpush.msra.mxu0 %v1981_v46  ;;  %1215 = vmatpush.msra.mxu2 %v1947_v54  ;;  %v1958_v41 = vld [vmem:[%s3148_s1 + $0x3b8] sm:$0xff]  ;;  %v1941_v46 = vld [vmem:[%s3148_s1 + $0x330] sm:$0xff]  ;;  %v2732_v54 = vld [vmem:[#allocation2 + $0x62] sm:$0xff] }
  0x84   : > { %1496 = vmatpush.msra.mxu1 %v1493_v49  ;;  %1280 = vmatpush.msra.mxu3 %v1963_v55  ;;  %v1957_v49 = vld [vmem:[%s3148_s1 + $0x3b0] sm:$0xff]  ;;  %v1940_v55 = vld [vmem:[%s3148_s1 + $0x328] sm:$0xff] }
  0x85   : > { %758 = vmatmul.f32.gmra.mxu0 %v2611_v47  ;;  %823 = vmatmul.f32.gmra.mxu1 %v2613_v48 }
  0x86   : > { %1344 = vmatpush.msra.mxu0 %v1980_v56  ;;  %1497 = vmatpush.msra.mxu1 %v1492_v59  ;;  %v1956_v56 = vld [vmem:[%s3148_s1 + $0x3a8] sm:$0xff]  ;;  %v1973_v59 = vld [vmem:[%s3148_s1 + $0x430] sm:$0xff] }
  0x87   : > { %1216 = vmatpush.msra.mxu2 %v1946_v2  ;;  %1281 = vmatpush.msra.mxu3 %v1962_v3  ;;  %v1939_v2 = vld [vmem:[%s3148_s1 + $0x320] sm:$0xff] }
  0x88   : > { %1345 = vmatpush.msra.mxu0 %v1979_v6  ;;  %1498 = vmatpush.msra.mxu1 %v1491_v11  ;;  %v1955_v3 = vld [vmem:[%s3148_s1 + $0x3a0] sm:$0xff]  ;;  %v1972_v6 = vld [vmem:[%s3148_s1 + $0x428] sm:$0xff]  ;;  %v1938_v11 = vld [vmem:[%s3148_s1 + $0x318] sm:$0xff] }
  0x89   : > { %785 = vmatmul.f32.gmra.mxu2 %v642_v50  ;;  %1282 = vmatpush.msra.mxu3 %v1961_v17  ;;  %v1974_v50 = vld [vmem:[%s3148_s1 + $0x438] sm:$0xff] }
  0x8a   : > { %850 = vmatmul.f32.gmra.mxu3 %v658_v51  ;;  %1217 = vmatpush.msra.mxu2 %v1945_v16  ;;  %v1486_v51 = vld [vmem:[%s3152_s5 + $0x38] sm:$0xff] }
  0x8b   : > { %1346 = vmatpush.msra.mxu0 %v1978_v22  ;;  %1499 = vmatpush.msra.mxu1 %v1490_v25  ;;  %v1483_v25 = vld [vmem:[%s3152_s5 + $0x20] sm:$0xff] }
  0x8c   : > { %1218 = vmatpush.msra.mxu2 %v1944_v27  ;;  %1283 = vmatpush.msra.mxu3 %v1960_v32  ;;  %v2792_v27 = vld [vmem:[#allocation2 + $0x82] sm:$0xff]  ;;  %v1937_v32 = vld [vmem:[%s3148_s1 + $0x310] sm:$0xff] }
  0x8d   : > { %761 = vmatmul.f32.gmra.mxu0 %v2629_v57  ;;  %826 = vmatmul.f32.gmra.mxu1 %v2631_v58 }
  0x8e   : > { %1347 = vmatpush.msra.mxu0 %v1977_v33  ;;  %1500 = vmatpush.msra.mxu1 %v1489_v34  ;;  %v1953_v33 = vld [vmem:[%s3148_s1 + $0x390] sm:$0xff]  ;;  %v1970_v34 = vld [vmem:[%s3148_s1 + $0x418] sm:$0xff] }
  0x8f   : > { %1219 = vmatpush.msra.mxu2 %v1943_v35  ;;  %1284 = vmatpush.msra.mxu3 %v1959_v38 }
  0x90   : > { %1348 = vmatpush.msra.mxu0 %v1976_v39 }
  0x91   : > { %870 = vmatmul.f32.vlgmr.msrb.gmra.mxu2 %v659_v0  ;;  %1285 = vmatpush.msra.mxu3 %v1958_v41  ;;  %v1482_v41 = vld [vmem:[%s3152_s5 + $0x18] sm:$0xff] }
  0x92   : > { %935 = vmatmul.f32.vlgmr.msrb.gmra.mxu3 %v530_v1  ;;  %1220 = vmatpush.msra.mxu2 %v1942_v40  ;;  %v2750_v1 = vld [vmem:[#allocation2 + $0x6a] sm:$0xff] }
  0x93   : > { %1349 = vmatpush.msra.mxu0 %v1975_v42  ;;  %1286 = vmatpush.msra.mxu3 %v1957_v49  ;;  %v2816_v42 = vld [vmem:[#allocation2 + $0x92] sm:$0xff] }
  0x94   : > { %1221 = vmatpush.msra.mxu2 %v1941_v46  ;;  %v1952_v46 = vld [vmem:[%s3148_s1 + $0x388] sm:$0xff]  ;;  %v1969_v49 = vld [vmem:[%s3148_s1 + $0x410] sm:$0xff] }
  0x95   : > { %1000 = vmatmul.f32.vlgmr.msrb.gmra.mxu0 %v546_v7  ;;  %1065 = vmatmul.f32.vlgmr.msrb.gmra.mxu1 %v562_v10  ;;  %v1484_v7 = vld [vmem:[%s3152_s5 + $0x28] sm:$0xff]  ;;  %v2768_v10 = vld [vmem:[#allocation2 + $0x7a] sm:$0xff] }
  0x96   : > { %1350 = vmatpush.msra.mxu0 %v1974_v50  ;;  %1222 = vmatpush.msra.mxu2 %v1940_v55 }
  0x97   : > { %1287 = vmatpush.msra.mxu3 %v1956_v56 }
  0x98   : > { %1351 = vmatpush.msra.mxu0 %v1973_v59  ;;  %1223 = vmatpush.msra.mxu2 %v1939_v2  ;;  %v1481_v59 = vld [vmem:[%s3152_s5 + $0x10] sm:$0xff]  ;;  %v1935_v2 = vld [vmem:[%s3148_s1 + $0x300] sm:$0xff] }
  0x99   : > { %873 = vmatmul.f32.gmra.mxu2 %v660_v14  ;;  %1288 = vmatpush.msra.mxu3 %v1955_v3  ;;  %v1968_v3 = vld [vmem:[%s3148_s1 + $0x408] sm:$0xff] }
  0x9a   : > { %938 = vmatmul.f32.gmra.mxu3 %v531_v15  ;;  %1352 = vmatpush.msra.mxu0 %v1972_v6  ;;  %v1971_v15 = vld [vmem:[%s3148_s1 + $0x420] sm:$0xff] }
  0x9b   : > { %1224 = vmatpush.msra.mxu2 %v1938_v11 }
  0x9c   : > { %1353 = vmatpush.msra.mxu0 %v1971_v15  ;;  %v1480_v15 = vld [vmem:[%s3152_s5 + $0x8] sm:$0xff] }
  0x9d   : > { %1003 = vmatmul.f32.gmra.mxu0 %v547_v23  ;;  %1068 = vmatmul.f32.gmra.mxu1 %v563_v24 }
  0x9e   : > { %1225 = vmatpush.msra.mxu2 %v1937_v32  ;;  %1354 = vmatpush.msra.mxu0 %v1970_v34 }
  0xa0   : > { %1355 = vmatpush.msra.mxu0 %v1969_v49  ;;  %v2894_v49 = vld [vmem:[#allocation2 + $0xc2] sm:$0xff] }
  0xa1   : > { %876 = vmatmul.f32.gmra.mxu2 %v2662_v26 }
  0xa2   : > { %941 = vmatmul.f32.gmra.mxu3 %v2338_v4  ;;  %v2679_v4 = vld [vmem:[#allocation2 + $0x3a] sm:$0xff]  ;;  %1356 = vmatpush.msra.mxu0 %v1968_v3 }
  0xa5   : > { %1006 = vmatmul.f32.gmra.mxu0 %v2340_v5  ;;  %1071 = vmatmul.f32.gmra.mxu1 %v659_v0  ;;  %v1488_v5 = vld [vmem:[%s3152_s5 + $0x48] sm:$0xff]  ;;  %v1485_v0 = vld [vmem:[%s3152_s5 + $0x30] sm:$0xff] }
  0xa6   : > { %1501 = vmatpush.msra.mxu1 %v1488_v5 }
  0xa9   : > { %879 = vmatmul.f32.gmra.mxu2 %v2679_v4 }
  0xaa   : > { %944 = vmatmul.f32.gmra.mxu3 %v2386_v20  ;;  %v2696_v20 = vld [vmem:[#allocation2 + $0x4a] sm:$0xff] }
  0xad   : > { %1009 = vmatmul.f32.gmra.mxu0 %v2388_v21  ;;  %1074 = vmatmul.f32.gmra.mxu1 %v660_v14  ;;  %v1487_v21 = vld [vmem:[%s3152_s5 + $0x40] sm:$0xff]  ;;  %v1954_v14 = vld [vmem:[%s3148_s1 + $0x398] sm:$0xff] }
  0xae   : > { %1502 = vmatpush.msra.mxu1 %v1487_v21  ;;  %1289 = vmatpush.msra.mxu3 %v1954_v14  ;;  %v1936_v21 = vld [vmem:[%s3148_s1 + $0x308] sm:$0xff] }
  0xaf   : > { %1226 = vmatpush.msra.mxu2 %v1936_v21 }
  0xb0   : > { %1503 = vmatpush.msra.mxu1 %v1486_v51  ;;  %1290 = vmatpush.msra.mxu3 %v1953_v33 }
  0xb1   : > { %882 = vmatmul.f32.gmra.mxu2 %v2696_v20 }
  0xb2   : > { %947 = vmatmul.f32.gmra.mxu3 %v2434_v36  ;;  %1504 = vmatpush.msra.mxu1 %v1485_v0  ;;  %v2840_v0 = vld [vmem:[#allocation2 + $0x9a] sm:$0xff] }
  0xb3   : > { %1291 = vmatpush.msra.mxu3 %v1952_v46  ;;  %1227 = vmatpush.msra.mxu2 %v1935_v2 }
  0xb4   : > { %1505 = vmatpush.msra.mxu1 %v1484_v7 }
  0xb5   : > { %1012 = vmatmul.f32.gmra.mxu0 %v2436_v37  ;;  %1077 = vmatmul.f32.gmra.mxu1 %v2662_v26 }
  0xb6   : > { %1506 = vmatpush.msra.mxu1 %v1483_v25 }
  0xb8   : > { %1507 = vmatpush.msra.mxu1 %v1482_v41 }
  0xb9   : > { %885 = vmatmul.f32.gmra.mxu2 %v2714_v43 }
  0xba   : > { %950 = vmatmul.f32.gmra.mxu3 %v2482_v52  ;;  %1508 = vmatpush.msra.mxu1 %v1481_v59 }
  0xbc   : > { %1509 = vmatpush.msra.mxu1 %v1480_v15 }
  0xbd   : > { %1015 = vmatmul.f32.gmra.mxu0 %v2484_v53  ;;  %1080 = vmatmul.f32.gmra.mxu1 %v2679_v4 }
  0xc1   : > { %888 = vmatmul.f32.gmra.mxu2 %v2732_v54 }
  0xc2   : > { %953 = vmatmul.f32.gmra.mxu3 %v2530_v8 }
  0xc5   : > { %1018 = vmatmul.f32.gmra.mxu0 %v2532_v9  ;;  %1083 = vmatmul.f32.gmra.mxu1 %v2696_v20 }
  0xc9   : > { %891 = vmatmul.f32.gmra.mxu2 %v2750_v1 }
  0xca   : > { %956 = vmatmul.f32.gmra.mxu3 %v2578_v30 }
  0xcd   : > { %1021 = vmatmul.f32.gmra.mxu0 %v2580_v31  ;;  %1086 = vmatmul.f32.gmra.mxu1 %v2714_v43 }
  0xd1   : > { %894 = vmatmul.f32.gmra.mxu2 %v2768_v10  ;;  %v2781_v16 = vpop.f32.mrf.mxu0 }
  0xd2   : > { %959 = vmatmul.f32.gmra.mxu3 %v2611_v47  ;;  %v2783_v17 = vpop.f32.mrf.mxu1 }
  0xd4   : > { %v765_v22 = vpop.f32.mrf.mxu2 }
  0xd5   : > { %v830_v23 = vpop.f32.mrf.mxu3  ;;  %1024 = vmatmul.f32.gmra.mxu0 %v2613_v48  ;;  %1089 = vmatmul.f32.gmra.mxu1 %v2732_v54 }
  0xd6   : > { %v2785_v24 = vadd.f32 %v830_v23, %v765_v22  ;;  %v2864_v22 = vld [vmem:[#allocation2 + $0xaa] sm:$0xff]  ;;  %v1967_v23 = vld [vmem:[%s3148_s1 + $0x400] sm:$0xff] }
  0xd7   : > { %1357 = vmatpush.msra.mxu0 %v1967_v23  ;;  %v807_v23 = vadd.f32 %v2783_v17, %v2781_v16 }
  0xd9   : > { %897 = vmatmul.f32.gmra.mxu2 %v2792_v27 }
  0xda   : > { %962 = vmatmul.f32.gmra.mxu3 %v2629_v57  ;;  %v2805_v35 = vpop.f32.mrf.mxu0  ;;  %v2807_v38 = vpop.f32.mrf.mxu1 }
  0xdc   : > { %v768_v39 = vpop.f32.mrf.mxu2 }
  0xdd   : > { %v833_v5 = vpop.f32.mrf.mxu3  ;;  %1027 = vmatmul.f32.gmra.mxu0 %v2631_v58  ;;  %1092 = vmatmul.f32.gmra.mxu1 %v2750_v1 }
  0xde   : > { %v2809_v40 = vadd.f32 %v833_v5, %v768_v39  ;;  %v2879_v39 = vld [vmem:[#allocation2 + $0xb2] sm:$0xff] }
  0xe1   : > { %900 = vmatmul.f32.gmra.mxu2 %v2816_v42 }
  0xe2   : > { %965 = vmatmul.f32.gmra.mxu3 %v2320_v62  ;;  %v2829_v50 = vpop.f32.mrf.mxu0  ;;  %v2831_v51 = vpop.f32.mrf.mxu1 }
  0xe4   : > { %v771_v62 = vpop.f32.mrf.mxu2 }
  0xe5   : > { %v836_v55 = vpop.f32.mrf.mxu3  ;;  %1030 = vmatmul.f32.gmra.mxu0 %v2322_v63  ;;  %1095 = vmatmul.f32.gmra.mxu1 %v2768_v10  ;;  %v1951_v63 = vld [vmem:[%s3148_s1 + $0x380] sm:$0xff] }
  0xe6   : > { %v2833_v56 = vadd.f32 %v836_v55, %v771_v62  ;;  %1292 = vmatpush.msra.mxu3 %v1951_v63 }
  0xe9   : > { %903 = vmatmul.f32.gmra.mxu2 %v2840_v0 }
  0xea   : > { %968 = vmatmul.f32.gmra.mxu3 %v2362_v12  ;;  %v2853_v6 = vpop.f32.mrf.mxu0  ;;  %v2855_v7 = vpop.f32.mrf.mxu1 }
  0xec   : > { %v774_v12 = vpop.f32.mrf.mxu2 }
  0xed   : > { %v839_v11 = vpop.f32.mrf.mxu3  ;;  %1033 = vmatmul.f32.gmra.mxu0 %v2364_v13  ;;  %1098 = vmatmul.f32.gmra.mxu1 %v2792_v27 }
  0xee   : > { %v2857_v14 = vadd.f32 %v839_v11, %v774_v12 }
  0xf1   : > { %906 = vmatmul.f32.gmra.mxu2 %v2864_v22 }
  0xf2   : > { %971 = vmatmul.f32.gmra.mxu3 %v2410_v28  ;;  %v2871_v25 = vpop.f32.mrf.mxu0  ;;  %v2873_v13 = vpop.f32.mrf.mxu1  ;;  %v1479_v28 = vld [vmem:[%s3152_s5] sm:$0xff] }
  0xf3   : > { %1510 = vmatpush.msra.mxu1 %v1479_v28 }
  0xf4   : > { %v777_v32 = vpop.f32.mrf.mxu2 }
  0xf5   : > { %v842_v33 = vpop.f32.mrf.mxu3  ;;  %1036 = vmatmul.f32.gmra.mxu0 %v2412_v29  ;;  %1101 = vmatmul.f32.gmra.mxu1 %v2816_v42 }
  0xf6   : > { %v2875_v34 = vadd.f32 %v842_v33, %v777_v32 }
  0xf9   : > { %909 = vmatmul.f32.gmra.mxu2 %v2879_v39 }
  0xfa   : > { %974 = vmatmul.f32.gmra.mxu3 %v2458_v44  ;;  %v2886_v5 = vpop.f32.mrf.mxu0  ;;  %v2888_v41 = vpop.f32.mrf.mxu1 }
  0xfc   : > { %v780_v21 = vpop.f32.mrf.mxu2 }
  0xfd   : > { %v845_v46 = vpop.f32.mrf.mxu3  ;;  %1039 = vmatmul.f32.gmra.mxu0 %v2460_v45  ;;  %1104 = vmatmul.f32.gmra.mxu1 %v2840_v0  ;;  %v2906_v45 = vld [vmem:[#allocation2 + $0xca] sm:$0xff] }
  0xfe   : > { %v2890_v29 = vadd.f32 %v845_v46, %v780_v21  ;;  %v1464_v46 = vld [vmem:[%s2187_s26 + $0x8] sm:$0xff] }
 0x101   : > { %912 = vmatmul.f32.gmra.mxu2 %v2894_v49 }
 0x102   : > { %977 = vmatmul.f32.gmra.mxu3 %v2506_v60  ;;  %v2898_v62 = vpop.f32.mrf.mxu0  ;;  %v2900_v44 = vpop.f32.mrf.mxu1 }
 0x104   : > { %v783_v55 = vpop.f32.mrf.mxu2 }
 0x105   : > { %v848_v59 = vpop.f32.mrf.mxu3  ;;  %1042 = vmatmul.f32.gmra.mxu0 %v2508_v61  ;;  %1107 = vmatmul.f32.gmra.mxu1 %v2864_v22 }
 0x106   : > { %v2902_v2 = vadd.f32 %v848_v59, %v783_v55  ;;  %v810_v55 = vadd.f32 %v2807_v38, %v2805_v35  ;;  %v813_v35 = vadd.f32 %v2831_v51, %v2829_v50  ;;  %v816_v50 = vadd.f32 %v2855_v7, %v2853_v6 }
 0x107   : > { %v819_v6 = vadd.f32 %v2873_v13, %v2871_v25  ;;  %v822_v25 = vadd.f32 %v2888_v41, %v2886_v5  ;;  %v825_v5 = vadd.f32 %v2900_v44, %v2898_v62 }
 0x109   : > { %915 = vmatmul.f32.gmra.mxu2 %v2906_v45 }
 0x10a   : > { %980 = vmatmul.f32.gmra.mxu3 %v2554_v18  ;;  %v2910_v60 = vpop.f32.mrf.mxu0  ;;  %v2912_v63 = vpop.f32.mrf.mxu1  ;;  %v1463_v18 = vld [vmem:[%s2187_s26] sm:$0xff] }
 0x10b   : > { %v828_v62 = vadd.f32 %v2912_v63, %v2910_v60 }
 0x10c   : > { %v786_v3 = vpop.f32.mrf.mxu2 }
 0x10d   : > { %v851_v12 = vpop.f32.mrf.mxu3  ;;  %1045 = vmatmul.f32.gmra.mxu0 %v2556_v19  ;;  %1110 = vmatmul.f32.gmra.mxu1 %v2879_v39 }
 0x10e   : > { %v2914_v11 = vadd.f32 %v851_v12, %v786_v3 }
 0x111   : > { %1228 = vmatmul.f32.vlgmr.msra.gmra.mxu2 %v2434_v36 }
 0x112   : > { %1293 = vmatmul.f32.vlgmr.msra.gmra.mxu3 %v2436_v37  ;;  %v1001_v61 = vpop.f32.mrf.mxu0  ;;  %v1066_v15 = vpop.f32.mrf.mxu1 }
 0x114   : > { %v871_v32 = vpop.f32.mrf.mxu2 }
 0x115   : > { %v936_v33 = vpop.f32.mrf.mxu3  ;;  %v872_v28 = vadd.f32 %v871_v32, %v807_v23  ;;  %1358 = vmatmul.f32.vlgmr.msra.gmra.mxu0 %v2662_v26  ;;  %1511 = vmatmul.f32.vlgmr.msra.gmra.mxu1 %v1463_v18 }
 0x117   : > { %v937_v19 = vadd.f32 %v936_v33, %v872_v28  ;;  %v1466_v33 = vld [vmem:[%s2187_s26 + $0x18] sm:$0xff] }
 0x119   : > { %v1002_v21 = vadd.f32 %v1001_v61, %v937_v19  ;;  %1231 = vmatmul.f32.gmra.mxu2 %v2482_v52  ;;  %v1465_v61 = vld [vmem:[%s2187_s26 + $0x10] sm:$0xff] }
 0x11a   : > { %1296 = vmatmul.f32.gmra.mxu3 %v2484_v53  ;;  %v1004_v36 = vpop.f32.mrf.mxu0  ;;  %v1069_v37 = vpop.f32.mrf.mxu1 }
 0x11b   : > { %v2929_v16 = vadd.f32 %v1066_v15, %v1002_v21 }
 0x11c   : > { %v874_v17 = vpop.f32.mrf.mxu2 }
 0x11d   : > { %v939_v59 = vpop.f32.mrf.mxu3  ;;  %v875_v3 = vadd.f32 %v874_v17, %v810_v55  ;;  %1361 = vmatmul.f32.gmra.mxu0 %v2679_v4  ;;  %1514 = vmatmul.f32.gmra.mxu1 %v1464_v46 }
 0x11f   : > { %v940_v26 = vadd.f32 %v939_v59, %v875_v3  ;;  %v1468_v3 = vld [vmem:[%s2187_s26 + $0x28] sm:$0xff] }
 0x121   : > { %v1005_v12 = vadd.f32 %v1004_v36, %v940_v26  ;;  %1234 = vmatmul.f32.gmra.mxu2 %v2530_v8 }
 0x122   : > { %1299 = vmatmul.f32.gmra.mxu3 %v2532_v9  ;;  %v1007_v52 = vpop.f32.mrf.mxu0  ;;  %v1072_v53 = vpop.f32.mrf.mxu1 }
 0x123   : > { %v2937_v38 = vadd.f32 %v1069_v37, %v1005_v12  ;;  %v1467_v37 = vld [vmem:[%s2187_s26 + $0x20] sm:$0xff] }
 0x124   : > { %v877_v15 = vpop.f32.mrf.mxu2 }
 0x125   : > { %v942_v18 = vpop.f32.mrf.mxu3  ;;  %v878_v23 = vadd.f32 %v877_v15, %v813_v35  ;;  %1364 = vmatmul.f32.gmra.mxu0 %v2696_v20  ;;  %1517 = vmatmul.f32.gmra.mxu1 %v1465_v61  ;;  %v1469_v15 = vld [vmem:[%s2187_s26 + $0x30] sm:$0xff] }
 0x127   : > { %v943_v4 = vadd.f32 %v942_v18, %v878_v23 }
 0x129   : > { %v1008_v32 = vadd.f32 %v1007_v52, %v943_v4  ;;  %1237 = vmatmul.f32.gmra.mxu2 %v2578_v30 }
 0x12a   : > { %1302 = vmatmul.f32.gmra.mxu3 %v2580_v31  ;;  %v1010_v8 = vpop.f32.mrf.mxu0  ;;  %v1075_v9 = vpop.f32.mrf.mxu1 }
 0x12b   : > { %v2945_v51 = vadd.f32 %v1072_v53, %v1008_v32  ;;  %v1137_v53 = vld [vmem:[#allocation2 + $0x79] sm:$0xff]  ;;  %v1138_v32 = vld [vmem:[#allocation2 + $0x81] sm:$0xff] }
 0x12c   : > { %v880_v28 = vpop.f32.mrf.mxu2 }
 0x12d   : > { %v945_v19 = vpop.f32.mrf.mxu3  ;;  %v881_v21 = vadd.f32 %v880_v28, %v816_v50  ;;  %1367 = vmatmul.f32.gmra.mxu0 %v2714_v43  ;;  %1520 = vmatmul.f32.gmra.mxu1 %v1466_v33  ;;  %v1470_v28 = vld [vmem:[%s2187_s26 + $0x38] sm:$0xff] }
 0x12f   : > { %v946_v20 = vadd.f32 %v945_v19, %v881_v21 }
 0x131   : > { %v1011_v36 = vadd.f32 %v1010_v8, %v946_v20  ;;  %1240 = vmatmul.f32.gmra.mxu2 %v2611_v47 }
 0x132   : > { %1305 = vmatmul.f32.gmra.mxu3 %v2613_v48  ;;  %v1013_v30 = vpop.f32.mrf.mxu0  ;;  %v1078_v31 = vpop.f32.mrf.mxu1 }
 0x133   : > { %v2953_v7 = vadd.f32 %v1075_v9, %v1011_v36  ;;  %v1139_v36 = vld [vmem:[#allocation2 + $0x91] sm:$0xff] }
 0x134   : > { %v883_v46 = vpop.f32.mrf.mxu2 }
 0x135   : > { %v948_v55 = vpop.f32.mrf.mxu3  ;;  %v884_v17 = vadd.f32 %v883_v46, %v819_v6  ;;  %1370 = vmatmul.f32.gmra.mxu0 %v2732_v54  ;;  %1523 = vmatmul.f32.gmra.mxu1 %v1467_v37  ;;  %v1121_v54 = vld [vmem:[#allocation2 + $0x78] sm:$0xff]  ;;  %v1471_v46 = vld [vmem:[%s2187_s26 + $0x40] sm:$0xff] }
 0x137   : > { %v949_v43 = vadd.f32 %v948_v55, %v884_v17 }
 0x139   : > { %v1014_v59 = vadd.f32 %v1013_v30, %v949_v43  ;;  %1243 = vmatmul.f32.gmra.mxu2 %v2629_v57  ;;  %v1140_v43 = vld [vmem:[#allocation2 + $0x99] sm:$0xff] }
 0x13a   : > { %1308 = vmatmul.f32.gmra.mxu3 %v2631_v58  ;;  %v1016_v47 = vpop.f32.mrf.mxu0  ;;  %v1081_v48 = vpop.f32.mrf.mxu1 }
 0x13b   : > { %v2961_v13 = vadd.f32 %v1078_v31, %v1014_v59 }
 0x13c   : > { %v886_v26 = vpop.f32.mrf.mxu2 }
 0x13d   : > { %v951_v12 = vpop.f32.mrf.mxu3  ;;  %v887_v52 = vadd.f32 %v886_v26, %v822_v25  ;;  %1373 = vmatmul.f32.gmra.mxu0 %v2750_v1  ;;  %1526 = vmatmul.f32.gmra.mxu1 %v1468_v3  ;;  %v1122_v1 = vld [vmem:[#allocation2 + $0x80] sm:$0xff]  ;;  %v1472_v25 = vld [vmem:[%s2187_s26 + $0x48] sm:$0xff] }
 0x13f   : > { %v952_v57 = vadd.f32 %v951_v12, %v887_v52 }
 0x141   : > { %v1017_v61 = vadd.f32 %v1016_v47, %v952_v57  ;;  %1246 = vmatmul.f32.gmra.mxu2 %v1121_v54 }
 0x142   : > { %1311 = vmatmul.f32.gmra.mxu3 %v1137_v53  ;;  %v1019_v58 = vpop.f32.mrf.mxu0  ;;  %v1084_v35 = vpop.f32.mrf.mxu1 }
 0x143   : > { %v2967_v41 = vadd.f32 %v1081_v48, %v1017_v61 }
 0x144   : > { %v889_v18 = vpop.f32.mrf.mxu2 }
 0x145   : > { %v954_v23 = vpop.f32.mrf.mxu3  ;;  %v890_v4 = vadd.f32 %v889_v18, %v825_v5  ;;  %1376 = vmatmul.f32.gmra.mxu0 %v2768_v10  ;;  %1529 = vmatmul.f32.gmra.mxu1 %v1469_v15  ;;  %v1123_v10 = vld [vmem:[#allocation2 + $0x90] sm:$0xff] }
 0x147   : > { %v955_v8 = vadd.f32 %v954_v23, %v890_v4 }
 0x149   : > { %v1020_v9 = vadd.f32 %v1019_v58, %v955_v8  ;;  %1249 = vmatmul.f32.gmra.mxu2 %v1122_v1 }
 0x14a   : > { %1314 = vmatmul.f32.gmra.mxu3 %v1138_v32  ;;  %v1022_v33 = vpop.f32.mrf.mxu0  ;;  %v1087_v50 = vpop.f32.mrf.mxu1 }
 0x14b   : > { %v2973_v44 = vadd.f32 %v1084_v35, %v1020_v9  ;;  %v1473_v35 = vld [vmem:[%s2187_s26 + $0x50] sm:$0xff]  ;;  %v1474_v9 = vld [vmem:[%s2187_s26 + $0x58] sm:$0xff] }
 0x14c   : > { %v892_v19 = vpop.f32.mrf.mxu2 }
 0x14d   : > { %v957_v21 = vpop.f32.mrf.mxu3  ;;  %v893_v20 = vadd.f32 %v892_v19, %v828_v62  ;;  %1379 = vmatmul.f32.gmra.mxu0 %v2792_v27  ;;  %1532 = vmatmul.f32.gmra.mxu1 %v1470_v28  ;;  %v1124_v27 = vld [vmem:[#allocation2 + $0x98] sm:$0xff] }
 0x14f   : > { %v958_v30 = vadd.f32 %v957_v21, %v893_v20 }
 0x151   : > { %v1023_v31 = vadd.f32 %v1022_v33, %v958_v30  ;;  %1252 = vmatmul.f32.gmra.mxu2 %v1123_v10 }
 0x152   : > { %1317 = vmatmul.f32.gmra.mxu3 %v1139_v36  ;;  %v1025_v37 = vpop.f32.mrf.mxu0  ;;  %v1090_v6 = vpop.f32.mrf.mxu1  ;;  %v1475_v36 = vld [vmem:[%s2187_s26 + $0x60] sm:$0xff] }
 0x153   : > { %v2977_v55 = vadd.f32 %v1087_v50, %v1023_v31 }
 0x154   : > { %v895_v60 = vpop.f32.mrf.mxu2 }
 0x155   : > { %v960_v63 = vpop.f32.mrf.mxu3  ;;  %v896_v17 = vadd.f32 %v895_v60, %v2785_v24  ;;  %1382 = vmatmul.f32.gmra.mxu0 %v2816_v42  ;;  %1535 = vmatmul.f32.gmra.mxu1 %v1471_v46  ;;  %v1125_v24 = vld [vmem:[#allocation2 + $0xa8] sm:$0xff] }
 0x156   : > { %v1141_v42 = vld [vmem:[#allocation2 + $0xa9] sm:$0xff] }
 0x157   : > { %v961_v59 = vadd.f32 %v960_v63, %v896_v17 }
 0x159   : > { %v1026_v47 = vadd.f32 %v1025_v37, %v961_v59  ;;  %1255 = vmatmul.f32.gmra.mxu2 %v1124_v27  ;;  %v1476_v27 = vld [vmem:[%s2187_s26 + $0x68] sm:$0xff] }
 0x15a   : > { %1320 = vmatmul.f32.gmra.mxu3 %v1140_v43  ;;  %v1028_v48 = vpop.f32.mrf.mxu0  ;;  %v1093_v3 = vpop.f32.mrf.mxu1 }
 0x15b   : > { %v2982_v26 = vadd.f32 %v1090_v6, %v1026_v47 }
 0x15c   : > { %v898_v12 = vpop.f32.mrf.mxu2 }
 0x15d   : > { %v963_v52 = vpop.f32.mrf.mxu3  ;;  %v899_v54 = vadd.f32 %v898_v12, %v2809_v40  ;;  %1385 = vmatmul.f32.gmra.mxu0 %v2840_v0  ;;  %1538 = vmatmul.f32.gmra.mxu1 %v1472_v25  ;;  %v1126_v40 = vld [vmem:[#allocation2 + $0xb0] sm:$0xff] }
 0x15e   : > { %v1142_v0 = vld [vmem:[#allocation2 + $0xb1] sm:$0xff] }
 0x15f   : > { %v964_v53 = vadd.f32 %v963_v52, %v899_v54  ;;  %v1161_v52 = vld [vmem:[#allocation2 + $0xda] sm:$0xff] }
 0x161   : > { %v1029_v57 = vadd.f32 %v1028_v48, %v964_v53  ;;  %1258 = vmatmul.f32.gmra.mxu2 %v1125_v24  ;;  %v1477_v24 = vld [vmem:[%s2187_s26 + $0x70] sm:$0xff] }
 0x162   : > { %1323 = vmatmul.f32.gmra.mxu3 %v1141_v42  ;;  %v1031_v61 = vpop.f32.mrf.mxu0  ;;  %v1096_v58 = vpop.f32.mrf.mxu1 }
 0x163   : > { %v2987_v15 = vadd.f32 %v1093_v3, %v1029_v57 }
 0x164   : > { %v901_v5 = vpop.f32.mrf.mxu2 }
 0x165   : > { %v966_v18 = vpop.f32.mrf.mxu3  ;;  %v902_v23 = vadd.f32 %v901_v5, %v2833_v56  ;;  %1388 = vmatmul.f32.gmra.mxu0 %v2864_v22  ;;  %1541 = vmatmul.f32.gmra.mxu1 %v1473_v35  ;;  %v1127_v56 = vld [vmem:[#allocation2 + $0xc0] sm:$0xff] }
 0x166   : > { %v1143_v22 = vld [vmem:[#allocation2 + $0xc1] sm:$0xff] }
 0x167   : > { %v967_v4 = vadd.f32 %v966_v18, %v902_v23  ;;  %v1162_v18 = vld [vmem:[#allocation2 + $0xe2] sm:$0xff] }
 0x169   : > { %v1032_v1 = vadd.f32 %v1031_v61, %v967_v4  ;;  %1261 = vmatmul.f32.gmra.mxu2 %v1126_v40  ;;  %v1146_v61 = vld [vmem:[#allocation2 + $0xe1] sm:$0xff]  ;;  %v1478_v40 = vld [vmem:[%s2187_s26 + $0x78] sm:$0xff] }
 0x16a   : > { %1326 = vmatmul.f32.gmra.mxu3 %v1142_v0  ;;  %v1034_v32 = vpop.f32.mrf.mxu0  ;;  %v1099_v8 = vpop.f32.mrf.mxu1 }
 0x16b   : > { %v2992_v33 = vadd.f32 %v1096_v58, %v1032_v1 }
 0x16c   : > { %v904_v50 = vpop.f32.mrf.mxu2 }
 0x16d   : > { %v969_v28 = vpop.f32.mrf.mxu3  ;;  %v905_v62 = vadd.f32 %v904_v50, %v2857_v14  ;;  %1391 = vmatmul.f32.gmra.mxu0 %v2879_v39  ;;  %1544 = vmatmul.f32.gmra.mxu1 %v1474_v9  ;;  %v1128_v14 = vld [vmem:[#allocation2 + $0xc8] sm:$0xff] }
 0x16e   : > { %v1144_v39 = vld [vmem:[#allocation2 + $0xc9] sm:$0xff] }
 0x16f   : > { %v970_v19 = vadd.f32 %v969_v28, %v905_v62  ;;  %v3019_v62 = vld [vmem:[%s3153_s6] ss:$0 sm:$0xff] }
 0x171   : > { %v1035_v21 = vadd.f32 %v1034_v32, %v970_v19  ;;  %1264 = vmatmul.f32.gmra.mxu2 %v1127_v56 }
 0x172   : > { %1329 = vmatmul.f32.gmra.mxu3 %v1143_v22  ;;  %v1037_v20 = vpop.f32.mrf.mxu0  ;;  %v1102_v10 = vpop.f32.mrf.mxu1 }
 0x173   : > { %v2997_v30 = vadd.f32 %v1099_v8, %v1035_v21 }
 0x174   : > { %v907_v31 = vpop.f32.mrf.mxu2 }
 0x175   : > { %v972_v37 = vpop.f32.mrf.mxu3  ;;  %v908_v6 = vadd.f32 %v907_v31, %v2875_v34  ;;  %1394 = vmatmul.f32.gmra.mxu0 %v2894_v49  ;;  %1547 = vmatmul.f32.gmra.mxu1 %v1475_v36  ;;  %v1129_v34 = vld [vmem:[#allocation2 + $0xd8] sm:$0xff]  ;;  %v3036_v31 = vld [vmem:[%s3150_s3] ss:$0 sm:$0xff] }
 0x176   : > { %v1145_v49 = vld [vmem:[#allocation2 + $0xd9] sm:$0xff] }
 0x177   : > { %v973_v46 = vadd.f32 %v972_v37, %v908_v6 }
 0x179   : > { %v1038_v60 = vadd.f32 %v1037_v20, %v973_v46  ;;  %1267 = vmatmul.f32.gmra.mxu2 %v1128_v14 }
 0x17a   : > { %1332 = vmatmul.f32.gmra.mxu3 %v1144_v39  ;;  %v1040_v63 = vpop.f32.mrf.mxu0  ;;  %v1105_v17 = vpop.f32.mrf.mxu1 }
 0x17b   : > { %v3002_v43 = vadd.f32 %v1102_v10, %v1038_v60  ;;  %v3030_v10 = vld [vmem:[%s3154_s7] ss:$0 sm:$0xff] }
 0x17c   : > { %v910_v59 = vpop.f32.mrf.mxu2 }
 0x17d   : > { %v975_v47 = vpop.f32.mrf.mxu3  ;;  %v911_v48 = vadd.f32 %v910_v59, %v2890_v29  ;;  %1397 = vmatmul.f32.gmra.mxu0 %v2906_v45  ;;  %1550 = vmatmul.f32.gmra.mxu1 %v1476_v27  ;;  %v1130_v45 = vld [vmem:[#allocation2 + $0xe0] sm:$0xff] }
 0x17f   : > { %v976_v3 = vadd.f32 %v975_v47, %v911_v48 }
 0x181   : > { %v1041_v25 = vadd.f32 %v1040_v63, %v976_v3  ;;  %1270 = vmatmul.f32.gmra.mxu2 %v1129_v34 }
 0x182   : > { %1335 = vmatmul.f32.gmra.mxu3 %v1145_v49  ;;  %v1043_v12 = vpop.f32.mrf.mxu0  ;;  %v1108_v54 = vpop.f32.mrf.mxu1 }
 0x183   : > { %v3007_v42 = vadd.f32 %v1105_v17, %v1041_v25 }
 0x184   : > { %v913_v53 = vpop.f32.mrf.mxu2 }
 0x185   : > { %v978_v57 = vpop.f32.mrf.mxu3  ;;  %v914_v29 = vadd.f32 %v913_v53, %v2902_v2  ;;  %1400 = vmatmul.f32.gmra.mxu0 %v1161_v52  ;;  %1553 = vmatmul.f32.gmra.mxu1 %v1477_v24 }
 0x187   : > { %v979_v58 = vadd.f32 %v978_v57, %v914_v29 }
 0x189   : > { %v1044_v35 = vadd.f32 %v1043_v12, %v979_v58  ;;  %1273 = vmatmul.f32.gmra.mxu2 %v1130_v45 }
 0x18a   : > { %1338 = vmatmul.f32.gmra.mxu3 %v1146_v61  ;;  %v1046_v5 = vpop.f32.mrf.mxu0  ;;  %v1111_v23 = vpop.f32.mrf.mxu1 }
 0x18b   : > { %v3011_v0 = vadd.f32 %v1108_v54, %v1044_v35 }
 0x18c   : > { %v916_v4 = vpop.f32.mrf.mxu2 }
 0x18d   : > { %v981_v1 = vpop.f32.mrf.mxu3  ;;  %v917_v32 = vadd.f32 %v916_v4, %v2914_v11  ;;  %1403 = vmatmul.f32.gmra.mxu0 %v1162_v18  ;;  %1556 = vmatmul.f32.gmra.mxu1 %v1478_v40  ;;  %v3024_v11 = vld [vmem:[%s3149_s2] ss:$0 sm:$0xff] }
 0x18f   : > { %v982_v2 = vadd.f32 %v981_v1, %v917_v32 }
 0x191   : > { %v1047_v8 = vadd.f32 %v1046_v5, %v982_v2 }
 0x192   : > { %v1359_v9 = vpop.f32.mrf.mxu0  ;;  %v1512_v50 = vpop.f32.mrf.mxu1 }
 0x193   : > { %v3014_v28 = vadd.f32 %v1111_v23, %v1047_v8  ;;  %v1564_v20 = vmul.f32 %v3019_v62, %v1512_v50 }
 0x194   : > { %v1229_v56 = vpop.f32.mrf.mxu2 }
 0x195   : > { %v1294_v22 = vpop.f32.mrf.mxu3  ;;  %v1584_v39 = vadd.f32 %v3030_v10, %v1564_v20 }
 0x196   : > { %v1295_v19 = vadd.f32 %v1294_v22, %v1229_v56 }
 0x198   : > { %v1360_v21 = vadd.f32 %v1359_v9, %v1295_v19 }
 0x19a   : > { %v1407_v36 = vadd.f32 %v1360_v21, %v2929_v16  ;;  %v1362_v37 = vpop.f32.mrf.mxu0  ;;  %v1515_v6 = vpop.f32.mrf.mxu1 }
 0x19b   : > { %v1565_v16 = vmul.f32 %v3019_v62, %v1515_v6 }
 0x19c   : > { %v1427_v14 = vmul.f32 %v3024_v11, %v1407_v36  ;;  %v1232_v46 = vpop.f32.mrf.mxu2 }
 0x19d   : > { %v1297_v60 = vpop.f32.mrf.mxu3  ;;  %v1585_v25 = vadd.f32 %v3030_v10, %v1565_v16 }
 0x19e   : > { %v1447_v63 = vadd.f32 %v3036_v31, %v1427_v14  ;;  %v1298_v17 = vadd.f32 %v1297_v60, %v1232_v46 }
 0x1a0   : > { %v1600_v27 = vadd.f32 %v1584_v39, %v1447_v63  ;;  %v1363_v59 = vadd.f32 %v1362_v37, %v1298_v17 }
 0x1a2   : > { %v1616_v47 = vmax.f32 %v1600_v27, 0.0  ;;  %v1408_v48 = vadd.f32 %v1363_v59, %v2937_v38  ;;  %v1365_v34 = vpop.f32.mrf.mxu0  ;;  %v1518_v49 = vpop.f32.mrf.mxu1 }
 0x1a3   : > { %v1566_v29 = vmul.f32 %v3019_v62, %v1518_v49 }
 0x1a4   : > { %1632 = vst [vmem:[%s2192_s12] sm:$0xff] %v1616_v47  ;;  %v1428_v3 = vmul.f32 %v3024_v11, %v1408_v48  ;;  %v1235_v12 = vpop.f32.mrf.mxu2 }
 0x1a5   : > { %v1300_v52 = vpop.f32.mrf.mxu3  ;;  %v1586_v5 = vadd.f32 %v3030_v10, %v1566_v29 }
 0x1a6   : > { %v1448_v54 = vadd.f32 %v3036_v31, %v1428_v3  ;;  %v1301_v24 = vadd.f32 %v1300_v52, %v1235_v12 }
 0x1a8   : > { %v1601_v53 = vadd.f32 %v1585_v25, %v1448_v54  ;;  %v1366_v57 = vadd.f32 %v1365_v34, %v1301_v24 }
 0x1aa   : > { %v1617_v45 = vmax.f32 %v1601_v53, 0.0  ;;  %v1409_v38 = vadd.f32 %v1366_v57, %v2945_v51  ;;  %v1368_v61 = vpop.f32.mrf.mxu0  ;;  %v1521_v58 = vpop.f32.mrf.mxu1 }
 0x1ab   : > { %v1567_v2 = vmul.f32 %v3019_v62, %v1521_v58 }
 0x1ac   : > { %1633 = vst [vmem:[%s2192_s12 + $0x8] sm:$0xff] %v1617_v45  ;;  %v1429_v35 = vmul.f32 %v3024_v11, %v1409_v38  ;;  %v1238_v18 = vpop.f32.mrf.mxu2 }
 0x1ad   : > { %v1303_v23 = vpop.f32.mrf.mxu3  ;;  %v1587_v22 = vadd.f32 %v3030_v10, %v1567_v2 }
 0x1ae   : > { %v1449_v40 = vadd.f32 %v3036_v31, %v1429_v35  ;;  %v1304_v4 = vadd.f32 %v1303_v23, %v1238_v18 }
 0x1b0   : > { %v1602_v1 = vadd.f32 %v1586_v5, %v1449_v40  ;;  %v1369_v32 = vadd.f32 %v1368_v61, %v1304_v4 }
 0x1b2   : > { %v1618_v8 = vmax.f32 %v1602_v1, 0.0  ;;  %v1410_v51 = vadd.f32 %v1369_v32, %v2953_v7  ;;  %v1371_v9 = vpop.f32.mrf.mxu0  ;;  %v1524_v50 = vpop.f32.mrf.mxu1 }
 0x1b3   : > { %v1568_v14 = vmul.f32 %v3019_v62, %v1524_v50 }
 0x1b4   : > { %1634 = vst [vmem:[%s2192_s12 + $0x10] sm:$0xff] %v1618_v8  ;;  %v1430_v56 = vmul.f32 %v3024_v11, %v1410_v51  ;;  %v1241_v19 = vpop.f32.mrf.mxu2 }
 0x1b5   : > { %v1306_v21 = vpop.f32.mrf.mxu3  ;;  %v1588_v17 = vadd.f32 %v3030_v10, %v1568_v14 }
 0x1b6   : > { %v1450_v20 = vadd.f32 %v3036_v31, %v1430_v56  ;;  %v1307_v36 = vadd.f32 %v1306_v21, %v1241_v19 }
 0x1b8   : > { %v1603_v37 = vadd.f32 %v1587_v22, %v1450_v20  ;;  %v1372_v6 = vadd.f32 %v1371_v9, %v1307_v36 }
 0x1ba   : > { %v1619_v39 = vmax.f32 %v1603_v37, 0.0  ;;  %v1411_v7 = vadd.f32 %v1372_v6, %v2961_v13  ;;  %v1374_v46 = vpop.f32.mrf.mxu0  ;;  %v1527_v60 = vpop.f32.mrf.mxu1 }
 0x1bb   : > { %v1569_v49 = vmul.f32 %v3019_v62, %v1527_v60 }
 0x1bc   : > { %1635 = vst [vmem:[%s2192_s12 + $0x18] sm:$0xff] %v1619_v39  ;;  %v1431_v63 = vmul.f32 %v3024_v11, %v1411_v7  ;;  %v1244_v27 = vpop.f32.mrf.mxu2 }
 0x1bd   : > { %v1309_v59 = vpop.f32.mrf.mxu3  ;;  %v1589_v54 = vadd.f32 %v3030_v10, %v1569_v49 }
 0x1be   : > { %v1451_v16 = vadd.f32 %v3036_v31, %v1431_v63  ;;  %v1310_v47 = vadd.f32 %v1309_v59, %v1244_v27 }
 0x1c0   : > { %v1604_v48 = vadd.f32 %v1588_v17, %v1451_v16  ;;  %v1375_v34 = vadd.f32 %v1374_v46, %v1310_v47 }
 0x1c2   : > { %v1620_v3 = vmax.f32 %v1604_v48, 0.0  ;;  %v1412_v13 = vadd.f32 %v1375_v34, %v2967_v41  ;;  %v1377_v25 = vpop.f32.mrf.mxu0  ;;  %v1530_v12 = vpop.f32.mrf.mxu1 }
 0x1c3   : > { %v1570_v61 = vmul.f32 %v3019_v62, %v1530_v12 }
 0x1c4   : > { %1636 = vst [vmem:[%s2192_s12 + $0x20] sm:$0xff] %v1620_v3  ;;  %v1432_v52 = vmul.f32 %v3024_v11, %v1412_v13  ;;  %v1247_v24 = vpop.f32.mrf.mxu2 }
 0x1c5   : > { %v1312_v53 = vpop.f32.mrf.mxu3  ;;  %v1590_v23 = vadd.f32 %v3030_v10, %v1570_v61 }
 0x1c6   : > { %v1452_v57 = vadd.f32 %v3036_v31, %v1432_v52  ;;  %v1313_v29 = vadd.f32 %v1312_v53, %v1247_v24 }
 0x1c8   : > { %v1605_v45 = vadd.f32 %v1589_v54, %v1452_v57  ;;  %v1378_v38 = vadd.f32 %v1377_v25, %v1313_v29 }
 0x1ca   : > { %v1621_v58 = vmax.f32 %v1605_v45, 0.0  ;;  %v1413_v41 = vadd.f32 %v1378_v38, %v2973_v44  ;;  %v1380_v35 = vpop.f32.mrf.mxu0  ;;  %v1533_v5 = vpop.f32.mrf.mxu1 }
 0x1cb   : > { %v1571_v51 = vmul.f32 %v3019_v62, %v1533_v5 }
 0x1cc   : > { %1637 = vst [vmem:[%s2192_s12 + $0x28] sm:$0xff] %v1621_v58  ;;  %v1433_v18 = vmul.f32 %v3024_v11, %v1413_v41  ;;  %v1250_v40 = vpop.f32.mrf.mxu2 }
 0x1cd   : > { %v1315_v4 = vpop.f32.mrf.mxu3  ;;  %v1591_v19 = vadd.f32 %v3030_v10, %v1571_v51 }
 0x1ce   : > { %v1453_v1 = vadd.f32 %v3036_v31, %v1433_v18  ;;  %v1316_v32 = vadd.f32 %v1315_v4, %v1250_v40 }
 0x1d0   : > { %v1606_v2 = vadd.f32 %v1590_v23, %v1453_v1  ;;  %v1381_v8 = vadd.f32 %v1380_v35, %v1316_v32 }
 0x1d2   : > { %v1622_v9 = vmax.f32 %v1606_v2, 0.0  ;;  %v1414_v44 = vadd.f32 %v1381_v8, %v2977_v55  ;;  %v1383_v50 = vpop.f32.mrf.mxu0  ;;  %v1536_v56 = vpop.f32.mrf.mxu1 }
 0x1d3   : > { %v1572_v39 = vmul.f32 %v3019_v62, %v1536_v56 }
 0x1d4   : > { %1638 = vst [vmem:[%s2192_s12 + $0x30] sm:$0xff] %v1622_v9  ;;  %v1434_v22 = vmul.f32 %v3024_v11, %v1414_v44  ;;  %v1253_v21 = vpop.f32.mrf.mxu2 }
 0x1d5   : > { %v1318_v20 = vpop.f32.mrf.mxu3  ;;  %v1592_v17 = vadd.f32 %v3030_v10, %v1572_v39 }
 0x1d6   : > { %v1454_v36 = vadd.f32 %v3036_v31, %v1434_v22  ;;  %v1319_v37 = vadd.f32 %v1318_v20, %v1253_v21 }
 0x1d8   : > { %v1607_v6 = vadd.f32 %v1591_v19, %v1454_v36  ;;  %v1384_v14 = vadd.f32 %v1383_v50, %v1319_v37 }
 0x1da   : > { %v1623_v7 = vmax.f32 %v1607_v6, 0.0  ;;  %v1415_v55 = vadd.f32 %v1384_v14, %v2982_v26  ;;  %v1386_v46 = vpop.f32.mrf.mxu0  ;;  %v1539_v60 = vpop.f32.mrf.mxu1 }
 0x1db   : > { %v1573_v49 = vmul.f32 %v3019_v62, %v1539_v60 }
 0x1dc   : > { %1639 = vst [vmem:[%s2192_s12 + $0x38] sm:$0xff] %v1623_v7  ;;  %v1435_v63 = vmul.f32 %v3024_v11, %v1415_v55  ;;  %v1256_v27 = vpop.f32.mrf.mxu2 }
 0x1dd   : > { %v1321_v59 = vpop.f32.mrf.mxu3  ;;  %v1593_v52 = vadd.f32 %v3030_v10, %v1573_v49 }
 0x1de   : > { %v1455_v16 = vadd.f32 %v3036_v31, %v1435_v63  ;;  %v1322_v47 = vadd.f32 %v1321_v59, %v1256_v27 }
 0x1e0   : > { %v1608_v48 = vadd.f32 %v1592_v17, %v1455_v16  ;;  %v1387_v34 = vadd.f32 %v1386_v46, %v1322_v47 }
 0x1e2   : > { %v1624_v3 = vmax.f32 %v1608_v48, 0.0  ;;  %v1416_v26 = vadd.f32 %v1387_v34, %v2987_v15  ;;  %v1389_v13 = vpop.f32.mrf.mxu0  ;;  %v1542_v25 = vpop.f32.mrf.mxu1 }
 0x1e3   : > { %v1574_v38 = vmul.f32 %v3019_v62, %v1542_v25 }
 0x1e4   : > { %1640 = vst [vmem:[%s2192_s12 + $0x40] sm:$0xff] %v1624_v3  ;;  %v1436_v12 = vmul.f32 %v3024_v11, %v1416_v26  ;;  %v1259_v54 = vpop.f32.mrf.mxu2 }
 0x1e5   : > { %v1324_v24 = vpop.f32.mrf.mxu3  ;;  %v1594_v5 = vadd.f32 %v3030_v10, %v1574_v38 }
 0x1e6   : > { %v1456_v53 = vadd.f32 %v3036_v31, %v1436_v12  ;;  %v1325_v57 = vadd.f32 %v1324_v24, %v1259_v54 }
 0x1e8   : > { %v1609_v29 = vadd.f32 %v1593_v52, %v1456_v53  ;;  %v1390_v45 = vadd.f32 %v1389_v13, %v1325_v57 }
 0x1ea   : > { %v1625_v61 = vmax.f32 %v1609_v29, 0.0  ;;  %v1417_v15 = vadd.f32 %v1390_v45, %v2992_v33  ;;  %v1392_v58 = vpop.f32.mrf.mxu0  ;;  %v1545_v41 = vpop.f32.mrf.mxu1 }
 0x1eb   : > { %v1575_v2 = vmul.f32 %v3019_v62, %v1545_v41 }
 0x1ec   : > { %1641 = vst [vmem:[%s2192_s12 + $0x48] sm:$0xff] %v1625_v61  ;;  %v1437_v35 = vmul.f32 %v3024_v11, %v1417_v15  ;;  %v1262_v18 = vpop.f32.mrf.mxu2 }
 0x1ed   : > { %v1327_v23 = vpop.f32.mrf.mxu3  ;;  %v1595_v50 = vadd.f32 %v3030_v10, %v1575_v2 }
 0x1ee   : > { %v1457_v40 = vadd.f32 %v3036_v31, %v1437_v35  ;;  %v1328_v4 = vadd.f32 %v1327_v23, %v1262_v18 }
 0x1f0   : > { %v1610_v1 = vadd.f32 %v1594_v5, %v1457_v40  ;;  %v1393_v32 = vadd.f32 %v1392_v58, %v1328_v4 }
 0x1f2   : > { %v1626_v8 = vmax.f32 %v1610_v1, 0.0  ;;  %v1418_v33 = vadd.f32 %v1393_v32, %v2997_v30  ;;  %v1395_v51 = vpop.f32.mrf.mxu0  ;;  %v1548_v9 = vpop.f32.mrf.mxu1 }
 0x1f3   : > { %v1576_v37 = vmul.f32 %v3019_v62, %v1548_v9 }
 0x1f4   : > { %1642 = vst [vmem:[%s2192_s12 + $0x50] sm:$0xff] %v1626_v8  ;;  %v1438_v44 = vmul.f32 %v3024_v11, %v1418_v33  ;;  %v1265_v56 = vpop.f32.mrf.mxu2 }
 0x1f5   : > { %v1330_v22 = vpop.f32.mrf.mxu3  ;;  %v1596_v55 = vadd.f32 %v3030_v10, %v1576_v37 }
 0x1f6   : > { %v1458_v19 = vadd.f32 %v3036_v31, %v1438_v44  ;;  %v1331_v21 = vadd.f32 %v1330_v22, %v1265_v56 }
 0x1f8   : > { %v1611_v20 = vadd.f32 %v1595_v50, %v1458_v19  ;;  %v1396_v36 = vadd.f32 %v1395_v51, %v1331_v21 }
 0x1fa   : > { %v1627_v6 = vmax.f32 %v1611_v20, 0.0  ;;  %v1419_v30 = vadd.f32 %v1396_v36, %v3002_v43  ;;  %v1398_v14 = vpop.f32.mrf.mxu0  ;;  %v1551_v39 = vpop.f32.mrf.mxu1 }
 0x1fb   : > { %v1577_v16 = vmul.f32 %v3019_v62, %v1551_v39 }
 0x1fc   : > { %1643 = vst [vmem:[%s2192_s12 + $0x58] sm:$0xff] %v1627_v6  ;;  %v1439_v7 = vmul.f32 %v3024_v11, %v1419_v30  ;;  %v1268_v46 = vpop.f32.mrf.mxu2 }
 0x1fd   : > { %v1333_v60 = vpop.f32.mrf.mxu3  ;;  %v1597_v3 = vadd.f32 %v3030_v10, %v1577_v16 }
 0x1fe   : > { %v1459_v63 = vadd.f32 %v3036_v31, %v1439_v7  ;;  %v1334_v17 = vadd.f32 %v1333_v60, %v1268_v46 }
 0x200   : > { %v1612_v27 = vadd.f32 %v1596_v55, %v1459_v63  ;;  %v1399_v59 = vadd.f32 %v1398_v14, %v1334_v17 }
 0x202   : > { %v1628_v47 = vmax.f32 %v1612_v27, 0.0  ;;  %v1420_v43 = vadd.f32 %v1399_v59, %v3007_v42  ;;  %v1401_v48 = vpop.f32.mrf.mxu0  ;;  %v1554_v34 = vpop.f32.mrf.mxu1 }
 0x203   : > { %v1578_v24 = vmul.f32 %v3019_v62, %v1554_v34 }
 0x204   : > { %1644 = vst [vmem:[%s2192_s12 + $0x60] sm:$0xff] %v1628_v47  ;;  %v1440_v49 = vmul.f32 %v3024_v11, %v1420_v43  ;;  %v1271_v26 = vpop.f32.mrf.mxu2 }
 0x205   : > { %v1336_v13 = vpop.f32.mrf.mxu3  ;;  %v1598_v29 = vadd.f32 %v3030_v10, %v1578_v24 }
 0x206   : > { %v1460_v25 = vadd.f32 %v3036_v31, %v1440_v49  ;;  %v1337_v12 = vadd.f32 %v1336_v13, %v1271_v26 }
 0x208   : > { %v1613_v52 = vadd.f32 %v1597_v3, %v1460_v25  ;;  %v1402_v54 = vadd.f32 %v1401_v48, %v1337_v12 }
 0x20a   : > { %v1629_v53 = vmax.f32 %v1613_v52, 0.0  ;;  %v1421_v42 = vadd.f32 %v1402_v54, %v3011_v0  ;;  %v1404_v45 = vpop.f32.mrf.mxu0  ;;  %v1557_v38 = vpop.f32.mrf.mxu1 }
 0x20b   : > { %v1579_v18 = vmul.f32 %v3019_v62, %v1557_v38 }
 0x20c   : > { %1645 = vst [vmem:[%s2192_s12 + $0x68] sm:$0xff] %v1629_v53  ;;  %v1441_v57 = vmul.f32 %v3024_v11, %v1421_v42  ;;  %v1274_v61 = vpop.f32.mrf.mxu2 }
 0x20d   : > { %v1339_v15 = vpop.f32.mrf.mxu3  ;;  %v1599_v4 = vadd.f32 %v3030_v10, %v1579_v18 }
 0x20e   : > { %v1461_v58 = vadd.f32 %v3036_v31, %v1441_v57  ;;  %v1340_v41 = vadd.f32 %v1339_v15, %v1274_v61 }
 0x210   : > { %v1614_v35 = vadd.f32 %v1598_v29, %v1461_v58  ;;  %v1405_v5 = vadd.f32 %v1404_v45, %v1340_v41 }
 0x212   : > { %v1630_v23 = vmax.f32 %v1614_v35, 0.0  ;;  %v1422_v0 = vadd.f32 %v1405_v5, %v3014_v28 }
 0x214   : > { %1646 = vst [vmem:[%s2192_s12 + $0x70] sm:$0xff] %v1630_v23  ;;  %v1442_v40 = vmul.f32 %v3024_v11, %v1422_v0 }
 0x216   : > { %v1462_v1 = vadd.f32 %v3036_v31, %v1442_v40 }
 0x218   : > { %v1615_v32 = vadd.f32 %v1599_v4, %v1462_v1 }
 0x21a   : > { %v1631_v2 = vmax.f32 %v1615_v32, 0.0 }
 0x21c   : > { %1647 = vst [vmem:[%s2192_s12 + $0x78] sm:$0xff] %v1631_v2 }
 0x21d PF: > { %s18_s9 = sadd.s32 1, %s2102_s9   ;;  %s3156_s27 = smov %s2094_s29 }
 0x21e   : > { %p15_p7 = scmp.ge.s32.totalorder %s18_s9, 6   ;;  %s3157_s28 = smov %s2098_s30 }
 0x21f   : > { %s3158_s29 = smov %s3161_s10  ;;  %s3159_s30 = smov %s3165_s11 }
 0x220   :  { %17 = sbr.rel (!%p15_p7) target bundleno = 3 (0x3), region = 137 }
 0x225   :  { %1686 = vsyncmov [#allocation3] }
 0x228   :  { %s1687_s12 = vpop.sfrf %1686 }
 0x229   :  { %p1985_p8 = scmp.ne.s32.totalorder %s1687_s12, 0 }
 0x22b   :  { %1691 = shalt.err (%p1985_p8)  }

</bundles_post_ra>
